<compile_context>
chip_gen: v5e
topology: v5e:2x2
jax: 0.10.0
libtpu: 0.0.40
codegen_flags: <defaults>
</compile_context>

<pallas_src>
import math
import functools

import jax
import jax.numpy as jnp
from jax import lax
from jax.experimental import pallas as pl
from jax.experimental.pallas import tpu as pltpu

EPS = 1e-6
MXU_DTYPE = jnp.bfloat16       # matmul operand dtype (f32 accumulation on MXU)


# ------------------------------ configuration --------------------------------

def _vmem_limit_bytes():
    """Generation-aware scoped-VMEM budget: ~half of physical VMEM, capped at
    96 MiB (v5e/v6e: 128 MiB -> 64 MiB; v7x: 64 MiB -> 32 MiB). Safe fallback
    when hardware info is unavailable."""
    try:
        info = pltpu.get_tpu_info()
        cap = int(getattr(info, "vmem_capacity_bytes", 0) or 0)
        if cap > 0:
            return int(min(cap // 2, 96 * 1024 * 1024))
    except Exception:
        pass
    return 32 * 1024 * 1024


_VMEM_LIMIT = _vmem_limit_bytes()


def _compiler_params():
    # Single "parallel" grid axis everywhere -> shards across the two
    # TensorCores on v7x; no-op on v5e/v6e (1 TC).
    return pltpu.CompilerParams(
        dimension_semantics=("parallel",),
        vmem_limit_bytes=_VMEM_LIMIT,
    )


def _pick_row_tile(m, target=256):
    """Largest row tile <= target that divides m, is a multiple of 8, and is
    capped at m//2 so the grid has at least 2 steps (v7x megacore)."""
    cap = min(target, m // 2) if m >= 16 else m
    cap = max(cap, 8)
    if m <= cap:
        return m
    for t in range(cap - (cap % 8), 7, -8):
        if m % t == 0:
            return t
    return m


def _row_spec(tm, n):
    return pl.BlockSpec((tm, n), lambda i: (i, 0))


def _bcast_spec(shape):
    # Broadcast (grid-invariant) weight/bias block.
    # TODO(synk): on v7x add pipeline_mode=pl.Buffered(1) to single-buffer
    # these (weights never change across the grid; default double-buffering
    # wastes VMEM for large d_model/d_ff).
    nd = len(shape)
    return pl.BlockSpec(shape, lambda i: (0,) * nd)


# ------------------------------ kernel helpers --------------------------------

def _layernorm(x, alpha, beta):
    # torch.std semantics: unbiased (d-1) variance, eps added to the std.
    d = x.shape[-1]
    mean = jnp.mean(x, axis=-1, keepdims=True)
    var = jnp.sum((x - mean) ** 2, axis=-1, keepdims=True) / (d - 1)
    return alpha * (x - mean) / (jnp.sqrt(var) + EPS) + beta


def _softmax_rows(s):
    s = s - jnp.max(s, axis=-1, keepdims=True)
    p = jnp.exp(s)
    return p * pl.reciprocal(jnp.sum(p, axis=-1, keepdims=True), approx=True)


def _attention_fold_wo(q, k, v, wo, h, scale):
    """Per-head attention with the output projection folded in.

    Heads are static lane-slices of the in-VMEM q/k/v values (no HBM head
    split, no transposes).  Each head's context is immediately multiplied by
    the matching Wo row slab and accumulated in f32 -- this removes the
    head-concat lane shuffle the previous version used.  All matmuls are 2-D
    (bf16 operands, f32 accumulation); softmax stays f32 with the reciprocal
    on the EUP."""
    sq, d_model = q.shape
    dk = d_model // h
    acc = jnp.zeros((sq, d_model), jnp.float32)
    for head in range(h):
        sl = slice(head * dk, (head + 1) * dk)
        qh = q[:, sl].astype(MXU_DTYPE)
        kh = k[:, sl].astype(MXU_DTYPE)
        vh = v[:, sl].astype(MXU_DTYPE)
        s = lax.dot_general(qh, kh, (((1,), (1,)), ((), ())),
                            preferred_element_type=jnp.float32) * scale
        # NOTE: reference's masked_fill is non-in-place and discarded -> no mask.
        p = _softmax_rows(s)
        oh = jnp.dot(p.astype(MXU_DTYPE), vh, preferred_element_type=jnp.float32)
        acc = acc + jnp.dot(oh.astype(MXU_DTYPE), wo[sl, :],
                            preferred_element_type=jnp.float32)
    return acc


# ------------------------------ kernels ---------------------------------------

def _self_attn_kernel(x_ref, a_ref, b_ref, wqkv_ref, bqkv_ref, wo_ref, bo_ref,
                      o_ref, *, h, scale, d_model):
    """out = x + Wo(MHA(LN(x))) : whole self-attention sublayer in one kernel."""
    x = x_ref[...]                                             # (S, D) f32
    xn = _layernorm(x, a_ref[...], b_ref[...]).astype(MXU_DTYPE)
    qkv = jnp.dot(xn, wqkv_ref[...],
                  preferred_element_type=jnp.float32) + bqkv_ref[...]
    q = qkv[:, :d_model]
    k = qkv[:, d_model:2 * d_model]
    v = qkv[:, 2 * d_model:]
    attn = _attention_fold_wo(q, k, v, wo_ref[...], h, scale)
    o_ref[...] = x + attn + bo_ref[...]


def _cross_attn_kernel(x_ref, enc_ref, a_ref, b_ref, wq_ref, bq_ref,
                       wkv_ref, bkv_ref, wo_ref, bo_ref, o_ref, *,
                       h, scale, d_model):
    """out = x + Wo(MHA(q=LN(x), kv=encoder_output)) in one kernel."""
    x = x_ref[...]                                             # (Sq, D)  f32
    enc = enc_ref[...].astype(MXU_DTYPE)                       # (Skv, D)
    xn = _layernorm(x, a_ref[...], b_ref[...]).astype(MXU_DTYPE)
    q = jnp.dot(xn, wq_ref[...],
                preferred_element_type=jnp.float32) + bq_ref[...]
    kv = jnp.dot(enc, wkv_ref[...],
                 preferred_element_type=jnp.float32) + bkv_ref[...]
    k = kv[:, :d_model]
    v = kv[:, d_model:]
    attn = _attention_fold_wo(q, k, v, wo_ref[...], h, scale)
    o_ref[...] = x + attn + bo_ref[...]


def _ffn_kernel(x_ref, a_ref, b_ref, w1_ref, b1_ref, w2_ref, b2_ref, o_ref):
    """out = x + W2(relu(W1(LN(x)))) : whole FFN sublayer; the [rows, d_ff]
    activation never round-trips through HBM."""
    x = x_ref[...]
    xn = _layernorm(x, a_ref[...], b_ref[...]).astype(MXU_DTYPE)
    h1 = jnp.dot(xn, w1_ref[...],
                 preferred_element_type=jnp.float32) + b1_ref[...]
    h1 = jnp.maximum(h1, 0.0).astype(MXU_DTYPE)
    y = jnp.dot(h1, w2_ref[...],
                preferred_element_type=jnp.float32) + b2_ref[...]
    o_ref[...] = x + y


# ---------------------------- sublayer wrappers --------------------------------

def self_attn_sublayer(prep, x, h):
    B, S, D = x.shape
    scale = 1.0 / math.sqrt(D // h)
    kern = functools.partial(_self_attn_kernel, h=h, scale=scale, d_model=D)
    cost = pl.CostEstimate(
        flops=B * (2 * S * D * 3 * D + 4 * S * S * D + 2 * S * D * D),
        transcendentals=B * h * S * S,
        bytes_accessed=2 * B * S * D * 4 + 4 * D * D * 2 + 7 * D * 4,
    )
    return pl.pallas_call(
        kern,
        grid=(B,),
        in_specs=[
            pl.BlockSpec((None, S, D), lambda b: (b, 0, 0)),    # x (batch squeezed)
            _bcast_spec((1, D)), _bcast_spec((1, D)),           # ln0 alpha / beta
            _bcast_spec((D, 3 * D)), _bcast_spec((1, 3 * D)),   # fused wqkv / bqkv
            _bcast_spec((D, D)), _bcast_spec((1, D)),           # wo / bo
        ],
        out_specs=pl.BlockSpec((None, S, D), lambda b: (b, 0, 0)),
        out_shape=jax.ShapeDtypeStruct((B, S, D), jnp.float32),
        input_output_aliases={0: 0},       # residual buffer reused
        compiler_params=_compiler_params(),
        cost_estimate=cost,
    )(x, prep["ln0_a"], prep["ln0_b"], prep["sa_wqkv"], prep["sa_bqkv"],
      prep["sa_wo"], prep["sa_bo"])


def cross_attn_sublayer(prep, x, enc, h):
    B, Sq, D = x.shape
    Skv = enc.shape[1]
    scale = 1.0 / math.sqrt(D // h)
    kern = functools.partial(_cross_attn_kernel, h=h, scale=scale, d_model=D)
    cost = pl.CostEstimate(
        flops=B * (2 * Sq * D * D + 4 * Skv * D * D
                   + 4 * Sq * Skv * D + 2 * Sq * D * D),
        transcendentals=B * h * Sq * Skv,
        bytes_accessed=(2 * B * Sq * D + B * Skv * D) * 4 + 5 * D * D * 2 + 8 * D * 4,
    )
    return pl.pallas_call(
        kern,
        grid=(B,),
        in_specs=[
            pl.BlockSpec((None, Sq, D), lambda b: (b, 0, 0)),   # x
            pl.BlockSpec((None, Skv, D), lambda b: (b, 0, 0)),  # encoder output
            _bcast_spec((1, D)), _bcast_spec((1, D)),           # ln1 alpha / beta
            _bcast_spec((D, D)), _bcast_spec((1, D)),           # wq / bq
            _bcast_spec((D, 2 * D)), _bcast_spec((1, 2 * D)),   # fused wkv / bkv
            _bcast_spec((D, D)), _bcast_spec((1, D)),           # wo / bo
        ],
        out_specs=pl.BlockSpec((None, Sq, D), lambda b: (b, 0, 0)),
        out_shape=jax.ShapeDtypeStruct((B, Sq, D), jnp.float32),
        input_output_aliases={0: 0},
        compiler_params=_compiler_params(),
        cost_estimate=cost,
    )(x, enc, prep["ln1_a"], prep["ln1_b"], prep["ca_wq"], prep["ca_bq"],
      prep["ca_wkv"], prep["ca_bkv"], prep["ca_wo"], prep["ca_bo"])


def ffn_sublayer(prep, x, row_tile=256):
    B, S, D = x.shape
    M = B * S
    F = prep["ff_w1"].shape[1]
    x2d = x.reshape(M, D)
    tm = _pick_row_tile(M, row_tile)
    cost = pl.CostEstimate(
        flops=4 * M * D * F,
        transcendentals=M,
        bytes_accessed=2 * M * D * 4 + 2 * D * F * 2 + (F + 3 * D) * 4,
    )
    # TODO(synk): K-tile / N-tile w1 and w2 with an f32 VMEM accumulator for
    # very large d_ff on v7x (64 MiB VMEM); at these sizes both bf16 weights
    # fit resident.
    y = pl.pallas_call(
        _ffn_kernel,
        grid=(M // tm,),
        in_specs=[
            _row_spec(tm, D),
            _bcast_spec((1, D)), _bcast_spec((1, D)),   # ln2 alpha / beta
            _bcast_spec((D, F)), _bcast_spec((1, F)),   # w1 / b1
            _bcast_spec((F, D)), _bcast_spec((1, D)),   # w2 / b2
        ],
        out_specs=_row_spec(tm, D),
        out_shape=jax.ShapeDtypeStruct((M, D), jnp.float32),
        input_output_aliases={0: 0},    # x is both the LN input and the residual
        compiler_params=_compiler_params(),
        cost_estimate=cost,
    )(x2d, prep["ln2_a"], prep["ln2_b"], prep["ff_w1"], prep["ff_b1"],
      prep["ff_w2"], prep["ff_b2"])
    return y.reshape(B, S, D)


# ---------------------------- parameter preparation ----------------------------

def prepare_params(params):
    """One-time parameter prep, hoisted out of the jitted forward: fuse the
    QKV / KV projection weights, cast matmul weights to bf16, reshape biases
    and LN params to broadcast-ready (1, N) rows."""
    bf = MXU_DTYPE
    sa, ca = params["self_attn"], params["cross_attn"]
    row = lambda v: v.reshape(1, -1)
    return dict(
        ln0_a=row(params["ln0_a"]), ln0_b=row(params["ln0_b"]),
        ln1_a=row(params["ln1_a"]), ln1_b=row(params["ln1_b"]),
        ln2_a=row(params["ln2_a"]), ln2_b=row(params["ln2_b"]),
        sa_wqkv=jnp.concatenate([sa["wq"], sa["wk"], sa["wv"]], axis=1).astype(bf),
        sa_bqkv=row(jnp.concatenate([sa["bq"], sa["bk"], sa["bv"]])),
        sa_wo=sa["wo"].astype(bf), sa_bo=row(sa["bo"]),
        ca_wq=ca["wq"].astype(bf), ca_bq=row(ca["bq"]),
        ca_wkv=jnp.concatenate([ca["wk"], ca["wv"]], axis=1).astype(bf),
        ca_bkv=row(jnp.concatenate([ca["bk"], ca["bv"]])),
        ca_wo=ca["wo"].astype(bf), ca_bo=row(ca["bo"]),
        ff_w1=params["ff_w1"].astype(bf), ff_b1=row(params["ff_b1"]),
        ff_w2=params["ff_w2"].astype(bf), ff_b2=row(params["ff_b2"]),
    )


# ------------------------------ model forward ----------------------------------

@functools.partial(jax.jit, static_argnames=("h",))
def decoder_block_forward(prep, x, encoder_output, src_mask, tgt_mask, *, h):
    """Pre-norm decoder layer: self-attn, cross-attn, feed-forward, each with a
    residual connection.  3 fused pallas_calls.  src/tgt masks are accepted
    but NOT applied (faithful to the reference's discarded non-in-place
    masked_fill).  Dropout = identity (eval)."""
    del src_mask, tgt_mask
    x = self_attn_sublayer(prep, x, h)
    x = cross_attn_sublayer(prep, x, encoder_output, h)
    return ffn_sublayer(prep, x)


# ----------------------------- pure-JAX reference -------------------------------

def _ref_layernorm(x, a, b):
    mean = jnp.mean(x, axis=-1, keepdims=True)
    std = jnp.std(x, axis=-1, keepdims=True, ddof=1)
    return a * (x - mean) / (std + EPS) + b


def _ref_linear(x, w, b):
    return x @ w + b


def _ref_mha(p, q, k, v, h):
    B, Sq, D = q.shape
    Sk = k.shape[1]
    dk = D // h
    Q = _ref_linear(q, p["wq"], p["bq"]).reshape(B, Sq, h, dk).transpose(0, 2, 1, 3)
    K = _ref_linear(k, p["wk"], p["bk"]).reshape(B, Sk, h, dk).transpose(0, 2, 1, 3)
    V = _ref_linear(v, p["wv"], p["bv"]).reshape(B, Sk, h, dk).transpose(0, 2, 1, 3)
    s = jnp.einsum("bhqd,bhkd->bhqk", Q, K) / math.sqrt(dk)
    p_attn = jax.nn.softmax(s, axis=-1)
    o = jnp.einsum("bhqk,bhkd->bhqd", p_attn, V)
    o = o.transpose(0, 2, 1, 3).reshape(B, Sq, D)
    return _ref_linear(o, p["wo"], p["bo"])


def _ref_decoder(params, x, enc, h):
    y = _ref_layernorm(x, params["ln0_a"], params["ln0_b"])
    x = x + _ref_mha(params["self_attn"], y, y, y, h)
    y = _ref_layernorm(x, params["ln1_a"], params["ln1_b"])
    x = x + _ref_mha(params["cross_attn"], y, enc, enc, h)
    y = _ref_layernorm(x, params["ln2_a"], params["ln2_b"])
    ff = _ref_linear(jnp.maximum(_ref_linear(y, params["ff_w1"], params["ff_b1"]), 0.0),
                     params["ff_w2"], params["ff_b2"])
    return x + ff


# ------------------------------ parameter init ----------------------------------

def _init_linear(key, d_in, d_out):
    kw, kb = jax.random.split(key)
    bound = 1.0 / math.sqrt(d_in)
    w = jax.random.uniform(kw, (d_in, d_out), jnp.float32, -bound, bound)
    b = jax.random.uniform(kb, (d_out,), jnp.float32, -bound, bound)
    return w, b


def _init_mha(key, d_model):
    ks = jax.random.split(key, 4)
    wq, bq = _init_linear(ks[0], d_model, d_model)
    wk, bk = _init_linear(ks[1], d_model, d_model)
    wv, bv = _init_linear(ks[2], d_model, d_model)
    wo, bo = _init_linear(ks[3], d_model, d_model)
    return dict(wq=wq, bq=bq, wk=wk, bk=bk, wv=wv, bv=bv, wo=wo, bo=bo)


def init_decoder_params(key, d_model, d_ff):
    ks = jax.random.split(key, 4)
    self_attn = _init_mha(ks[0], d_model)
    cross_attn = _init_mha(ks[1], d_model)
    ff_w1, ff_b1 = _init_linear(ks[2], d_model, d_ff)
    ff_w2, ff_b2 = _init_linear(ks[3], d_ff, d_model)
    ones = jnp.ones((d_model,), jnp.float32)
    zeros = jnp.zeros((d_model,), jnp.float32)
    return dict(
        self_attn=self_attn, cross_attn=cross_attn,
        ff_w1=ff_w1, ff_b1=ff_b1, ff_w2=ff_w2, ff_b2=ff_b2,
        ln0_a=ones, ln0_b=zeros, ln1_a=ones, ln1_b=zeros, ln2_a=ones, ln2_b=zeros,
    )


# ----------------------------------- main ---------------------------------------

if __name__ == "__main__":
    B, S_TGT, S_SRC = 4, 64, 64
    D_MODEL, H, D_FF = 32, 4, 64

    key = jax.random.PRNGKey(0)
    k_params, k_x, k_enc = jax.random.split(key, 3)

    params = init_decoder_params(k_params, D_MODEL, D_FF)
    prep = prepare_params(params)            # one-time weight fusion / bf16 cast

    x = jax.random.normal(k_x, (B, S_TGT, D_MODEL), jnp.float32)
    enc = jax.random.normal(k_enc, (B, S_SRC, D_MODEL), jnp.float32)
    # masks are accepted but unused (reference's masked_fill is non-in-place)
    tgt_mask = jnp.tril(jnp.ones((1, 1, S_TGT, S_TGT), jnp.float32))
    src_mask = jnp.ones((1, 1, S_TGT, S_SRC), jnp.float32)

    out = decoder_block_forward(prep, x, enc, src_mask, tgt_mask, h=H)
    out = jax.block_until_ready(out)

    ref = _ref_decoder(params, x, enc, H)
    err = float(jnp.max(jnp.abs(out - ref)))
    assert out.shape == (B, S_TGT, D_MODEL)
    # bf16 MXU operands (f32 accumulation, f32 LN/softmax, approx reciprocal)
    # vs pure-f32 reference.
    assert jnp.allclose(out, ref, rtol=5e-2, atol=5e-2), f"max abs err = {err}"

    print("KERNEL_OK")
</pallas_src>

<mosaic_0001>
module attributes {stable_mosaic.version = 11 : i64} {
  func.func @_self_attn_kernel(%arg0: i32, %arg1: memref<1x64x32xf32, #tpu.memory_space<vmem>>, %arg2: memref<1x32xf32, #tpu.memory_space<vmem>>, %arg3: memref<1x32xf32, #tpu.memory_space<vmem>>, %arg4: memref<32x96xbf16, #tpu.memory_space<vmem>>, %arg5: memref<1x96xf32, #tpu.memory_space<vmem>>, %arg6: memref<32x32xbf16, #tpu.memory_space<vmem>>, %arg7: memref<1x32xf32, #tpu.memory_space<vmem>>, %arg8: memref<1x64x32xf32, #tpu.memory_space<vmem>>) attributes {dimension_semantics = [#tpu.dimension_semantics<parallel>], iteration_bounds = array<i64: 4>, scalar_prefetch = 0 : i64, scratch_operands = 0 : i64, tpu.core_type = #tpu.core_type<tc>, window_params = [{transform_indices = @transform_0, window_bounds = array<i64: 1, 64, 32>}, {pipeline_mode = #tpu.pipeline_mode<synchronous>, transform_indices = @transform_1, window_bounds = array<i64: 1, 32>}, {pipeline_mode = #tpu.pipeline_mode<synchronous>, transform_indices = @transform_2, window_bounds = array<i64: 1, 32>}, {pipeline_mode = #tpu.pipeline_mode<synchronous>, transform_indices = @transform_3, window_bounds = array<i64: 32, 96>}, {pipeline_mode = #tpu.pipeline_mode<synchronous>, transform_indices = @transform_4, window_bounds = array<i64: 1, 96>}, {pipeline_mode = #tpu.pipeline_mode<synchronous>, transform_indices = @transform_5, window_bounds = array<i64: 32, 32>}, {pipeline_mode = #tpu.pipeline_mode<synchronous>, transform_indices = @transform_6, window_bounds = array<i64: 1, 32>}, {transform_indices = @transform_7, window_bounds = array<i64: 1, 64, 32>}]} {
    %c0 = arith.constant 0 : index
    %c0_0 = arith.constant 0 : index
    %c0_1 = arith.constant 0 : index
    %0 = vector.load %arg1[%c0, %c0_0, %c0_1] : memref<1x64x32xf32, #tpu.memory_space<vmem>>, vector<1x64x32xf32>
    %1 = vector.shape_cast %0 : vector<1x64x32xf32> to vector<64x32xf32>
    %c0_2 = arith.constant 0 : index
    %c0_3 = arith.constant 0 : index
    %2 = vector.load %arg2[%c0_2, %c0_3] : memref<1x32xf32, #tpu.memory_space<vmem>>, vector<1x32xf32>
    %c0_4 = arith.constant 0 : index
    %c0_5 = arith.constant 0 : index
    %3 = vector.load %arg3[%c0_4, %c0_5] : memref<1x32xf32, #tpu.memory_space<vmem>>, vector<1x32xf32>
    %cst = arith.constant dense<0.000000e+00> : vector<64xf32>
    %4 = vector.multi_reduction <add>, %1, %cst [1] : vector<64x32xf32> to vector<64xf32>
    %5 = vector.shape_cast %4 : vector<64xf32> to vector<64x1xf32>
    %cst_6 = arith.constant 3.200000e+01 : f32
    %6 = vector.broadcast %cst_6 : f32 to vector<64x1xf32>
    %7 = arith.divf %5, %6 : vector<64x1xf32>
    %8 = vector.broadcast %7 : vector<64x1xf32> to vector<64x32xf32>
    %9 = arith.subf %1, %8 : vector<64x32xf32>
    %10 = arith.mulf %9, %9 : vector<64x32xf32>
    %cst_7 = arith.constant dense<0.000000e+00> : vector<64xf32>
    %11 = vector.multi_reduction <add>, %10, %cst_7 [1] : vector<64x32xf32> to vector<64xf32>
    %12 = vector.shape_cast %11 : vector<64xf32> to vector<64x1xf32>
    %cst_8 = arith.constant 3.100000e+01 : f32
    %13 = vector.broadcast %cst_8 : f32 to vector<64x1xf32>
    %14 = arith.divf %12, %13 : vector<64x1xf32>
    %15 = vector.broadcast %7 : vector<64x1xf32> to vector<64x32xf32>
    %16 = arith.subf %1, %15 : vector<64x32xf32>
    %17 = vector.broadcast %2 : vector<1x32xf32> to vector<64x32xf32>
    %18 = arith.mulf %17, %16 : vector<64x32xf32>
    %19 = math.sqrt %14 : vector<64x1xf32>
    %cst_9 = arith.constant 9.99999997E-7 : f32
    %20 = vector.broadcast %cst_9 : f32 to vector<64x1xf32>
    %21 = arith.addf %19, %20 : vector<64x1xf32>
    %22 = vector.broadcast %21 : vector<64x1xf32> to vector<64x32xf32>
    %23 = arith.divf %18, %22 : vector<64x32xf32>
    %24 = vector.broadcast %3 : vector<1x32xf32> to vector<64x32xf32>
    %25 = arith.addf %23, %24 : vector<64x32xf32>
    %26 = arith.truncf %25 : vector<64x32xf32> to vector<64x32xbf16>
    %c0_10 = arith.constant 0 : index
    %c0_11 = arith.constant 0 : index
    %27 = vector.load %arg4[%c0_10, %c0_11] : memref<32x96xbf16, #tpu.memory_space<vmem>>, vector<32x96xbf16>
    %cst_12 = arith.constant dense<0.000000e+00> : vector<64x96xf32>
    %28 = tpu.matmul %26, %27, %cst_12 {dimension_numbers = #tpu.dot_dimension_numbers<[1], [0], [0], [1], [0, 0, 1, 1], [], []>} : vector<64x32xbf16>, vector<32x96xbf16>, vector<64x96xf32> -> vector<64x96xf32>
    %c0_13 = arith.constant 0 : index
    %c0_14 = arith.constant 0 : index
    %29 = vector.load %arg5[%c0_13, %c0_14] : memref<1x96xf32, #tpu.memory_space<vmem>>, vector<1x96xf32>
    %30 = vector.broadcast %29 : vector<1x96xf32> to vector<64x96xf32>
    %31 = arith.addf %28, %30 : vector<64x96xf32>
    %32 = vector.extract_strided_slice %31 {offsets = [0, 0], sizes = [64, 32], strides = [1, 1]} : vector<64x96xf32> to vector<64x32xf32>
    %33 = vector.extract_strided_slice %31 {offsets = [0, 32], sizes = [64, 32], strides = [1, 1]} : vector<64x96xf32> to vector<64x32xf32>
    %34 = vector.extract_strided_slice %31 {offsets = [0, 64], sizes = [64, 32], strides = [1, 1]} : vector<64x96xf32> to vector<64x32xf32>
    %c0_15 = arith.constant 0 : index
    %c0_16 = arith.constant 0 : index
    %35 = vector.load %arg6[%c0_15, %c0_16] : memref<32x32xbf16, #tpu.memory_space<vmem>>, vector<32x32xbf16>
    %cst_17 = arith.constant 0.000000e+00 : f32
    %36 = vector.broadcast %cst_17 : f32 to vector<64x32xf32>
    %37 = vector.extract_strided_slice %32 {offsets = [0, 0], sizes = [64, 8], strides = [1, 1]} : vector<64x32xf32> to vector<64x8xf32>
    %38 = arith.truncf %37 : vector<64x8xf32> to vector<64x8xbf16>
    %39 = vector.extract_strided_slice %33 {offsets = [0, 0], sizes = [64, 8], strides = [1, 1]} : vector<64x32xf32> to vector<64x8xf32>
    %40 = arith.truncf %39 : vector<64x8xf32> to vector<64x8xbf16>
    %41 = vector.extract_strided_slice %34 {offsets = [0, 0], sizes = [64, 8], strides = [1, 1]} : vector<64x32xf32> to vector<64x8xf32>
    %42 = arith.truncf %41 : vector<64x8xf32> to vector<64x8xbf16>
    %cst_18 = arith.constant dense<0.000000e+00> : vector<64x64xf32>
    %43 = tpu.matmul %38, %40, %cst_18 {dimension_numbers = #tpu.dot_dimension_numbers<[1], [1], [0], [0], [0, 0, 1, 0], [], []>} : vector<64x8xbf16>, vector<64x8xbf16>, vector<64x64xf32> -> vector<64x64xf32>
    %cst_19 = arith.constant 0.353553385 : f32
    %44 = vector.broadcast %cst_19 : f32 to vector<64x64xf32>
    %45 = arith.mulf %43, %44 : vector<64x64xf32>
    %cst_20 = arith.constant dense<0xFF800000> : vector<64xf32>
    %46 = vector.multi_reduction <maximumf>, %45, %cst_20 [1] : vector<64x64xf32> to vector<64xf32>
    %47 = vector.shape_cast %46 : vector<64xf32> to vector<64x1xf32>
    %48 = vector.broadcast %47 : vector<64x1xf32> to vector<64x64xf32>
    %49 = arith.subf %45, %48 : vector<64x64xf32>
    %50 = math.exp %49 : vector<64x64xf32>
    %cst_21 = arith.constant dense<0.000000e+00> : vector<64xf32>
    %51 = vector.multi_reduction <add>, %50, %cst_21 [1] : vector<64x64xf32> to vector<64xf32>
    %52 = vector.shape_cast %51 : vector<64xf32> to vector<64x1xf32>
    %53 = tpu.reciprocal %52 {approx = true} : vector<64x1xf32> -> vector<64x1xf32>
    %54 = vector.broadcast %53 : vector<64x1xf32> to vector<64x64xf32>
    %55 = arith.mulf %50, %54 : vector<64x64xf32>
    %56 = arith.truncf %55 : vector<64x64xf32> to vector<64x64xbf16>
    %cst_22 = arith.constant dense<0.000000e+00> : vector<64x8xf32>
    %57 = tpu.matmul %56, %42, %cst_22 {dimension_numbers = #tpu.dot_dimension_numbers<[1], [0], [0], [1], [0, 0, 1, 1], [], []>} : vector<64x64xbf16>, vector<64x8xbf16>, vector<64x8xf32> -> vector<64x8xf32>
    %58 = arith.truncf %57 : vector<64x8xf32> to vector<64x8xbf16>
    %59 = vector.extract_strided_slice %35 {offsets = [0, 0], sizes = [8, 32], strides = [1, 1]} : vector<32x32xbf16> to vector<8x32xbf16>
    %cst_23 = arith.constant dense<0.000000e+00> : vector<64x32xf32>
    %60 = tpu.matmul %58, %59, %cst_23 {dimension_numbers = #tpu.dot_dimension_numbers<[1], [0], [0], [1], [0, 0, 1, 1], [], []>} : vector<64x8xbf16>, vector<8x32xbf16>, vector<64x32xf32> -> vector<64x32xf32>
    %61 = arith.addf %36, %60 : vector<64x32xf32>
    %62 = vector.extract_strided_slice %32 {offsets = [0, 8], sizes = [64, 8], strides = [1, 1]} : vector<64x32xf32> to vector<64x8xf32>
    %63 = arith.truncf %62 : vector<64x8xf32> to vector<64x8xbf16>
    %64 = vector.extract_strided_slice %33 {offsets = [0, 8], sizes = [64, 8], strides = [1, 1]} : vector<64x32xf32> to vector<64x8xf32>
    %65 = arith.truncf %64 : vector<64x8xf32> to vector<64x8xbf16>
    %66 = vector.extract_strided_slice %34 {offsets = [0, 8], sizes = [64, 8], strides = [1, 1]} : vector<64x32xf32> to vector<64x8xf32>
    %67 = arith.truncf %66 : vector<64x8xf32> to vector<64x8xbf16>
    %cst_24 = arith.constant dense<0.000000e+00> : vector<64x64xf32>
    %68 = tpu.matmul %63, %65, %cst_24 {dimension_numbers = #tpu.dot_dimension_numbers<[1], [1], [0], [0], [0, 0, 1, 0], [], []>} : vector<64x8xbf16>, vector<64x8xbf16>, vector<64x64xf32> -> vector<64x64xf32>
    %cst_25 = arith.constant 0.353553385 : f32
    %69 = vector.broadcast %cst_25 : f32 to vector<64x64xf32>
    %70 = arith.mulf %68, %69 : vector<64x64xf32>
    %cst_26 = arith.constant dense<0xFF800000> : vector<64xf32>
    %71 = vector.multi_reduction <maximumf>, %70, %cst_26 [1] : vector<64x64xf32> to vector<64xf32>
    %72 = vector.shape_cast %71 : vector<64xf32> to vector<64x1xf32>
    %73 = vector.broadcast %72 : vector<64x1xf32> to vector<64x64xf32>
    %74 = arith.subf %70, %73 : vector<64x64xf32>
    %75 = math.exp %74 : vector<64x64xf32>
    %cst_27 = arith.constant dense<0.000000e+00> : vector<64xf32>
    %76 = vector.multi_reduction <add>, %75, %cst_27 [1] : vector<64x64xf32> to vector<64xf32>
    %77 = vector.shape_cast %76 : vector<64xf32> to vector<64x1xf32>
    %78 = tpu.reciprocal %77 {approx = true} : vector<64x1xf32> -> vector<64x1xf32>
    %79 = vector.broadcast %78 : vector<64x1xf32> to vector<64x64xf32>
    %80 = arith.mulf %75, %79 : vector<64x64xf32>
    %81 = arith.truncf %80 : vector<64x64xf32> to vector<64x64xbf16>
    %cst_28 = arith.constant dense<0.000000e+00> : vector<64x8xf32>
    %82 = tpu.matmul %81, %67, %cst_28 {dimension_numbers = #tpu.dot_dimension_numbers<[1], [0], [0], [1], [0, 0, 1, 1], [], []>} : vector<64x64xbf16>, vector<64x8xbf16>, vector<64x8xf32> -> vector<64x8xf32>
    %83 = arith.truncf %82 : vector<64x8xf32> to vector<64x8xbf16>
    %84 = vector.extract_strided_slice %35 {offsets = [8, 0], sizes = [8, 32], strides = [1, 1]} : vector<32x32xbf16> to vector<8x32xbf16>
    %cst_29 = arith.constant dense<0.000000e+00> : vector<64x32xf32>
    %85 = tpu.matmul %83, %84, %cst_29 {dimension_numbers = #tpu.dot_dimension_numbers<[1], [0], [0], [1], [0, 0, 1, 1], [], []>} : vector<64x8xbf16>, vector<8x32xbf16>, vector<64x32xf32> -> vector<64x32xf32>
    %86 = arith.addf %61, %85 : vector<64x32xf32>
    %87 = vector.extract_strided_slice %32 {offsets = [0, 16], sizes = [64, 8], strides = [1, 1]} : vector<64x32xf32> to vector<64x8xf32>
    %88 = arith.truncf %87 : vector<64x8xf32> to vector<64x8xbf16>
    %89 = vector.extract_strided_slice %33 {offsets = [0, 16], sizes = [64, 8], strides = [1, 1]} : vector<64x32xf32> to vector<64x8xf32>
    %90 = arith.truncf %89 : vector<64x8xf32> to vector<64x8xbf16>
    %91 = vector.extract_strided_slice %34 {offsets = [0, 16], sizes = [64, 8], strides = [1, 1]} : vector<64x32xf32> to vector<64x8xf32>
    %92 = arith.truncf %91 : vector<64x8xf32> to vector<64x8xbf16>
    %cst_30 = arith.constant dense<0.000000e+00> : vector<64x64xf32>
    %93 = tpu.matmul %88, %90, %cst_30 {dimension_numbers = #tpu.dot_dimension_numbers<[1], [1], [0], [0], [0, 0, 1, 0], [], []>} : vector<64x8xbf16>, vector<64x8xbf16>, vector<64x64xf32> -> vector<64x64xf32>
    %cst_31 = arith.constant 0.353553385 : f32
    %94 = vector.broadcast %cst_31 : f32 to vector<64x64xf32>
    %95 = arith.mulf %93, %94 : vector<64x64xf32>
    %cst_32 = arith.constant dense<0xFF800000> : vector<64xf32>
    %96 = vector.multi_reduction <maximumf>, %95, %cst_32 [1] : vector<64x64xf32> to vector<64xf32>
    %97 = vector.shape_cast %96 : vector<64xf32> to vector<64x1xf32>
    %98 = vector.broadcast %97 : vector<64x1xf32> to vector<64x64xf32>
    %99 = arith.subf %95, %98 : vector<64x64xf32>
    %100 = math.exp %99 : vector<64x64xf32>
    %cst_33 = arith.constant dense<0.000000e+00> : vector<64xf32>
    %101 = vector.multi_reduction <add>, %100, %cst_33 [1] : vector<64x64xf32> to vector<64xf32>
    %102 = vector.shape_cast %101 : vector<64xf32> to vector<64x1xf32>
    %103 = tpu.reciprocal %102 {approx = true} : vector<64x1xf32> -> vector<64x1xf32>
    %104 = vector.broadcast %103 : vector<64x1xf32> to vector<64x64xf32>
    %105 = arith.mulf %100, %104 : vector<64x64xf32>
    %106 = arith.truncf %105 : vector<64x64xf32> to vector<64x64xbf16>
    %cst_34 = arith.constant dense<0.000000e+00> : vector<64x8xf32>
    %107 = tpu.matmul %106, %92, %cst_34 {dimension_numbers = #tpu.dot_dimension_numbers<[1], [0], [0], [1], [0, 0, 1, 1], [], []>} : vector<64x64xbf16>, vector<64x8xbf16>, vector<64x8xf32> -> vector<64x8xf32>
    %108 = arith.truncf %107 : vector<64x8xf32> to vector<64x8xbf16>
    %109 = vector.extract_strided_slice %35 {offsets = [16, 0], sizes = [8, 32], strides = [1, 1]} : vector<32x32xbf16> to vector<8x32xbf16>
    %cst_35 = arith.constant dense<0.000000e+00> : vector<64x32xf32>
    %110 = tpu.matmul %108, %109, %cst_35 {dimension_numbers = #tpu.dot_dimension_numbers<[1], [0], [0], [1], [0, 0, 1, 1], [], []>} : vector<64x8xbf16>, vector<8x32xbf16>, vector<64x32xf32> -> vector<64x32xf32>
    %111 = arith.addf %86, %110 : vector<64x32xf32>
    %112 = vector.extract_strided_slice %32 {offsets = [0, 24], sizes = [64, 8], strides = [1, 1]} : vector<64x32xf32> to vector<64x8xf32>
    %113 = arith.truncf %112 : vector<64x8xf32> to vector<64x8xbf16>
    %114 = vector.extract_strided_slice %33 {offsets = [0, 24], sizes = [64, 8], strides = [1, 1]} : vector<64x32xf32> to vector<64x8xf32>
    %115 = arith.truncf %114 : vector<64x8xf32> to vector<64x8xbf16>
    %116 = vector.extract_strided_slice %34 {offsets = [0, 24], sizes = [64, 8], strides = [1, 1]} : vector<64x32xf32> to vector<64x8xf32>
    %117 = arith.truncf %116 : vector<64x8xf32> to vector<64x8xbf16>
    %cst_36 = arith.constant dense<0.000000e+00> : vector<64x64xf32>
    %118 = tpu.matmul %113, %115, %cst_36 {dimension_numbers = #tpu.dot_dimension_numbers<[1], [1], [0], [0], [0, 0, 1, 0], [], []>} : vector<64x8xbf16>, vector<64x8xbf16>, vector<64x64xf32> -> vector<64x64xf32>
    %cst_37 = arith.constant 0.353553385 : f32
    %119 = vector.broadcast %cst_37 : f32 to vector<64x64xf32>
    %120 = arith.mulf %118, %119 : vector<64x64xf32>
    %cst_38 = arith.constant dense<0xFF800000> : vector<64xf32>
    %121 = vector.multi_reduction <maximumf>, %120, %cst_38 [1] : vector<64x64xf32> to vector<64xf32>
    %122 = vector.shape_cast %121 : vector<64xf32> to vector<64x1xf32>
    %123 = vector.broadcast %122 : vector<64x1xf32> to vector<64x64xf32>
    %124 = arith.subf %120, %123 : vector<64x64xf32>
    %125 = math.exp %124 : vector<64x64xf32>
    %cst_39 = arith.constant dense<0.000000e+00> : vector<64xf32>
    %126 = vector.multi_reduction <add>, %125, %cst_39 [1] : vector<64x64xf32> to vector<64xf32>
    %127 = vector.shape_cast %126 : vector<64xf32> to vector<64x1xf32>
    %128 = tpu.reciprocal %127 {approx = true} : vector<64x1xf32> -> vector<64x1xf32>
    %129 = vector.broadcast %128 : vector<64x1xf32> to vector<64x64xf32>
    %130 = arith.mulf %125, %129 : vector<64x64xf32>
    %131 = arith.truncf %130 : vector<64x64xf32> to vector<64x64xbf16>
    %cst_40 = arith.constant dense<0.000000e+00> : vector<64x8xf32>
    %132 = tpu.matmul %131, %117, %cst_40 {dimension_numbers = #tpu.dot_dimension_numbers<[1], [0], [0], [1], [0, 0, 1, 1], [], []>} : vector<64x64xbf16>, vector<64x8xbf16>, vector<64x8xf32> -> vector<64x8xf32>
    %133 = arith.truncf %132 : vector<64x8xf32> to vector<64x8xbf16>
    %134 = vector.extract_strided_slice %35 {offsets = [24, 0], sizes = [8, 32], strides = [1, 1]} : vector<32x32xbf16> to vector<8x32xbf16>
    %cst_41 = arith.constant dense<0.000000e+00> : vector<64x32xf32>
    %135 = tpu.matmul %133, %134, %cst_41 {dimension_numbers = #tpu.dot_dimension_numbers<[1], [0], [0], [1], [0, 0, 1, 1], [], []>} : vector<64x8xbf16>, vector<8x32xbf16>, vector<64x32xf32> -> vector<64x32xf32>
    %136 = arith.addf %111, %135 : vector<64x32xf32>
    %137 = arith.addf %1, %136 : vector<64x32xf32>
    %c0_42 = arith.constant 0 : index
    %c0_43 = arith.constant 0 : index
    %138 = vector.load %arg7[%c0_42, %c0_43] : memref<1x32xf32, #tpu.memory_space<vmem>>, vector<1x32xf32>
    %139 = vector.broadcast %138 : vector<1x32xf32> to vector<64x32xf32>
    %140 = arith.addf %137, %139 : vector<64x32xf32>
    %c0_44 = arith.constant 0 : index
    %c0_45 = arith.constant 0 : index
    %c0_46 = arith.constant 0 : index
    %141 = vector.load %arg8[%c0_44, %c0_45, %c0_46] : memref<1x64x32xf32, #tpu.memory_space<vmem>>, vector<1x64x32xf32>
    %142 = vector.shape_cast %141 : vector<1x64x32xf32> to vector<64x32xf32>
    %143 = vector.shape_cast %140 : vector<64x32xf32> to vector<1x64x32xf32>
    tpu.vector_store %arg8[%c0_44, %c0_45, %c0_46], %143 {strides = array<i32>} : memref<1x64x32xf32, #tpu.memory_space<vmem>>, vector<1x64x32xf32>,
    return
  }
  func.func @transform_0(%arg0: i32) -> (i32, i32, i32) {
    %c0_i32 = arith.constant 0 : i32
    %c0_i32_0 = arith.constant 0 : i32
    %c0_i32_1 = arith.constant 0 : i32
    return %arg0, %c0_i32, %c0_i32_0 : i32, i32, i32
  }
  func.func @transform_1(%arg0: i32) -> (i32, i32) {
    %c0_i32 = arith.constant 0 : i32
    %c0_i32_0 = arith.constant 0 : i32
    %c0_i32_1 = arith.constant 0 : i32
    return %c0_i32, %c0_i32_0 : i32, i32
  }
  func.func @transform_2(%arg0: i32) -> (i32, i32) {
    %c0_i32 = arith.constant 0 : i32
    %c0_i32_0 = arith.constant 0 : i32
    %c0_i32_1 = arith.constant 0 : i32
    return %c0_i32, %c0_i32_0 : i32, i32
  }
  func.func @transform_3(%arg0: i32) -> (i32, i32) {
    %c0_i32 = arith.constant 0 : i32
    %c0_i32_0 = arith.constant 0 : i32
    %c0_i32_1 = arith.constant 0 : i32
    return %c0_i32, %c0_i32_0 : i32, i32
  }
  func.func @transform_4(%arg0: i32) -> (i32, i32) {
    %c0_i32 = arith.constant 0 : i32
    %c0_i32_0 = arith.constant 0 : i32
    %c0_i32_1 = arith.constant 0 : i32
    return %c0_i32, %c0_i32_0 : i32, i32
  }
  func.func @transform_5(%arg0: i32) -> (i32, i32) {
    %c0_i32 = arith.constant 0 : i32
    %c0_i32_0 = arith.constant 0 : i32
    %c0_i32_1 = arith.constant 0 : i32
    return %c0_i32, %c0_i32_0 : i32, i32
  }
  func.func @transform_6(%arg0: i32) -> (i32, i32) {
    %c0_i32 = arith.constant 0 : i32
    %c0_i32_0 = arith.constant 0 : i32
    %c0_i32_1 = arith.constant 0 : i32
    return %c0_i32, %c0_i32_0 : i32, i32
  }
  func.func @transform_7(%arg0: i32) -> (i32, i32, i32) {
    %c0_i32 = arith.constant 0 : i32
    %c0_i32_0 = arith.constant 0 : i32
    %c0_i32_1 = arith.constant 0 : i32
    return %arg0, %c0_i32, %c0_i32_0 : i32, i32, i32
  }
}

module attributes {stable_mosaic.version = 11 : i64} {
  func.func @_cross_attn_kernel(%arg0: i32, %arg1: memref<1x64x32xf32, #tpu.memory_space<vmem>>, %arg2: memref<1x64x32xf32, #tpu.memory_space<vmem>>, %arg3: memref<1x32xf32, #tpu.memory_space<vmem>>, %arg4: memref<1x32xf32, #tpu.memory_space<vmem>>, %arg5: memref<32x32xbf16, #tpu.memory_space<vmem>>, %arg6: memref<1x32xf32, #tpu.memory_space<vmem>>, %arg7: memref<32x64xbf16, #tpu.memory_space<vmem>>, %arg8: memref<1x64xf32, #tpu.memory_space<vmem>>, %arg9: memref<32x32xbf16, #tpu.memory_space<vmem>>, %arg10: memref<1x32xf32, #tpu.memory_space<vmem>>, %arg11: memref<1x64x32xf32, #tpu.memory_space<vmem>>) attributes {dimension_semantics = [#tpu.dimension_semantics<parallel>], iteration_bounds = array<i64: 4>, scalar_prefetch = 0 : i64, scratch_operands = 0 : i64, tpu.core_type = #tpu.core_type<tc>, window_params = [{transform_indices = @transform_0, window_bounds = array<i64: 1, 64, 32>}, {transform_indices = @transform_1, window_bounds = array<i64: 1, 64, 32>}, {pipeline_mode = #tpu.pipeline_mode<synchronous>, transform_indices = @transform_2, window_bounds = array<i64: 1, 32>}, {pipeline_mode = #tpu.pipeline_mode<synchronous>, transform_indices = @transform_3, window_bounds = array<i64: 1, 32>}, {pipeline_mode = #tpu.pipeline_mode<synchronous>, transform_indices = @transform_4, window_bounds = array<i64: 32, 32>}, {pipeline_mode = #tpu.pipeline_mode<synchronous>, transform_indices = @transform_5, window_bounds = array<i64: 1, 32>}, {pipeline_mode = #tpu.pipeline_mode<synchronous>, transform_indices = @transform_6, window_bounds = array<i64: 32, 64>}, {pipeline_mode = #tpu.pipeline_mode<synchronous>, transform_indices = @transform_7, window_bounds = array<i64: 1, 64>}, {pipeline_mode = #tpu.pipeline_mode<synchronous>, transform_indices = @transform_8, window_bounds = array<i64: 32, 32>}, {pipeline_mode = #tpu.pipeline_mode<synchronous>, transform_indices = @transform_9, window_bounds = array<i64: 1, 32>}, {transform_indices = @transform_10, window_bounds = array<i64: 1, 64, 32>}]} {
    %c0 = arith.constant 0 : index
    %c0_0 = arith.constant 0 : index
    %c0_1 = arith.constant 0 : index
    %0 = vector.load %arg1[%c0, %c0_0, %c0_1] : memref<1x64x32xf32, #tpu.memory_space<vmem>>, vector<1x64x32xf32>
    %1 = vector.shape_cast %0 : vector<1x64x32xf32> to vector<64x32xf32>
    %c0_2 = arith.constant 0 : index
    %c0_3 = arith.constant 0 : index
    %c0_4 = arith.constant 0 : index
    %2 = vector.load %arg2[%c0_2, %c0_3, %c0_4] : memref<1x64x32xf32, #tpu.memory_space<vmem>>, vector<1x64x32xf32>
    %3 = vector.shape_cast %2 : vector<1x64x32xf32> to vector<64x32xf32>
    %4 = arith.truncf %3 : vector<64x32xf32> to vector<64x32xbf16>
    %c0_5 = arith.constant 0 : index
    %c0_6 = arith.constant 0 : index
    %5 = vector.load %arg3[%c0_5, %c0_6] : memref<1x32xf32, #tpu.memory_space<vmem>>, vector<1x32xf32>
    %c0_7 = arith.constant 0 : index
    %c0_8 = arith.constant 0 : index
    %6 = vector.load %arg4[%c0_7, %c0_8] : memref<1x32xf32, #tpu.memory_space<vmem>>, vector<1x32xf32>
    %cst = arith.constant dense<0.000000e+00> : vector<64xf32>
    %7 = vector.multi_reduction <add>, %1, %cst [1] : vector<64x32xf32> to vector<64xf32>
    %8 = vector.shape_cast %7 : vector<64xf32> to vector<64x1xf32>
    %cst_9 = arith.constant 3.200000e+01 : f32
    %9 = vector.broadcast %cst_9 : f32 to vector<64x1xf32>
    %10 = arith.divf %8, %9 : vector<64x1xf32>
    %11 = vector.broadcast %10 : vector<64x1xf32> to vector<64x32xf32>
    %12 = arith.subf %1, %11 : vector<64x32xf32>
    %13 = arith.mulf %12, %12 : vector<64x32xf32>
    %cst_10 = arith.constant dense<0.000000e+00> : vector<64xf32>
    %14 = vector.multi_reduction <add>, %13, %cst_10 [1] : vector<64x32xf32> to vector<64xf32>
    %15 = vector.shape_cast %14 : vector<64xf32> to vector<64x1xf32>
    %cst_11 = arith.constant 3.100000e+01 : f32
    %16 = vector.broadcast %cst_11 : f32 to vector<64x1xf32>
    %17 = arith.divf %15, %16 : vector<64x1xf32>
    %18 = vector.broadcast %10 : vector<64x1xf32> to vector<64x32xf32>
    %19 = arith.subf %1, %18 : vector<64x32xf32>
    %20 = vector.broadcast %5 : vector<1x32xf32> to vector<64x32xf32>
    %21 = arith.mulf %20, %19 : vector<64x32xf32>
    %22 = math.sqrt %17 : vector<64x1xf32>
    %cst_12 = arith.constant 9.99999997E-7 : f32
    %23 = vector.broadcast %cst_12 : f32 to vector<64x1xf32>
    %24 = arith.addf %22, %23 : vector<64x1xf32>
    %25 = vector.broadcast %24 : vector<64x1xf32> to vector<64x32xf32>
    %26 = arith.divf %21, %25 : vector<64x32xf32>
    %27 = vector.broadcast %6 : vector<1x32xf32> to vector<64x32xf32>
    %28 = arith.addf %26, %27 : vector<64x32xf32>
    %29 = arith.truncf %28 : vector<64x32xf32> to vector<64x32xbf16>
    %c0_13 = arith.constant 0 : index
    %c0_14 = arith.constant 0 : index
    %30 = vector.load %arg5[%c0_13, %c0_14] : memref<32x32xbf16, #tpu.memory_space<vmem>>, vector<32x32xbf16>
    %cst_15 = arith.constant dense<0.000000e+00> : vector<64x32xf32>
    %31 = tpu.matmul %29, %30, %cst_15 {dimension_numbers = #tpu.dot_dimension_numbers<[1], [0], [0], [1], [0, 0, 1, 1], [], []>} : vector<64x32xbf16>, vector<32x32xbf16>, vector<64x32xf32> -> vector<64x32xf32>
    %c0_16 = arith.constant 0 : index
    %c0_17 = arith.constant 0 : index
    %32 = vector.load %arg6[%c0_16, %c0_17] : memref<1x32xf32, #tpu.memory_space<vmem>>, vector<1x32xf32>
    %33 = vector.broadcast %32 : vector<1x32xf32> to vector<64x32xf32>
    %34 = arith.addf %31, %33 : vector<64x32xf32>
    %c0_18 = arith.constant 0 : index
    %c0_19 = arith.constant 0 : index
    %35 = vector.load %arg7[%c0_18, %c0_19] : memref<32x64xbf16, #tpu.memory_space<vmem>>, vector<32x64xbf16>
    %cst_20 = arith.constant dense<0.000000e+00> : vector<64x64xf32>
    %36 = tpu.matmul %4, %35, %cst_20 {dimension_numbers = #tpu.dot_dimension_numbers<[1], [0], [0], [1], [0, 0, 1, 1], [], []>} : vector<64x32xbf16>, vector<32x64xbf16>, vector<64x64xf32> -> vector<64x64xf32>
    %c0_21 = arith.constant 0 : index
    %c0_22 = arith.constant 0 : index
    %37 = vector.load %arg8[%c0_21, %c0_22] : memref<1x64xf32, #tpu.memory_space<vmem>>, vector<1x64xf32>
    %38 = vector.broadcast %37 : vector<1x64xf32> to vector<64x64xf32>
    %39 = arith.addf %36, %38 : vector<64x64xf32>
    %40 = vector.extract_strided_slice %39 {offsets = [0, 0], sizes = [64, 32], strides = [1, 1]} : vector<64x64xf32> to vector<64x32xf32>
    %41 = vector.extract_strided_slice %39 {offsets = [0, 32], sizes = [64, 32], strides = [1, 1]} : vector<64x64xf32> to vector<64x32xf32>
    %c0_23 = arith.constant 0 : index
    %c0_24 = arith.constant 0 : index
    %42 = vector.load %arg9[%c0_23, %c0_24] : memref<32x32xbf16, #tpu.memory_space<vmem>>, vector<32x32xbf16>
    %cst_25 = arith.constant 0.000000e+00 : f32
    %43 = vector.broadcast %cst_25 : f32 to vector<64x32xf32>
    %44 = vector.extract_strided_slice %34 {offsets = [0, 0], sizes = [64, 8], strides = [1, 1]} : vector<64x32xf32> to vector<64x8xf32>
    %45 = arith.truncf %44 : vector<64x8xf32> to vector<64x8xbf16>
    %46 = vector.extract_strided_slice %40 {offsets = [0, 0], sizes = [64, 8], strides = [1, 1]} : vector<64x32xf32> to vector<64x8xf32>
    %47 = arith.truncf %46 : vector<64x8xf32> to vector<64x8xbf16>
    %48 = vector.extract_strided_slice %41 {offsets = [0, 0], sizes = [64, 8], strides = [1, 1]} : vector<64x32xf32> to vector<64x8xf32>
    %49 = arith.truncf %48 : vector<64x8xf32> to vector<64x8xbf16>
    %cst_26 = arith.constant dense<0.000000e+00> : vector<64x64xf32>
    %50 = tpu.matmul %45, %47, %cst_26 {dimension_numbers = #tpu.dot_dimension_numbers<[1], [1], [0], [0], [0, 0, 1, 0], [], []>} : vector<64x8xbf16>, vector<64x8xbf16>, vector<64x64xf32> -> vector<64x64xf32>
    %cst_27 = arith.constant 0.353553385 : f32
    %51 = vector.broadcast %cst_27 : f32 to vector<64x64xf32>
    %52 = arith.mulf %50, %51 : vector<64x64xf32>
    %cst_28 = arith.constant dense<0xFF800000> : vector<64xf32>
    %53 = vector.multi_reduction <maximumf>, %52, %cst_28 [1] : vector<64x64xf32> to vector<64xf32>
    %54 = vector.shape_cast %53 : vector<64xf32> to vector<64x1xf32>
    %55 = vector.broadcast %54 : vector<64x1xf32> to vector<64x64xf32>
    %56 = arith.subf %52, %55 : vector<64x64xf32>
    %57 = math.exp %56 : vector<64x64xf32>
    %cst_29 = arith.constant dense<0.000000e+00> : vector<64xf32>
    %58 = vector.multi_reduction <add>, %57, %cst_29 [1] : vector<64x64xf32> to vector<64xf32>
    %59 = vector.shape_cast %58 : vector<64xf32> to vector<64x1xf32>
    %60 = tpu.reciprocal %59 {approx = true} : vector<64x1xf32> -> vector<64x1xf32>
    %61 = vector.broadcast %60 : vector<64x1xf32> to vector<64x64xf32>
    %62 = arith.mulf %57, %61 : vector<64x64xf32>
    %63 = arith.truncf %62 : vector<64x64xf32> to vector<64x64xbf16>
    %cst_30 = arith.constant dense<0.000000e+00> : vector<64x8xf32>
    %64 = tpu.matmul %63, %49, %cst_30 {dimension_numbers = #tpu.dot_dimension_numbers<[1], [0], [0], [1], [0, 0, 1, 1], [], []>} : vector<64x64xbf16>, vector<64x8xbf16>, vector<64x8xf32> -> vector<64x8xf32>
    %65 = arith.truncf %64 : vector<64x8xf32> to vector<64x8xbf16>
    %66 = vector.extract_strided_slice %42 {offsets = [0, 0], sizes = [8, 32], strides = [1, 1]} : vector<32x32xbf16> to vector<8x32xbf16>
    %cst_31 = arith.constant dense<0.000000e+00> : vector<64x32xf32>
    %67 = tpu.matmul %65, %66, %cst_31 {dimension_numbers = #tpu.dot_dimension_numbers<[1], [0], [0], [1], [0, 0, 1, 1], [], []>} : vector<64x8xbf16>, vector<8x32xbf16>, vector<64x32xf32> -> vector<64x32xf32>
    %68 = arith.addf %43, %67 : vector<64x32xf32>
    %69 = vector.extract_strided_slice %34 {offsets = [0, 8], sizes = [64, 8], strides = [1, 1]} : vector<64x32xf32> to vector<64x8xf32>
    %70 = arith.truncf %69 : vector<64x8xf32> to vector<64x8xbf16>
    %71 = vector.extract_strided_slice %40 {offsets = [0, 8], sizes = [64, 8], strides = [1, 1]} : vector<64x32xf32> to vector<64x8xf32>
    %72 = arith.truncf %71 : vector<64x8xf32> to vector<64x8xbf16>
    %73 = vector.extract_strided_slice %41 {offsets = [0, 8], sizes = [64, 8], strides = [1, 1]} : vector<64x32xf32> to vector<64x8xf32>
    %74 = arith.truncf %73 : vector<64x8xf32> to vector<64x8xbf16>
    %cst_32 = arith.constant dense<0.000000e+00> : vector<64x64xf32>
    %75 = tpu.matmul %70, %72, %cst_32 {dimension_numbers = #tpu.dot_dimension_numbers<[1], [1], [0], [0], [0, 0, 1, 0], [], []>} : vector<64x8xbf16>, vector<64x8xbf16>, vector<64x64xf32> -> vector<64x64xf32>
    %cst_33 = arith.constant 0.353553385 : f32
    %76 = vector.broadcast %cst_33 : f32 to vector<64x64xf32>
    %77 = arith.mulf %75, %76 : vector<64x64xf32>
    %cst_34 = arith.constant dense<0xFF800000> : vector<64xf32>
    %78 = vector.multi_reduction <maximumf>, %77, %cst_34 [1] : vector<64x64xf32> to vector<64xf32>
    %79 = vector.shape_cast %78 : vector<64xf32> to vector<64x1xf32>
    %80 = vector.broadcast %79 : vector<64x1xf32> to vector<64x64xf32>
    %81 = arith.subf %77, %80 : vector<64x64xf32>
    %82 = math.exp %81 : vector<64x64xf32>
    %cst_35 = arith.constant dense<0.000000e+00> : vector<64xf32>
    %83 = vector.multi_reduction <add>, %82, %cst_35 [1] : vector<64x64xf32> to vector<64xf32>
    %84 = vector.shape_cast %83 : vector<64xf32> to vector<64x1xf32>
    %85 = tpu.reciprocal %84 {approx = true} : vector<64x1xf32> -> vector<64x1xf32>
    %86 = vector.broadcast %85 : vector<64x1xf32> to vector<64x64xf32>
    %87 = arith.mulf %82, %86 : vector<64x64xf32>
    %88 = arith.truncf %87 : vector<64x64xf32> to vector<64x64xbf16>
    %cst_36 = arith.constant dense<0.000000e+00> : vector<64x8xf32>
    %89 = tpu.matmul %88, %74, %cst_36 {dimension_numbers = #tpu.dot_dimension_numbers<[1], [0], [0], [1], [0, 0, 1, 1], [], []>} : vector<64x64xbf16>, vector<64x8xbf16>, vector<64x8xf32> -> vector<64x8xf32>
    %90 = arith.truncf %89 : vector<64x8xf32> to vector<64x8xbf16>
    %91 = vector.extract_strided_slice %42 {offsets = [8, 0], sizes = [8, 32], strides = [1, 1]} : vector<32x32xbf16> to vector<8x32xbf16>
    %cst_37 = arith.constant dense<0.000000e+00> : vector<64x32xf32>
    %92 = tpu.matmul %90, %91, %cst_37 {dimension_numbers = #tpu.dot_dimension_numbers<[1], [0], [0], [1], [0, 0, 1, 1], [], []>} : vector<64x8xbf16>, vector<8x32xbf16>, vector<64x32xf32> -> vector<64x32xf32>
    %93 = arith.addf %68, %92 : vector<64x32xf32>
    %94 = vector.extract_strided_slice %34 {offsets = [0, 16], sizes = [64, 8], strides = [1, 1]} : vector<64x32xf32> to vector<64x8xf32>
    %95 = arith.truncf %94 : vector<64x8xf32> to vector<64x8xbf16>
    %96 = vector.extract_strided_slice %40 {offsets = [0, 16], sizes = [64, 8], strides = [1, 1]} : vector<64x32xf32> to vector<64x8xf32>
    %97 = arith.truncf %96 : vector<64x8xf32> to vector<64x8xbf16>
    %98 = vector.extract_strided_slice %41 {offsets = [0, 16], sizes = [64, 8], strides = [1, 1]} : vector<64x32xf32> to vector<64x8xf32>
    %99 = arith.truncf %98 : vector<64x8xf32> to vector<64x8xbf16>
    %cst_38 = arith.constant dense<0.000000e+00> : vector<64x64xf32>
    %100 = tpu.matmul %95, %97, %cst_38 {dimension_numbers = #tpu.dot_dimension_numbers<[1], [1], [0], [0], [0, 0, 1, 0], [], []>} : vector<64x8xbf16>, vector<64x8xbf16>, vector<64x64xf32> -> vector<64x64xf32>
    %cst_39 = arith.constant 0.353553385 : f32
    %101 = vector.broadcast %cst_39 : f32 to vector<64x64xf32>
    %102 = arith.mulf %100, %101 : vector<64x64xf32>
    %cst_40 = arith.constant dense<0xFF800000> : vector<64xf32>
    %103 = vector.multi_reduction <maximumf>, %102, %cst_40 [1] : vector<64x64xf32> to vector<64xf32>
    %104 = vector.shape_cast %103 : vector<64xf32> to vector<64x1xf32>
    %105 = vector.broadcast %104 : vector<64x1xf32> to vector<64x64xf32>
    %106 = arith.subf %102, %105 : vector<64x64xf32>
    %107 = math.exp %106 : vector<64x64xf32>
    %cst_41 = arith.constant dense<0.000000e+00> : vector<64xf32>
    %108 = vector.multi_reduction <add>, %107, %cst_41 [1] : vector<64x64xf32> to vector<64xf32>
    %109 = vector.shape_cast %108 : vector<64xf32> to vector<64x1xf32>
    %110 = tpu.reciprocal %109 {approx = true} : vector<64x1xf32> -> vector<64x1xf32>
    %111 = vector.broadcast %110 : vector<64x1xf32> to vector<64x64xf32>
    %112 = arith.mulf %107, %111 : vector<64x64xf32>
    %113 = arith.truncf %112 : vector<64x64xf32> to vector<64x64xbf16>
    %cst_42 = arith.constant dense<0.000000e+00> : vector<64x8xf32>
    %114 = tpu.matmul %113, %99, %cst_42 {dimension_numbers = #tpu.dot_dimension_numbers<[1], [0], [0], [1], [0, 0, 1, 1], [], []>} : vector<64x64xbf16>, vector<64x8xbf16>, vector<64x8xf32> -> vector<64x8xf32>
    %115 = arith.truncf %114 : vector<64x8xf32> to vector<64x8xbf16>
    %116 = vector.extract_strided_slice %42 {offsets = [16, 0], sizes = [8, 32], strides = [1, 1]} : vector<32x32xbf16> to vector<8x32xbf16>
    %cst_43 = arith.constant dense<0.000000e+00> : vector<64x32xf32>
    %117 = tpu.matmul %115, %116, %cst_43 {dimension_numbers = #tpu.dot_dimension_numbers<[1], [0], [0], [1], [0, 0, 1, 1], [], []>} : vector<64x8xbf16>, vector<8x32xbf16>, vector<64x32xf32> -> vector<64x32xf32>
    %118 = arith.addf %93, %117 : vector<64x32xf32>
    %119 = vector.extract_strided_slice %34 {offsets = [0, 24], sizes = [64, 8], strides = [1, 1]} : vector<64x32xf32> to vector<64x8xf32>
    %120 = arith.truncf %119 : vector<64x8xf32> to vector<64x8xbf16>
    %121 = vector.extract_strided_slice %40 {offsets = [0, 24], sizes = [64, 8], strides = [1, 1]} : vector<64x32xf32> to vector<64x8xf32>
    %122 = arith.truncf %121 : vector<64x8xf32> to vector<64x8xbf16>
    %123 = vector.extract_strided_slice %41 {offsets = [0, 24], sizes = [64, 8], strides = [1, 1]} : vector<64x32xf32> to vector<64x8xf32>
    %124 = arith.truncf %123 : vector<64x8xf32> to vector<64x8xbf16>
    %cst_44 = arith.constant dense<0.000000e+00> : vector<64x64xf32>
    %125 = tpu.matmul %120, %122, %cst_44 {dimension_numbers = #tpu.dot_dimension_numbers<[1], [1], [0], [0], [0, 0, 1, 0], [], []>} : vector<64x8xbf16>, vector<64x8xbf16>, vector<64x64xf32> -> vector<64x64xf32>
    %cst_45 = arith.constant 0.353553385 : f32
    %126 = vector.broadcast %cst_45 : f32 to vector<64x64xf32>
    %127 = arith.mulf %125, %126 : vector<64x64xf32>
    %cst_46 = arith.constant dense<0xFF800000> : vector<64xf32>
    %128 = vector.multi_reduction <maximumf>, %127, %cst_46 [1] : vector<64x64xf32> to vector<64xf32>
    %129 = vector.shape_cast %128 : vector<64xf32> to vector<64x1xf32>
    %130 = vector.broadcast %129 : vector<64x1xf32> to vector<64x64xf32>
    %131 = arith.subf %127, %130 : vector<64x64xf32>
    %132 = math.exp %131 : vector<64x64xf32>
    %cst_47 = arith.constant dense<0.000000e+00> : vector<64xf32>
    %133 = vector.multi_reduction <add>, %132, %cst_47 [1] : vector<64x64xf32> to vector<64xf32>
    %134 = vector.shape_cast %133 : vector<64xf32> to vector<64x1xf32>
    %135 = tpu.reciprocal %134 {approx = true} : vector<64x1xf32> -> vector<64x1xf32>
    %136 = vector.broadcast %135 : vector<64x1xf32> to vector<64x64xf32>
    %137 = arith.mulf %132, %136 : vector<64x64xf32>
    %138 = arith.truncf %137 : vector<64x64xf32> to vector<64x64xbf16>
    %cst_48 = arith.constant dense<0.000000e+00> : vector<64x8xf32>
    %139 = tpu.matmul %138, %124, %cst_48 {dimension_numbers = #tpu.dot_dimension_numbers<[1], [0], [0], [1], [0, 0, 1, 1], [], []>} : vector<64x64xbf16>, vector<64x8xbf16>, vector<64x8xf32> -> vector<64x8xf32>
    %140 = arith.truncf %139 : vector<64x8xf32> to vector<64x8xbf16>
    %141 = vector.extract_strided_slice %42 {offsets = [24, 0], sizes = [8, 32], strides = [1, 1]} : vector<32x32xbf16> to vector<8x32xbf16>
    %cst_49 = arith.constant dense<0.000000e+00> : vector<64x32xf32>
    %142 = tpu.matmul %140, %141, %cst_49 {dimension_numbers = #tpu.dot_dimension_numbers<[1], [0], [0], [1], [0, 0, 1, 1], [], []>} : vector<64x8xbf16>, vector<8x32xbf16>, vector<64x32xf32> -> vector<64x32xf32>
    %143 = arith.addf %118, %142 : vector<64x32xf32>
    %144 = arith.addf %1, %143 : vector<64x32xf32>
    %c0_50 = arith.constant 0 : index
    %c0_51 = arith.constant 0 : index
    %145 = vector.load %arg10[%c0_50, %c0_51] : memref<1x32xf32, #tpu.memory_space<vmem>>, vector<1x32xf32>
    %146 = vector.broadcast %145 : vector<1x32xf32> to vector<64x32xf32>
    %147 = arith.addf %144, %146 : vector<64x32xf32>
    %c0_52 = arith.constant 0 : index
    %c0_53 = arith.constant 0 : index
    %c0_54 = arith.constant 0 : index
    %148 = vector.load %arg11[%c0_52, %c0_53, %c0_54] : memref<1x64x32xf32, #tpu.memory_space<vmem>>, vector<1x64x32xf32>
    %149 = vector.shape_cast %148 : vector<1x64x32xf32> to vector<64x32xf32>
    %150 = vector.shape_cast %147 : vector<64x32xf32> to vector<1x64x32xf32>
    tpu.vector_store %arg11[%c0_52, %c0_53, %c0_54], %150 {strides = array<i32>} : memref<1x64x32xf32, #tpu.memory_space<vmem>>, vector<1x64x32xf32>,
    return
  }
  func.func @transform_0(%arg0: i32) -> (i32, i32, i32) {
    %c0_i32 = arith.constant 0 : i32
    %c0_i32_0 = arith.constant 0 : i32
    %c0_i32_1 = arith.constant 0 : i32
    return %arg0, %c0_i32, %c0_i32_0 : i32, i32, i32
  }
  func.func @transform_1(%arg0: i32) -> (i32, i32, i32) {
    %c0_i32 = arith.constant 0 : i32
    %c0_i32_0 = arith.constant 0 : i32
    %c0_i32_1 = arith.constant 0 : i32
    return %arg0, %c0_i32, %c0_i32_0 : i32, i32, i32
  }
  func.func @transform_2(%arg0: i32) -> (i32, i32) {
    %c0_i32 = arith.constant 0 : i32
    %c0_i32_0 = arith.constant 0 : i32
    %c0_i32_1 = arith.constant 0 : i32
    return %c0_i32, %c0_i32_0 : i32, i32
  }
  func.func @transform_3(%arg0: i32) -> (i32, i32) {
    %c0_i32 = arith.constant 0 : i32
    %c0_i32_0 = arith.constant 0 : i32
    %c0_i32_1 = arith.constant 0 : i32
    return %c0_i32, %c0_i32_0 : i32, i32
  }
  func.func @transform_4(%arg0: i32) -> (i32, i32) {
    %c0_i32 = arith.constant 0 : i32
    %c0_i32_0 = arith.constant 0 : i32
    %c0_i32_1 = arith.constant 0 : i32
    return %c0_i32, %c0_i32_0 : i32, i32
  }
  func.func @transform_5(%arg0: i32) -> (i32, i32) {
    %c0_i32 = arith.constant 0 : i32
    %c0_i32_0 = arith.constant 0 : i32
    %c0_i32_1 = arith.constant 0 : i32
    return %c0_i32, %c0_i32_0 : i32, i32
  }
  func.func @transform_6(%arg0: i32) -> (i32, i32) {
    %c0_i32 = arith.constant 0 : i32
    %c0_i32_0 = arith.constant 0 : i32
    %c0_i32_1 = arith.constant 0 : i32
    return %c0_i32, %c0_i32_0 : i32, i32
  }
  func.func @transform_7(%arg0: i32) -> (i32, i32) {
    %c0_i32 = arith.constant 0 : i32
    %c0_i32_0 = arith.constant 0 : i32
    %c0_i32_1 = arith.constant 0 : i32
    return %c0_i32, %c0_i32_0 : i32, i32
  }
  func.func @transform_8(%arg0: i32) -> (i32, i32) {
    %c0_i32 = arith.constant 0 : i32
    %c0_i32_0 = arith.constant 0 : i32
    %c0_i32_1 = arith.constant 0 : i32
    return %c0_i32, %c0_i32_0 : i32, i32
  }
  func.func @transform_9(%arg0: i32) -> (i32, i32) {
    %c0_i32 = arith.constant 0 : i32
    %c0_i32_0 = arith.constant 0 : i32
    %c0_i32_1 = arith.constant 0 : i32
    return %c0_i32, %c0_i32_0 : i32, i32
  }
  func.func @transform_10(%arg0: i32) -> (i32, i32, i32) {
    %c0_i32 = arith.constant 0 : i32
    %c0_i32_0 = arith.constant 0 : i32
    %c0_i32_1 = arith.constant 0 : i32
    return %arg0, %c0_i32, %c0_i32_0 : i32, i32, i32
  }
}

module attributes {stable_mosaic.version = 11 : i64} {
  func.func @_ffn_kernel(%arg0: i32, %arg1: memref<128x32xf32, #tpu.memory_space<vmem>>, %arg2: memref<1x32xf32, #tpu.memory_space<vmem>>, %arg3: memref<1x32xf32, #tpu.memory_space<vmem>>, %arg4: memref<32x64xbf16, #tpu.memory_space<vmem>>, %arg5: memref<1x64xf32, #tpu.memory_space<vmem>>, %arg6: memref<64x32xbf16, #tpu.memory_space<vmem>>, %arg7: memref<1x32xf32, #tpu.memory_space<vmem>>, %arg8: memref<128x32xf32, #tpu.memory_space<vmem>>) attributes {dimension_semantics = [#tpu.dimension_semantics<parallel>], iteration_bounds = array<i64: 2>, scalar_prefetch = 0 : i64, scratch_operands = 0 : i64, tpu.core_type = #tpu.core_type<tc>, window_params = [{transform_indices = @transform_0, window_bounds = array<i64: 128, 32>}, {pipeline_mode = #tpu.pipeline_mode<synchronous>, transform_indices = @transform_1, window_bounds = array<i64: 1, 32>}, {pipeline_mode = #tpu.pipeline_mode<synchronous>, transform_indices = @transform_2, window_bounds = array<i64: 1, 32>}, {pipeline_mode = #tpu.pipeline_mode<synchronous>, transform_indices = @transform_3, window_bounds = array<i64: 32, 64>}, {pipeline_mode = #tpu.pipeline_mode<synchronous>, transform_indices = @transform_4, window_bounds = array<i64: 1, 64>}, {pipeline_mode = #tpu.pipeline_mode<synchronous>, transform_indices = @transform_5, window_bounds = array<i64: 64, 32>}, {pipeline_mode = #tpu.pipeline_mode<synchronous>, transform_indices = @transform_6, window_bounds = array<i64: 1, 32>}, {transform_indices = @transform_7, window_bounds = array<i64: 128, 32>}]} {
    %c0 = arith.constant 0 : index
    %c0_0 = arith.constant 0 : index
    %0 = vector.load %arg1[%c0, %c0_0] : memref<128x32xf32, #tpu.memory_space<vmem>>, vector<128x32xf32>
    %c0_1 = arith.constant 0 : index
    %c0_2 = arith.constant 0 : index
    %1 = vector.load %arg2[%c0_1, %c0_2] : memref<1x32xf32, #tpu.memory_space<vmem>>, vector<1x32xf32>
    %c0_3 = arith.constant 0 : index
    %c0_4 = arith.constant 0 : index
    %2 = vector.load %arg3[%c0_3, %c0_4] : memref<1x32xf32, #tpu.memory_space<vmem>>, vector<1x32xf32>
    %cst = arith.constant dense<0.000000e+00> : vector<128xf32>
    %3 = vector.multi_reduction <add>, %0, %cst [1] : vector<128x32xf32> to vector<128xf32>
    %4 = vector.shape_cast %3 : vector<128xf32> to vector<128x1xf32>
    %cst_5 = arith.constant 3.200000e+01 : f32
    %5 = vector.broadcast %cst_5 : f32 to vector<128x1xf32>
    %6 = arith.divf %4, %5 : vector<128x1xf32>
    %7 = vector.broadcast %6 : vector<128x1xf32> to vector<128x32xf32>
    %8 = arith.subf %0, %7 : vector<128x32xf32>
    %9 = arith.mulf %8, %8 : vector<128x32xf32>
    %cst_6 = arith.constant dense<0.000000e+00> : vector<128xf32>
    %10 = vector.multi_reduction <add>, %9, %cst_6 [1] : vector<128x32xf32> to vector<128xf32>
    %11 = vector.shape_cast %10 : vector<128xf32> to vector<128x1xf32>
    %cst_7 = arith.constant 3.100000e+01 : f32
    %12 = vector.broadcast %cst_7 : f32 to vector<128x1xf32>
    %13 = arith.divf %11, %12 : vector<128x1xf32>
    %14 = vector.broadcast %6 : vector<128x1xf32> to vector<128x32xf32>
    %15 = arith.subf %0, %14 : vector<128x32xf32>
    %16 = vector.broadcast %1 : vector<1x32xf32> to vector<128x32xf32>
    %17 = arith.mulf %16, %15 : vector<128x32xf32>
    %18 = math.sqrt %13 : vector<128x1xf32>
    %cst_8 = arith.constant 9.99999997E-7 : f32
    %19 = vector.broadcast %cst_8 : f32 to vector<128x1xf32>
    %20 = arith.addf %18, %19 : vector<128x1xf32>
    %21 = vector.broadcast %20 : vector<128x1xf32> to vector<128x32xf32>
    %22 = arith.divf %17, %21 : vector<128x32xf32>
    %23 = vector.broadcast %2 : vector<1x32xf32> to vector<128x32xf32>
    %24 = arith.addf %22, %23 : vector<128x32xf32>
    %25 = arith.truncf %24 : vector<128x32xf32> to vector<128x32xbf16>
    %c0_9 = arith.constant 0 : index
    %c0_10 = arith.constant 0 : index
    %26 = vector.load %arg4[%c0_9, %c0_10] : memref<32x64xbf16, #tpu.memory_space<vmem>>, vector<32x64xbf16>
    %cst_11 = arith.constant dense<0.000000e+00> : vector<128x64xf32>
    %27 = tpu.matmul %25, %26, %cst_11 {dimension_numbers = #tpu.dot_dimension_numbers<[1], [0], [0], [1], [0, 0, 1, 1], [], []>} : vector<128x32xbf16>, vector<32x64xbf16>, vector<128x64xf32> -> vector<128x64xf32>
    %c0_12 = arith.constant 0 : index
    %c0_13 = arith.constant 0 : index
    %28 = vector.load %arg5[%c0_12, %c0_13] : memref<1x64xf32, #tpu.memory_space<vmem>>, vector<1x64xf32>
    %29 = vector.broadcast %28 : vector<1x64xf32> to vector<128x64xf32>
    %30 = arith.addf %27, %29 : vector<128x64xf32>
    %cst_14 = arith.constant 0.000000e+00 : f32
    %31 = vector.broadcast %cst_14 : f32 to vector<128x64xf32>
    %32 = arith.maximumf %30, %31 : vector<128x64xf32>
    %33 = arith.truncf %32 : vector<128x64xf32> to vector<128x64xbf16>
    %c0_15 = arith.constant 0 : index
    %c0_16 = arith.constant 0 : index
    %34 = vector.load %arg6[%c0_15, %c0_16] : memref<64x32xbf16, #tpu.memory_space<vmem>>, vector<64x32xbf16>
    %cst_17 = arith.constant dense<0.000000e+00> : vector<128x32xf32>
    %35 = tpu.matmul %33, %34, %cst_17 {dimension_numbers = #tpu.dot_dimension_numbers<[1], [0], [0], [1], [0, 0, 1, 1], [], []>} : vector<128x64xbf16>, vector<64x32xbf16>, vector<128x32xf32> -> vector<128x32xf32>
    %c0_18 = arith.constant 0 : index
    %c0_19 = arith.constant 0 : index
    %36 = vector.load %arg7[%c0_18, %c0_19] : memref<1x32xf32, #tpu.memory_space<vmem>>, vector<1x32xf32>
    %37 = vector.broadcast %36 : vector<1x32xf32> to vector<128x32xf32>
    %38 = arith.addf %35, %37 : vector<128x32xf32>
    %39 = arith.addf %0, %38 : vector<128x32xf32>
    %c0_20 = arith.constant 0 : index
    %c0_21 = arith.constant 0 : index
    %40 = vector.load %arg8[%c0_20, %c0_21] : memref<128x32xf32, #tpu.memory_space<vmem>>, vector<128x32xf32>
    tpu.vector_store %arg8[%c0_20, %c0_21], %39 {strides = array<i32>} : memref<128x32xf32, #tpu.memory_space<vmem>>, vector<128x32xf32>,
    return
  }
  func.func @transform_0(%arg0: i32) -> (i32, i32) {
    %c0_i32 = arith.constant 0 : i32
    %c0_i32_0 = arith.constant 0 : i32
    return %arg0, %c0_i32 : i32, i32
  }
  func.func @transform_1(%arg0: i32) -> (i32, i32) {
    %c0_i32 = arith.constant 0 : i32
    %c0_i32_0 = arith.constant 0 : i32
    %c0_i32_1 = arith.constant 0 : i32
    return %c0_i32, %c0_i32_0 : i32, i32
  }
  func.func @transform_2(%arg0: i32) -> (i32, i32) {
    %c0_i32 = arith.constant 0 : i32
    %c0_i32_0 = arith.constant 0 : i32
    %c0_i32_1 = arith.constant 0 : i32
    return %c0_i32, %c0_i32_0 : i32, i32
  }
  func.func @transform_3(%arg0: i32) -> (i32, i32) {
    %c0_i32 = arith.constant 0 : i32
    %c0_i32_0 = arith.constant 0 : i32
    %c0_i32_1 = arith.constant 0 : i32
    return %c0_i32, %c0_i32_0 : i32, i32
  }
  func.func @transform_4(%arg0: i32) -> (i32, i32) {
    %c0_i32 = arith.constant 0 : i32
    %c0_i32_0 = arith.constant 0 : i32
    %c0_i32_1 = arith.constant 0 : i32
    return %c0_i32, %c0_i32_0 : i32, i32
  }
  func.func @transform_5(%arg0: i32) -> (i32, i32) {
    %c0_i32 = arith.constant 0 : i32
    %c0_i32_0 = arith.constant 0 : i32
    %c0_i32_1 = arith.constant 0 : i32
    return %c0_i32, %c0_i32_0 : i32, i32
  }
  func.func @transform_6(%arg0: i32) -> (i32, i32) {
    %c0_i32 = arith.constant 0 : i32
    %c0_i32_0 = arith.constant 0 : i32
    %c0_i32_1 = arith.constant 0 : i32
    return %c0_i32, %c0_i32_0 : i32, i32
  }
  func.func @transform_7(%arg0: i32) -> (i32, i32) {
    %c0_i32 = arith.constant 0 : i32
    %c0_i32_0 = arith.constant 0 : i32
    return %arg0, %c0_i32 : i32, i32
  }
}

</mosaic_0001>

<bundles_post_ra>
// kernel: decoder_block_forward.5
= control target key start
LH: loop header
LB: loop body
LE: loop exit
PB: predicated region body
PF: predicated region fallthrough
CT: control target
= control target key end

     0   :  { %s1482_s24 = smov 0   ;;  %s2286_s0 = inlined_call_operand.vmem [shape: f32[256,32], index: 0, kind: input, shape index: {}, may-alias: {0,7}]   ;;  %s2287_s1 = inlined_call_operand.vmem [shape: f32[1,32], index: 1, kind: input, shape index: {}]   ;;  %s2288_s2 = inlined_call_operand.vmem [shape: f32[1,32], index: 2, kind: input, shape index: {}]   ;;  %s2289_s3 = inlined_call_operand.vmem [shape: bf16[32,64], index: 3, kind: input, shape index: {}]   ;;  %s2290_s4 = inlined_call_operand.vmem [shape: f32[1,64], index: 4, kind: input, shape index: {}]   ;;  %s2291_s5 = inlined_call_operand.vmem [shape: bf16[64,32], index: 5, kind: input, shape index: {}]   ;;  %s2292_s6 = inlined_call_operand.vmem [shape: f32[1,32], index: 6, kind: input, shape index: {}]   ;;  %s2293_s7 = inlined_call_operand.vmem [shape: f32[256,32], index: 7, kind: output, shape index: {}, may-alias: {0,7}]  }
   0x1 LB: > { %s1285_s25 = sadd.s32 4294967295, %s1438_s24   ;;  %p1289_p0 = scmp.ge.s32.totalorder %s1438_s24, 1  ;;  %s1438_s24 = sphi %s1482_s24, %s17_s24  }
   0x2   : > { %p238_p1 = scmp.lt.s32.totalorder %s1438_s24, 3 }
   0x4   : > { %p239_p2 = pnand %p1289_p0, %p238_p1 }
   0x5   : > { %s1290_s26 = sshll.u32 (!%p239_p2), %s1285_s25, 4 }
   0x6   : > { %242 = sbr.rel (%p239_p2) target bundleno = 787 (0x313), region = 48  ;;  %p271_p3 = scmp.lt.s32.totalorder (!%p239_p2), %s1290_s26, 31 }
   0xb   : > { %s2308_s26 = smov (!%p271_p3, %s1290_s26), 31  ;;  %vm301_vm0 = vcmask 261120   ;;  %v1440_v14 = vmov 32.0  }
   0xc   : > { %s1291_s27 = sshll.u32 %s2308_s26, 3  ;;  %1362 = vrcp.f32 %v1440_v14 }
   0xd   : > { %s1498_s30 = scalar_lea.vmem %s2286_s0, %s1291_s27  ;;  %s2206_s13 = scalar_lea.vmem %s2293_s7, %s1291_s27 }
   0xe   : > { %v1501_v0 = vld [vmem:[%s1498_s30 + $0x10] sm:$0xff]  ;;  %v283_v1 = vld [vmem:[%s1498_s30] sm:$0xff]  ;;  %v1513_v6 = vld [vmem:[%s1498_s30 + $0x18] sm:$0xff] }
   0xf   : > { %v308_v2 = vsel %vm301_vm0, %v1501_v0, 0.0  ;;  %v302_v3 = vsel %vm301_vm0, %v283_v1, 0.0  ;;  %v1508_v4 = vld [vmem:[%s1498_s30 + $0x20] sm:$0xff]  ;;  %v1516_v7 = vld [vmem:[%s1498_s30 + $0x8] sm:$0xff]  ;;  %v311_v9 = vsel %vm301_vm0, %v1513_v6, 0.0  ;;  %v1528_v12 = vld [vmem:[%s1498_s30 + $0x30] sm:$0xff] }
  0x10   : > { %309 = vadd.xlane.f32.xlu1 %v308_v2  ;;  %303 = vadd.xlane.f32.xlu0 %v302_v3  ;;  %v314_v5 = vsel %vm301_vm0, %v1508_v4, 0.0  ;;  %v1519_v8 = vld [vmem:[%s1498_s30 + $0x28] sm:$0xff]  ;;  %v305_v10 = vsel %vm301_vm0, %v1516_v7, 0.0  ;;  %v320_v13 = vsel %vm301_vm0, %v1528_v12, 0.0  ;;  %v1544_v33 = vld [vmem:[%s1498_s30 + $0x38] sm:$0xff]  ;;  %v1565_v44 = vld [vmem:[%s1498_s30 + $0x50] sm:$0xff] }
  0x11   : > { %315 = vadd.xlane.f32.xlu2 %v314_v5  ;;  %v317_v11 = vsel %vm301_vm0, %v1519_v8, 0.0  ;;  %v323_v38 = vsel %vm301_vm0, %v1544_v33, 0.0  ;;  %v1568_v45 = vld [vmem:[%s1498_s30 + $0x40] sm:$0xff]  ;;  %v332_v48 = vsel %vm301_vm0, %v1565_v44, 0.0  ;;  %v1585_v55 = vld [vmem:[%s1498_s30 + $0x58] sm:$0xff]  ;;  %v1588_v56 = vld [vmem:[%s1498_s30 + $0x48] sm:$0xff] }
  0x12   : > { %v1363_v15 = vpop.eup %1362  ;;  %v326_v49 = vsel %vm301_vm0, %v1568_v45, 0.0  ;;  %v335_v59 = vsel %vm301_vm0, %v1585_v55, 0.0  ;;  %v329_v61 = vsel %vm301_vm0, %v1588_v56, 0.0  ;;  %v1604_v63 = vld [vmem:[%s1498_s30 + $0x60] sm:$0xff]  ;;  %v1623_v14 = vld [vmem:[%s1498_s30 + $0x70] sm:$0xff] }
  0x13   : > { %v351_v16 = vmul.f32 32.0, %v1363_v15  ;;  %vm355_vm1 = vweird.f32 %v1363_v15  ;;  %v338_v3 = vsel %vm301_vm0, %v1604_v63, 0.0 }
  0x15   : > { %v352_v17 = vsub.f32 1.0, %v351_v16  ;;  %v1441_v16 = vmov 31.0  }
  0x16   : > { %1364 = vrcp.f32 %v1441_v16 }
  0x17   : > { %v353_v18 = vmul.f32 %v1363_v15, %v352_v17 }
  0x18   : > { %312 = vadd.xlane.f32.xlu1 %v311_v9  ;;  %306 = vadd.xlane.f32.xlu0 %v305_v10  ;;  %v1613_v9 = vld [vmem:[%s1498_s30 + $0x78] sm:$0xff]  ;;  %v1616_v10 = vld [vmem:[%s1498_s30 + $0x68] sm:$0xff] }
  0x19   : > { %318 = vadd.xlane.f32.xlu2 %v317_v11  ;;  %v354_v19 = vadd.f32 %v1363_v15, %v353_v18  ;;  %v347_v11 = vsel %vm301_vm0, %v1613_v9, 0.0 }
  0x1b   : > { %v1532_v20 = vsel %vm355_vm1, %v1363_v15, %v354_v19  ;;  %v344_v15 = vsel %vm301_vm0, %v1623_v14, 0.0 }
  0x1c   : > { %v1365_v17 = vpop.eup %1364 }
  0x1d   : > { %v454_v18 = vmul.f32 31.0, %v1365_v17  ;;  %vm458_vm2 = vweird.f32 %v1365_v17 }
  0x1f   : > { %v455_v19 = vsub.f32 1.0, %v454_v18  ;;  %v1336_v18 = vld [vmem:[%s2289_s3] sm:$0xff] }
  0x21   : > { %321 = vadd.xlane.f32.xlu2 %v320_v13  ;;  %v341_v13 = vsel %vm301_vm0, %v1616_v10, 0.0 }
  0x83   : > { %v310_v21 = vpop.xlane.xlu1 %309  ;;  %v304_v22 = vpop.xlane.xlu0 %303 }
  0x84   : > { %v357_v23 = vmul.f32 %v1532_v20, %v304_v22  ;;  %v316_v24 = vpop.xlane.xlu2 %315  ;;  %v359_v32 = vmul.f32 %v1532_v20, %v310_v21  ;;  %v456_v21 = vmul.f32 %v1365_v17, %v455_v19 }
  0x85   : > { %v361_v54 = vmul.f32 %v1532_v20, %v316_v24 }
  0x86   : > { %v1535_v25 = vsub.f32 %v283_v1, %v357_v23  ;;  %v1559_v40 = vsub.f32 %v1501_v0, %v359_v32  ;;  %v457_v22 = vadd.f32 %v1365_v17, %v456_v21 }
  0x87   : > { %v1597_v60 = vsub.f32 %v1508_v4, %v361_v54 }
  0x88   : > { %v389_v26 = vmul.f32 %v1535_v25, %v1535_v25  ;;  %v391_v46 = vmul.f32 %v1559_v40, %v1559_v40  ;;  %v1627_v23 = vsel %vm458_vm2, %v1365_v17, %v457_v22 }
  0x89   : > { %v393_v1 = vmul.f32 %v1597_v60, %v1597_v60 }
  0x8a   : > { %v405_v27 = vsel %vm301_vm0, %v389_v26, 0.0  ;;  %v411_v50 = vsel %vm301_vm0, %v391_v46, 0.0 }
  0x8b   : > { %v313_v28 = vpop.xlane.xlu1 %312  ;;  %406 = vadd.xlane.f32.xlu0 %v405_v27  ;;  %v307_v29 = vpop.xlane.xlu0 %306  ;;  %v417_v5 = vsel %vm301_vm0, %v393_v1, 0.0 }
  0x8c   : > { %v360_v30 = vmul.f32 %v1532_v20, %v313_v28  ;;  %v358_v31 = vmul.f32 %v1532_v20, %v307_v29  ;;  %v319_v36 = vpop.xlane.xlu2 %318 }
  0x8d   : > { %v362_v43 = vmul.f32 %v1532_v20, %v319_v36 }
  0x8e   : > { %v1547_v34 = vsub.f32 %v1513_v6, %v360_v30  ;;  %v1550_v35 = vsub.f32 %v1516_v7, %v358_v31 }
  0x8f   : > { %v1573_v47 = vsub.f32 %v1519_v8, %v362_v43 }
  0x90   : > { %v392_v37 = vmul.f32 %v1547_v34, %v1547_v34  ;;  %v390_v39 = vmul.f32 %v1550_v35, %v1550_v35 }
  0x91   : > { %v394_v53 = vmul.f32 %v1573_v47, %v1573_v47 }
  0x92   : > { %v414_v41 = vsel %vm301_vm0, %v392_v37, 0.0  ;;  %v408_v42 = vsel %vm301_vm0, %v390_v39, 0.0 }
  0x93   : > { %415 = vadd.xlane.f32.xlu2 %v414_v41  ;;  %324 = vadd.xlane.f32.xlu0 %v323_v38  ;;  %v420_v58 = vsel %vm301_vm0, %v394_v53, 0.0 }
  0x94   : > { %409 = vadd.xlane.f32.xlu1 %v408_v42  ;;  %v322_v51 = vpop.xlane.xlu2 %321 }
  0x95   : > { %v363_v52 = vmul.f32 %v1532_v20, %v322_v51 }
  0x97   : > { %v1591_v57 = vsub.f32 %v1528_v12, %v363_v52 }
  0x99   : > { %v395_v62 = vmul.f32 %v1591_v57, %v1591_v57 }
  0x9b   : > { %333 = vadd.xlane.f32.xlu2 %v332_v48  ;;  %327 = vadd.xlane.f32.xlu0 %v326_v49  ;;  %v423_v2 = vsel %vm301_vm0, %v395_v62, 0.0  ;;  %v1337_v62 = vld [vmem:[%s2289_s3 + $0x8] sm:$0xff] }
  0x9c   : > { %412 = vadd.xlane.f32.xlu1 %v411_v50  ;;  %1020 = vmatpush.bf16.msra.mxu0 %v1337_v62 }
  0x9d   : > { %1342 = vmatpush.bf16.msra.mxu3 %v1337_v62  ;;  %v1699_v62 = vld [vmem:[%s2287_s1] ss:$0 sm:$0xff] }
  0xa0   : > { %1021 = vmatpush.bf16.msra.mxu0 %v1336_v18 }
  0xa1   : > { %1343 = vmatpush.bf16.msra.mxu3 %v1336_v18 }
  0xa3   : > { %421 = vadd.xlane.f32.xlu2 %v420_v58  ;;  %336 = vadd.xlane.f32.xlu0 %v335_v59 }
  0xa4   : > { %330 = vadd.xlane.f32.xlu1 %v329_v61 }
  0xab   : > { %424 = vadd.xlane.f32.xlu2 %v423_v2  ;;  %339 = vadd.xlane.f32.xlu0 %v338_v3 }
  0xac   : > { %418 = vadd.xlane.f32.xlu1 %v417_v5 }
  0xb3   : > { %348 = vadd.xlane.f32.xlu2 %v347_v11 }
  0xb4   : > { %342 = vadd.xlane.f32.xlu1 %v341_v13 }
  0xbc   : > { %345 = vadd.xlane.f32.xlu1 %v344_v15 }
  0xfe   : > { %v407_v24 = vpop.xlane.xlu0 %406 }
  0xff   : > { %v460_v26 = vmul.f32 %v1627_v23, %v407_v24 }
 0x101   : > { %1366 = vrsqrt.f32 %v460_v26  ;;  %vm502_vm3 = vcmp.eq.f32.partialorder %v460_v26, inf  ;;  %v505_v13 = vand.u32 2147483648, %v460_v26  ;;  %vm504_vm4 = vcmp.eq.f32.partialorder %v460_v26, 0.0 }
 0x106   : > { %v416_v27 = vpop.xlane.xlu2 %415  ;;  %v325_v28 = vpop.xlane.xlu0 %324 }
 0x107   : > { %v1367_v29 = vpop.eup %1366  ;;  %v1631_v30 = vmul.f32 %v1627_v23, %v416_v27  ;;  %v410_v31 = vpop.xlane.xlu1 %409  ;;  %v364_v32 = vmul.f32 %v1532_v20, %v325_v28 }
 0x108   : > { %v496_v36 = vmul.f32 %v1367_v29, %v460_v26  ;;  %v1635_v37 = vmul.f32 %v1627_v23, %v410_v31 }
 0x109   : > { %1368 = vrsqrt.f32 %v1631_v30  ;;  %v1640_v39 = vsub.f32 %v1544_v33, %v364_v32  ;;  %vm538_vm7 = vcmp.eq.f32.partialorder %v1631_v30, inf  ;;  %vm540_vm8 = vcmp.eq.f32.partialorder %v1631_v30, 0.0 }
 0x10a   : > { %v497_v38 = vmul.f32 %v1367_v29, %v496_v36  ;;  %1370 = vrsqrt.f32 %v1635_v37  ;;  %vm514_vm5 = vcmp.eq.f32.partialorder %v1635_v37, inf  ;;  %vm516_vm6 = vcmp.eq.f32.partialorder %v1635_v37, 0.0 }
 0x10b   : > { %v396_v42 = vmul.f32 %v1640_v39, %v1640_v39 }
 0x10c   : > { %v498_v41 = vmul.f32 0.5, %v497_v38 }
 0x10d   : > { %v426_v52 = vsel %vm301_vm0, %v396_v42, 0.0 }
 0x10e   : > { %v499_v43 = vsub.f32 1.5, %v498_v41  ;;  %v334_v46 = vpop.xlane.xlu2 %333  ;;  %v328_v48 = vpop.xlane.xlu0 %327  ;;  %427 = vadd.xlane.f32.xlu0 %v426_v52 }
 0x10f   : > { %v1644_v49 = vpop.eup %1368  ;;  %v367_v50 = vmul.f32 %v1532_v20, %v334_v46  ;;  %v413_v51 = vpop.xlane.xlu1 %412  ;;  %v365_v53 = vmul.f32 %v1532_v20, %v328_v48 }
 0x110   : > { %v1371_v54 = vpop.eup %1370  ;;  %v500_v58 = vmul.f32 %v1367_v29, %v499_v43  ;;  %v532_v59 = vmul.f32 %v1644_v49, %v1631_v30  ;;  %v1652_v61 = vmul.f32 %v1627_v23, %v413_v51 }
 0x111   : > { %v508_v1 = vmul.f32 %v1371_v54, %v1635_v37  ;;  %v1659_v2 = vsub.f32 %v1565_v44, %v367_v50  ;;  %v1662_v3 = vsub.f32 %v1568_v45, %v365_v53 }
 0x112   : > { %v501_v5 = vmul.f32 %v500_v58, %v460_v26  ;;  %v533_v11 = vmul.f32 %v1644_v49, %v532_v59  ;;  %1372 = vrsqrt.f32 %v1652_v61  ;;  %v517_v59 = vand.u32 2147483648, %v1635_v37 }
 0x113   : > { %v509_v15 = vmul.f32 %v1371_v54, %v508_v1  ;;  %v399_v17 = vmul.f32 %v1659_v2, %v1659_v2  ;;  %v397_v21 = vmul.f32 %v1662_v3, %v1662_v3  ;;  %vm526_vm9 = vcmp.eq.f32.partialorder %v1652_v61, inf }
 0x114   : > { %v503_v16 = vsel %vm502_vm3, %v460_v26, %v501_v5  ;;  %v534_v24 = vmul.f32 0.5, %v533_v11  ;;  %vm528_vm10 = vcmp.eq.f32.partialorder %v1652_v61, 0.0 }
 0x115   : > { %v510_v19 = vmul.f32 0.5, %v509_v15  ;;  %v506_v22 = vsel %vm504_vm4, %v505_v13, %v503_v16  ;;  %v435_v27 = vsel %vm301_vm0, %v399_v17, 0.0  ;;  %v429_v38 = vsel %vm301_vm0, %v397_v21, 0.0 }
 0x116   : > { %v422_v28 = vpop.xlane.xlu2 %421  ;;  %v337_v29 = vpop.xlane.xlu0 %336  ;;  %v1674_v31 = vadd.f32 1e-06, %v506_v22  ;;  %436 = vadd.xlane.f32.xlu2 %v435_v27  ;;  %430 = vadd.xlane.f32.xlu0 %v429_v38  ;;  %v535_v50 = vsub.f32 1.5, %v534_v24  ;;  %v1724_v38 = vmul.f32 %v1699_v62, %v1535_v25 }
 0x117   : > { %v511_v26 = vsub.f32 1.5, %v510_v19  ;;  %v1677_v32 = vmul.f32 %v1627_v23, %v422_v28  ;;  %v331_v36 = vpop.xlane.xlu1 %330  ;;  %v368_v41 = vmul.f32 %v1532_v20, %v337_v29 }
 0x118   : > { %v1373_v42 = vpop.eup %1372  ;;  %v366_v43 = vmul.f32 %v1532_v20, %v331_v36  ;;  %1374 = vrcp.f32 %v1674_v31  ;;  %v536_v15 = vmul.f32 %v1644_v49, %v535_v50  ;;  %v541_v50 = vand.u32 2147483648, %v1631_v30 }
 0x119   : > { %v512_v46 = vmul.f32 %v1371_v54, %v511_v26  ;;  %v520_v48 = vmul.f32 %v1373_v42, %v1652_v61  ;;  %1376 = vrsqrt.f32 %v1677_v32  ;;  %v1690_v58 = vsub.f32 %v1585_v55, %v368_v41 }
 0x11a   : > { %v1686_v51 = vsub.f32 %v1588_v56, %v366_v43  ;;  %v1729_v43 = vmul.f32 %v1699_v62, %v1550_v35  ;;  %vm708_vm11 = vweird.f32 %v1674_v31  ;;  %vm562_vm12 = vcmp.eq.f32.partialorder %v1677_v32, inf }
 0x11b   : > { %v513_v52 = vmul.f32 %v512_v46, %v1635_v37  ;;  %v521_v53 = vmul.f32 %v1373_v42, %v520_v48  ;;  %v400_v11 = vmul.f32 %v1690_v58, %v1690_v58  ;;  %v537_v48 = vmul.f32 %v536_v15, %v1631_v30 }
 0x11c   : > { %v398_v54 = vmul.f32 %v1686_v51, %v1686_v51  ;;  %vm564_vm14 = vcmp.eq.f32.partialorder %v1677_v32, 0.0 }
 0x11d   : > { %v515_v1 = vsel %vm514_vm5, %v1635_v37, %v513_v52  ;;  %v522_v5 = vmul.f32 0.5, %v521_v53  ;;  %v438_v27 = vsel %vm301_vm0, %v400_v11, 0.0 }
 0x11e   : > { %v1705_v13 = vpop.eup %1374  ;;  %v425_v16 = vpop.xlane.xlu2 %424  ;;  %v432_v17 = vsel %vm301_vm0, %v398_v54, 0.0  ;;  %v518_v19 = vsel %vm516_vm6, %v517_v59, %v515_v1  ;;  %439 = vadd.xlane.f32.xlu0 %v438_v27  ;;  %v712_v59 = vand.u32 2147483647, %v1674_v31  ;;  %v529_v54 = vand.u32 2147483648, %v1652_v61 }
 0x11f   : > { %v340_v18 = vpop.xlane.xlu0 %339  ;;  %v1377_v21 = vpop.eup %1376  ;;  %v523_v22 = vsub.f32 1.5, %v522_v5  ;;  %v1710_v24 = vmul.f32 %v1627_v23, %v425_v16  ;;  %433 = vadd.xlane.f32.xlu1 %v432_v17  ;;  %v1718_v26 = vadd.f32 1e-06, %v518_v19  ;;  %v704_v36 = vmul.f32 %v1705_v13, %v1674_v31 }
 0x120   : > { %v419_v37 = vpop.xlane.xlu1 %418  ;;  %v369_v28 = vmul.f32 %v1532_v20, %v340_v18  ;;  %v556_v29 = vmul.f32 %v1377_v21, %v1677_v32  ;;  %v539_v27 = vsel %vm538_vm7, %v1631_v30, %v537_v48  ;;  %vm1766_vm13 = vcmp.eq.f32.partialorder %v712_v59, 8.507059e+37 }
 0x121   : > { %v1716_v49 = vmul.f32 %v1627_v23, %v419_v37  ;;  %v524_v41 = vmul.f32 %v1373_v42, %v523_v22  ;;  %1378 = vrsqrt.f32 %v1710_v24  ;;  %v705_v53 = vsub.f32 1.0, %v704_v36 }
 0x122   : > { %v557_v46 = vmul.f32 %v1377_v21, %v556_v29  ;;  %v1737_v25 = vsub.f32 %v1604_v63, %v369_v28  ;;  %v714_v22 = vand.u32 2147483648, %v1674_v31  ;;  %vm709_vm15 = vweird.f32 %v1705_v13 }
 0x123   : > { %1380 = vrsqrt.f32 %v1716_v49  ;;  %v525_v42 = vmul.f32 %v524_v41, %v1652_v61  ;;  %v706_v11 = vmul.f32 %v1705_v13, %v705_v53  ;;  %vm574_vm1 = vcmp.eq.f32.partialorder %v1710_v24, inf  ;;  %vm1790_vm3 = vmor %vm708_vm11, %vm709_vm15 }
 0x124   : > { %v558_v52 = vmul.f32 0.5, %v557_v46  ;;  %1382 = vrcp.f32 %v1718_v26  ;;  %v401_v35 = vmul.f32 %v1737_v25, %v1737_v25  ;;  %vm550_vm2 = vcmp.eq.f32.partialorder %v1716_v49, inf }
 0x125   : > { %v527_v28 = vsel %vm526_vm9, %v1652_v61, %v525_v42  ;;  %v727_v31 = vand.u32 2147483647, %v1718_v26  ;;  %vm552_vm5 = vcmp.eq.f32.partialorder %v1716_v49, 0.0  ;;  %vm723_vm6 = vweird.f32 %v1718_v26 }
 0x126   : > { %v559_v1 = vsub.f32 1.5, %v558_v52  ;;  %v349_v5 = vpop.xlane.xlu2 %348  ;;  %v441_v19 = vsel %vm301_vm0, %v401_v35, 0.0  ;;  %v530_v59 = vsel %vm528_vm10, %v529_v54, %v527_v28  ;;  %v553_v53 = vand.u32 2147483648, %v1716_v49 }
 0x127   : > { %v1379_v15 = vpop.eup %1378  ;;  %v372_v17 = vmul.f32 %v1532_v20, %v349_v5  ;;  %442 = vadd.xlane.f32.xlu1 %v441_v19  ;;  %v707_v5 = vadd.f32 %v1705_v13, %v706_v11  ;;  %v542_v11 = vsel %vm540_vm8, %v541_v50, %v539_v27  ;;  %v1799_v50 = vadd.f32 1e-06, %v530_v59 }
 0x128   : > { %v343_v18 = vpop.xlane.xlu1 %342  ;;  %v568_v29 = vmul.f32 %v1379_v15, %v1710_v24  ;;  %v560_v41 = vmul.f32 %v1377_v21, %v559_v1  ;;  %vm728_vm8 = vcmp.eq.f32.partialorder %v727_v31, 8.507059e+37  ;;  %vm576_vm9 = vcmp.eq.f32.partialorder %v1710_v24, 0.0 }
 0x129   : > { %v1381_v37 = vpop.eup %1380  ;;  %v370_v36 = vmul.f32 %v1532_v20, %v343_v18  ;;  %v1764_v52 = vsub.f32 %v1613_v9, %v372_v17  ;;  %v715_v17 = vor.u32 1.1754944e-38, %v714_v22  ;;  %v711_v30 = vsel %vm1790_vm3, %v1705_v13, %v707_v5 }
 0x12a   : > { %v544_v46 = vmul.f32 %v1381_v37, %v1716_v49  ;;  %v1383_v48 = vpop.eup %1382  ;;  %v569_v35 = vmul.f32 %v1379_v15, %v568_v29  ;;  %v561_v29 = vmul.f32 %v560_v41, %v1677_v32  ;;  %1384 = vrcp.f32 %v1799_v50 }
 0x12b   : > { %v1772_v42 = vsub.f32 %v1616_v10, %v370_v36  ;;  %v404_v1 = vmul.f32 %v1764_v52, %v1764_v52  ;;  %v719_v54 = vmul.f32 %v1383_v48, %v1718_v26  ;;  %v716_v13 = vsel %vm1766_vm13, %v715_v17, %v711_v30 }
 0x12c   : > { %v545_v21 = vmul.f32 %v1381_v37, %v544_v46  ;;  %v570_v18 = vmul.f32 0.5, %v569_v35  ;;  %vm724_vm4 = vweird.f32 %v1383_v48  ;;  %v563_v59 = vsel %vm562_vm12, %v1677_v32, %v561_v29 }
 0x12d   : > { %v402_v19 = vmul.f32 %v1772_v42, %v1772_v42  ;;  %v450_v46 = vsel %vm301_vm0, %v404_v1, 0.0  ;;  %v720_v35 = vsub.f32 1.0, %v719_v54  ;;  %v717_v29 = vmul.f32 %v716_v13, %v1724_v38  ;;  %vm725_vm7 = vmor %vm723_vm6, %vm724_vm4 }
 0x12e   : > { %v546_v36 = vmul.f32 0.5, %v545_v21  ;;  %v571_v22 = vsub.f32 1.5, %v570_v18  ;;  %v1802_v21 = vadd.f32 1e-06, %v542_v11  ;;  %v729_v18 = vand.u32 2147483648, %v1718_v26 }
 0x12f   : > { %v444_v28 = vsel %vm301_vm0, %v402_v19, 0.0  ;;  %451 = vadd.xlane.f32.xlu1 %v450_v46  ;;  %v721_v5 = vmul.f32 %v1383_v48, %v720_v35  ;;  %v2298_v26 = vand.u32 2147483648, %v1677_v32  ;;  %v577_v38 = vand.u32 2147483648, %v1710_v24 }
 0x130   : > { %v547_v27 = vsub.f32 1.5, %v546_v36  ;;  %445 = vadd.xlane.f32.xlu2 %v444_v28  ;;  %v346_v41 = vpop.xlane.xlu1 %345  ;;  %v572_v1 = vmul.f32 %v1379_v15, %v571_v22  ;;  %1386 = vrcp.f32 %v1802_v21  ;;  %v730_v36 = vor.u32 1.1754944e-38, %v729_v18  ;;  %v1385_v22 = vpop.eup %1384 }
 0x131   : > { %v371_v16 = vmul.f32 %v1532_v20, %v346_v41  ;;  %v722_v11 = vadd.f32 %v1383_v48, %v721_v5  ;;  %v566_v54 = vsel %vm564_vm14, %v2298_v26, %v563_v59  ;;  %v734_v32 = vmul.f32 %v1385_v22, %v1799_v50 }
 0x132   : > { %v548_v19 = vmul.f32 %v1381_v37, %v547_v27  ;;  %v573_v20 = vmul.f32 %v572_v1, %v1710_v24  ;;  %v1849_v18 = vadd.f32 1e-06, %v566_v54  ;;  %v742_v13 = vand.u32 2147483647, %v1799_v50 }
 0x133   : > { %v1814_v15 = vsub.f32 %v1623_v14, %v371_v16  ;;  %v1827_v16 = vld [vmem:[%s2288_s2] ss:$0 sm:$0xff]  ;;  %v726_v61 = vsel %vm725_vm7, %v1383_v48, %v722_v11  ;;  %vm739_vm10 = vweird.f32 %v1385_v22  ;;  %vm738_vm11 = vweird.f32 %v1799_v50 }
 0x134   : > { %v549_v37 = vmul.f32 %v548_v19, %v1716_v49  ;;  %v731_v30 = vsel %vm728_vm8, %v730_v36, %v726_v61  ;;  %v575_v41 = vsel %vm574_vm1, %v1710_v24, %v573_v20  ;;  %v946_v31 = vadd.f32 %v1827_v16, %v717_v29  ;;  %vm740_vm13 = vmor %vm738_vm11, %vm739_vm10 }
 0x135   : > { %v403_v17 = vmul.f32 %v1814_v15, %v1814_v15  ;;  %v732_v48 = vmul.f32 %v731_v30, %v1729_v43  ;;  %v735_v19 = vsub.f32 1.0, %v734_v32  ;;  %v744_v24 = vand.u32 2147483648, %v1799_v50 }
 0x136   : > { %v551_v46 = vsel %vm550_vm2, %v1716_v49, %v549_v37  ;;  %v1387_v35 = vpop.eup %1386  ;;  %v578_v43 = vsel %vm576_vm9, %v577_v38, %v575_v41  ;;  %v757_v11 = vand.u32 2147483647, %v1802_v21  ;;  %vm753_vm14 = vweird.f32 %v1802_v21 }
 0x137   : > { %v447_v28 = vsel %vm301_vm0, %v403_v17, 0.0  ;;  %v554_v27 = vsel %vm552_vm5, %v553_v53, %v551_v46  ;;  %v947_v49 = vadd.f32 %v1827_v16, %v732_v48  ;;  %v749_v5 = vmul.f32 %v1387_v35, %v1802_v21 }
 0x138   : > { %448 = vadd.xlane.f32.xlu0 %v447_v28  ;;  %v1847_v1 = vadd.f32 1e-06, %v554_v27  ;;  %v736_v20 = vmul.f32 %v1385_v22, %v735_v19  ;;  %v759_v53 = vand.u32 2147483648, %v1802_v21  ;;  %vm754_vm12 = vweird.f32 %v1387_v35 }
 0x139   : > { %v962_v59 = vpack.c.bf16 %v947_v49, %v946_v31  ;;  %v750_v37 = vsub.f32 1.0, %v749_v5  ;;  %v1861_v36 = vadd.f32 1e-06, %v578_v43  ;;  %v481_v46 = vmul.f32 %v1699_v62, %v1559_v40  ;;  %vm755_vm1 = vmor %vm753_vm14, %vm754_vm12 }
 0x13a   : > { %1388 = vrcp.f32 %v1847_v1  ;;  %v737_v17 = vadd.f32 %v1385_v22, %v736_v20  ;;  %v745_v61 = vor.u32 1.1754944e-38, %v744_v24  ;;  %vm743_vm15 = vcmp.eq.f32.partialorder %v742_v13, 8.507059e+37 }
 0x13b   : > { %1390 = vrcp.f32 %v1849_v18  ;;  %1302 = vmatmul.msk.bf16.vlgmr.msra.gmra.mxu0 %vm301_vm0, %v962_v59  ;;  %v751_v29 = vmul.f32 %v1387_v35, %v750_v37  ;;  %v482_v38 = vmul.f32 %v1699_v62, %v1547_v34  ;;  %v760_v30 = vor.u32 1.1754944e-38, %v759_v53 }
 0x13c   : > { %v741_v50 = vsel %vm740_vm13, %v1385_v22, %v737_v17  ;;  %1392 = vrcp.f32 %v1861_v36  ;;  %vm758_vm2 = vcmp.eq.f32.partialorder %v757_v11, 8.507059e+37  ;;  %v483_v21 = vmul.f32 %v1699_v62, %v1597_v60 }
 0x13d   : > { %v752_v26 = vadd.f32 %v1387_v35, %v751_v29  ;;  %v746_v28 = vsel %vm743_vm15, %v745_v61, %v741_v50  ;;  %v772_v32 = vand.u32 2147483647, %v1847_v1  ;;  %v774_v13 = vand.u32 2147483648, %v1847_v1 }
 0x13e   : > { %v747_v41 = vmul.f32 %v746_v28, %v481_v46  ;;  %v787_v24 = vand.u32 2147483647, %v1849_v18  ;;  %v789_v43 = vand.u32 2147483648, %v1849_v18  ;;  %vm768_vm3 = vweird.f32 %v1847_v1 }
 0x13f   : > { %v756_v40 = vsel %vm755_vm1, %v1387_v35, %v752_v26  ;;  %v484_v35 = vmul.f32 %v1699_v62, %v1573_v47  ;;  %vm783_vm5 = vweird.f32 %v1849_v18  ;;  %vm773_vm7 = vcmp.eq.f32.partialorder %v772_v32, 8.507059e+37 }
 0x140   : > { %v1389_v54 = vpop.eup %1388  ;;  %v761_v22 = vsel %vm758_vm2, %v760_v30, %v756_v40  ;;  %v948_v34 = vadd.f32 %v1827_v16, %v747_v41  ;;  %v775_v17 = vor.u32 1.1754944e-38, %v774_v13  ;;  %vm788_vm9 = vcmp.eq.f32.partialorder %v787_v24, 8.507059e+37 }
 0x141   : > { %v1391_v27 = vpop.eup %1390  ;;  %v764_v48 = vmul.f32 %v1389_v54, %v1847_v1  ;;  %v762_v49 = vmul.f32 %v761_v22, %v482_v38  ;;  %vm769_vm4 = vweird.f32 %v1389_v54  ;;  %v790_v46 = vor.u32 1.1754944e-38, %v789_v43 }
 0x142   : > { %v779_v31 = vmul.f32 %v1391_v27, %v1849_v18  ;;  %v1393_v60 = vpop.eup %1392  ;;  %vm784_vm6 = vweird.f32 %v1391_v27  ;;  %vm770_vm8 = vmor %vm768_vm3, %vm769_vm4  ;;  %vm798_vm11 = vweird.f32 %v1861_v36  ;;  %v802_v1 = vand.u32 2147483647, %v1861_v36 }
 0x143   : > { %v765_v19 = vsub.f32 1.0, %v764_v48  ;;  %v949_v59 = vadd.f32 %v1827_v16, %v762_v49  ;;  %v794_v11 = vmul.f32 %v1393_v60, %v1861_v36  ;;  %vm785_vm10 = vmor %vm783_vm5, %vm784_vm6  ;;  %v804_v18 = vand.u32 2147483648, %v1861_v36 }
 0x144   : > { %v780_v5 = vsub.f32 1.0, %v779_v31  ;;  %vm799_vm12 = vweird.f32 %v1393_v60  ;;  %v485_v32 = vmul.f32 %v1699_v62, %v1591_v57  ;;  %vm803_vm14 = vcmp.eq.f32.partialorder %v802_v1, 8.507059e+37 }
 0x145   : > { %v766_v20 = vmul.f32 %v1389_v54, %v765_v19  ;;  %v963_v53 = vpack.c.bf16 %v949_v59, %v948_v34  ;;  %v795_v61 = vsub.f32 1.0, %v794_v11  ;;  %vm800_vm13 = vmor %vm798_vm11, %vm799_vm12 }
 0x146   : > { %v781_v37 = vmul.f32 %v1391_v27, %v780_v5 }
 0x147   : > { %v767_v47 = vadd.f32 %v1389_v54, %v766_v20  ;;  %v796_v28 = vmul.f32 %v1393_v60, %v795_v61 }
 0x148   : > { %v782_v29 = vadd.f32 %v1391_v27, %v781_v37 }
 0x149   : > { %v771_v50 = vsel %vm770_vm8, %v1389_v54, %v767_v47  ;;  %v797_v48 = vadd.f32 %v1393_v60, %v796_v28  ;;  %v805_v54 = vor.u32 1.1754944e-38, %v804_v18 }
 0x14a   : > { %v776_v26 = vsel %vm773_vm7, %v775_v17, %v771_v50  ;;  %v786_v38 = vsel %vm785_vm10, %v1391_v27, %v782_v29 }
 0x14b   : > { %v777_v30 = vmul.f32 %v776_v26, %v483_v21  ;;  %v791_v41 = vsel %vm788_vm9, %v790_v46, %v786_v38  ;;  %1303 = vmatmul.msk.bf16.gmra.mxu0 %vm301_vm0, %v963_v53  ;;  %v801_v36 = vsel %vm800_vm13, %v1393_v60, %v797_v48 }
 0x14c   : > { %v792_v40 = vmul.f32 %v791_v41, %v484_v35  ;;  %v806_v27 = vsel %vm803_vm14, %v805_v54, %v801_v36 }
 0x14d   : > { %v950_v22 = vadd.f32 %v1827_v16, %v777_v30  ;;  %v1893_v34 = vmul.f32 %v806_v27, %v485_v32 }
 0x14e   : > { %v951_v31 = vadd.f32 %v1827_v16, %v792_v40 }
 0x150   : > { %v964_v49 = vpack.c.bf16 %v951_v31, %v950_v22 }
 0x15b   : > { %1304 = vmatmul.msk.bf16.gmra.mxu0 %vm301_vm0, %v964_v49 }
 0x181   : > { %v428_v21 = vpop.xlane.xlu0 %427 }
 0x182   : > { %v467_v19 = vmul.f32 %v1627_v23, %v428_v21 }
 0x184   : > { %1394 = vrsqrt.f32 %v467_v19  ;;  %vm586_vm15 = vcmp.eq.f32.partialorder %v467_v19, inf  ;;  %v589_v38 = vand.u32 2147483648, %v467_v19  ;;  %vm588_vm1 = vcmp.eq.f32.partialorder %v467_v19, 0.0 }
 0x189   : > { %v437_v13 = vpop.xlane.xlu2 %436  ;;  %v431_v5 = vpop.xlane.xlu0 %430 }
 0x18a   : > { %v1898_v35 = vmul.f32 %v1627_v23, %v437_v13  ;;  %v1395_v57 = vpop.eup %1394  ;;  %v468_v24 = vmul.f32 %v1627_v23, %v431_v5 }
 0x18b   : > { %v580_v43 = vmul.f32 %v1395_v57, %v467_v19 }
 0x18c   : > { %1396 = vrsqrt.f32 %v1898_v35  ;;  %vm622_vm2 = vcmp.eq.f32.partialorder %v1898_v35, inf  ;;  %vm624_vm3 = vcmp.eq.f32.partialorder %v1898_v35, 0.0  ;;  %vm598_vm4 = vcmp.eq.f32.partialorder %v468_v24, inf }
 0x18d   : > { %1398 = vrsqrt.f32 %v468_v24  ;;  %v581_v60 = vmul.f32 %v1395_v57, %v580_v43  ;;  %v625_v43 = vand.u32 2147483648, %v1898_v35  ;;  %vm600_vm5 = vcmp.eq.f32.partialorder %v468_v24, 0.0 }
 0x18f   : > { %v582_v59 = vmul.f32 0.5, %v581_v60 }
 0x191   : > { %v583_v11 = vsub.f32 1.5, %v582_v59  ;;  %v440_v47 = vpop.xlane.xlu0 %439 }
 0x192   : > { %v434_v20 = vpop.xlane.xlu1 %433  ;;  %v1397_v37 = vpop.eup %1396  ;;  %v1907_v46 = vmul.f32 %v1627_v23, %v440_v47 }
 0x193   : > { %v1903_v53 = vmul.f32 %v1627_v23, %v434_v20  ;;  %v1399_v17 = vpop.eup %1398  ;;  %v616_v29 = vmul.f32 %v1397_v37, %v1898_v35  ;;  %v584_v61 = vmul.f32 %v1395_v57, %v583_v11 }
 0x194   : > { %v592_v50 = vmul.f32 %v1399_v17, %v468_v24  ;;  %vm634_vm8 = vcmp.eq.f32.partialorder %v1907_v46, inf  ;;  %vm636_vm9 = vcmp.eq.f32.partialorder %v1907_v46, 0.0 }
 0x195   : > { %1400 = vrsqrt.f32 %v1903_v53  ;;  %v617_v1 = vmul.f32 %v1397_v37, %v616_v29  ;;  %v585_v18 = vmul.f32 %v584_v61, %v467_v19  ;;  %v1341_v29 = vld [vmem:[%s2291_s5 + $0x18] sm:$0xff]  ;;  %v1930_v61 = vmul.f32 %v1699_v62, %v1640_v39  ;;  %v1340_v39 = vld [vmem:[%s2291_s5 + $0x10] sm:$0xff] }
 0x196   : > { %1402 = vrsqrt.f32 %v1907_v46  ;;  %v593_v26 = vmul.f32 %v1399_v17, %v592_v50  ;;  %1152 = vmatpush.bf16.msra.mxu1 %v1341_v29  ;;  %1344 = vmatpush.bf16.msra.mxu2 %v1341_v29  ;;  %vm610_vm6 = vcmp.eq.f32.partialorder %v1903_v53, inf  ;;  %vm612_vm7 = vcmp.eq.f32.partialorder %v1903_v53, 0.0 }
 0x197   : > { %v618_v28 = vmul.f32 0.5, %v617_v1  ;;  %v587_v30 = vsel %vm586_vm15, %v467_v19, %v585_v18 }
 0x198   : > { %v594_v41 = vmul.f32 0.5, %v593_v26  ;;  %v590_v48 = vsel %vm588_vm1, %v589_v38, %v587_v30  ;;  %v1936_v38 = vmul.f32 %v1699_v62, %v1659_v2 }
 0x199   : > { %v619_v40 = vsub.f32 1.5, %v618_v28  ;;  %v1911_v31 = vadd.f32 1e-06, %v590_v48 }
 0x19a   : > { %v595_v54 = vsub.f32 1.5, %v594_v41  ;;  %v443_v32 = vpop.xlane.xlu1 %442  ;;  %1153 = vmatpush.bf16.msra.mxu1 %v1340_v39  ;;  %1345 = vmatpush.bf16.msra.mxu2 %v1340_v39 }
 0x19b   : > { %v1401_v22 = vpop.eup %1400  ;;  %v620_v27 = vmul.f32 %v1397_v37, %v619_v40  ;;  %v1915_v21 = vmul.f32 %v1627_v23, %v443_v32  ;;  %1404 = vrcp.f32 %v1911_v31  ;;  %v601_v37 = vand.u32 2147483648, %v468_v24 }
 0x19c   : > { %v1403_v36 = vpop.eup %1402  ;;  %v604_v49 = vmul.f32 %v1401_v22, %v1903_v53  ;;  %v596_v13 = vmul.f32 %v1399_v17, %v595_v54  ;;  %vm813_vm11 = vweird.f32 %v1911_v31 }
 0x19d   : > { %v628_v19 = vmul.f32 %v1403_v36, %v1907_v46  ;;  %v621_v5 = vmul.f32 %v620_v27, %v1898_v35  ;;  %1406 = vrsqrt.f32 %v1915_v21  ;;  %v1957_v27 = vmul.f32 %v1699_v62, %v1662_v3 }
 0x19e   : > { %v605_v57 = vmul.f32 %v1401_v22, %v604_v49  ;;  %v597_v60 = vmul.f32 %v596_v13, %v468_v24  ;;  %v1971_v13 = vadd.f32 %v1827_v16, %v1893_v34  ;;  %v613_v3 = vand.u32 2147483648, %v1903_v53 }
 0x19f   : > { %v629_v59 = vmul.f32 %v1403_v36, %v628_v19  ;;  %v623_v20 = vsel %vm622_vm2, %v1898_v35, %v621_v5  ;;  %v1961_v35 = vmul.f32 %v1699_v62, %v1686_v51  ;;  %v1339_v5 = vld [vmem:[%s2291_s5 + $0x8] sm:$0xff]  ;;  %v819_v34 = vand.u32 2147483648, %v1911_v31 }
 0x1a0   : > { %v606_v11 = vmul.f32 0.5, %v605_v57  ;;  %v599_v47 = vsel %vm598_vm4, %v468_v24, %v597_v60  ;;  %v626_v41 = vsel %vm624_vm3, %v625_v43, %v623_v20  ;;  %1154 = vmatpush.bf16.msra.mxu1 %v1339_v5  ;;  %1346 = vmatpush.bf16.msra.mxu2 %v1339_v5  ;;  %vm646_vm14 = vcmp.eq.f32.partialorder %v1915_v21, inf }
 0x1a1   : > { %v630_v17 = vmul.f32 0.5, %v629_v59  ;;  %v602_v18 = vsel %vm600_vm5, %v601_v37, %v599_v47  ;;  %v1932_v26 = vpop.eup %1404  ;;  %v1978_v57 = vadd.f32 1e-06, %v626_v41  ;;  %v820_v41 = vor.u32 1.1754944e-38, %v819_v34 }
 0x1a2   : > { %v607_v50 = vsub.f32 1.5, %v606_v11  ;;  %v452_v30 = vpop.xlane.xlu1 %451  ;;  %v809_v54 = vmul.f32 %v1932_v26, %v1911_v31  ;;  %v1953_v32 = vadd.f32 1e-06, %v602_v18  ;;  %vm814_vm10 = vweird.f32 %v1932_v26 }
 0x1a3   : > { %v446_v1 = vpop.xlane.xlu2 %445  ;;  %v631_v28 = vsub.f32 1.5, %v630_v17  ;;  %v1946_v40 = vpop.eup %1406  ;;  %v1949_v2 = vmul.f32 %v1627_v23, %v452_v30  ;;  %v817_v11 = vand.u32 2147483647, %v1911_v31  ;;  %v637_v17 = vand.u32 2147483648, %v1907_v46  ;;  %vm815_vm12 = vmor %vm813_vm11, %vm814_vm10 }
 0x1a4   : > { %v1939_v24 = vmul.f32 %v1627_v23, %v446_v1  ;;  %v608_v48 = vmul.f32 %v1401_v22, %v607_v50  ;;  %v640_v49 = vmul.f32 %v1946_v40, %v1915_v21  ;;  %v810_v60 = vsub.f32 1.0, %v809_v54  ;;  %v1338_v50 = vld [vmem:[%s2291_s5] sm:$0xff] }
 0x1a5   : > { %v632_v19 = vmul.f32 %v1403_v36, %v631_v28  ;;  %vm818_vm13 = vcmp.eq.f32.partialorder %v817_v11, 8.507059e+37  ;;  %1155 = vmatpush.bf16.msra.mxu1 %v1338_v50  ;;  %1347 = vmatpush.bf16.msra.mxu2 %v1338_v50  ;;  %vm648_vm15 = vcmp.eq.f32.partialorder %v1915_v21, 0.0  ;;  %vm682_vm3 = vcmp.eq.f32.partialorder %v1949_v2, inf }
 0x1a6   : > { %1408 = vrsqrt.f32 %v1939_v24  ;;  %v609_v22 = vmul.f32 %v608_v48, %v1903_v53  ;;  %v641_v51 = vmul.f32 %v1946_v40, %v640_v49  ;;  %v811_v37 = vmul.f32 %v1932_v26, %v810_v60 }
 0x1a7   : > { %1410 = vrsqrt.f32 %v1949_v2  ;;  %vm658_vm2 = vcmp.eq.f32.partialorder %v1939_v24, inf  ;;  %vm828_vm4 = vweird.f32 %v1953_v32 }
 0x1a8   : > { %v611_v43 = vsel %vm610_vm6, %v1903_v53, %v609_v22  ;;  %1412 = vrcp.f32 %v1953_v32  ;;  %v642_v59 = vmul.f32 0.5, %v641_v51  ;;  %v633_v53 = vmul.f32 %v632_v19, %v1907_v46 }
 0x1a9   : > { %v614_v36 = vsel %vm612_vm7, %v613_v3, %v611_v43  ;;  %1414 = vrcp.f32 %v1978_v57  ;;  %v812_v28 = vadd.f32 %v1932_v26, %v811_v37  ;;  %v661_v43 = vand.u32 2147483648, %v1939_v24 }
 0x1aa   : > { %v2001_v30 = vadd.f32 1e-06, %v614_v36  ;;  %v643_v54 = vsub.f32 1.5, %v642_v59  ;;  %v635_v31 = vsel %vm634_vm8, %v1907_v46, %v633_v53  ;;  %v832_v59 = vand.u32 2147483647, %v1953_v32 }
 0x1ab   : > { %v449_v20 = vpop.xlane.xlu0 %448  ;;  %v816_v22 = vsel %vm815_vm12, %v1932_v26, %v812_v28  ;;  %vm660_vm7 = vcmp.eq.f32.partialorder %v1939_v24, 0.0 }
 0x1ac   : > { %v1409_v47 = vpop.eup %1408  ;;  %v1992_v29 = vmul.f32 %v1627_v23, %v449_v20  ;;  %v649_v23 = vand.u32 2147483648, %v1915_v21  ;;  %v821_v19 = vsel %vm818_vm13, %v820_v41, %v816_v22  ;;  %v834_v20 = vand.u32 2147483648, %v1953_v32 }
 0x1ad   : > { %v1411_v1 = vpop.eup %1410  ;;  %v652_v18 = vmul.f32 %v1409_v47, %v1939_v24  ;;  %v822_v60 = vmul.f32 %v821_v19, %v1930_v61  ;;  %v644_v37 = vmul.f32 %v1946_v40, %v643_v54  ;;  %v685_v40 = vand.u32 2147483648, %v1949_v2 }
 0x1ae   : > { %v676_v39 = vmul.f32 %v1411_v1, %v1949_v2  ;;  %1416 = vrsqrt.f32 %v1992_v29  ;;  %v1413_v48 = vpop.eup %1412  ;;  %vm833_vm6 = vcmp.eq.f32.partialorder %v832_v59, 8.507059e+37  ;;  %vm670_vm8 = vcmp.eq.f32.partialorder %v1992_v29, inf }
 0x1af   : > { %v653_v49 = vmul.f32 %v1409_v47, %v652_v18  ;;  %v824_v51 = vmul.f32 %v1413_v48, %v1953_v32  ;;  %1418 = vrcp.f32 %v2001_v30  ;;  %v2017_v26 = vpop.eup %1414  ;;  %v953_v53 = vadd.f32 %v1827_v16, %v822_v60 }
 0x1b0   : > { %v677_v3 = vmul.f32 %v1411_v1, %v676_v39  ;;  %v638_v18 = vsel %vm636_vm9, %v637_v17, %v635_v31  ;;  %vm829_vm1 = vweird.f32 %v1413_v48  ;;  %v854_v39 = vmul.f32 %v2017_v26, %v1978_v57 }
 0x1b1   : > { %v654_v5 = vmul.f32 0.5, %v653_v49  ;;  %v825_v36 = vsub.f32 1.0, %v824_v51  ;;  %v965_v46 = vpack.c.bf16 %v953_v53, %v1971_v13  ;;  %v645_v31 = vmul.f32 %v644_v37, %v1915_v21  ;;  %vm830_vm5 = vmor %vm828_vm4, %vm829_vm1 }
 0x1b2   : > { %v678_v34 = vmul.f32 0.5, %v677_v3  ;;  %v855_v49 = vsub.f32 1.0, %v854_v39  ;;  %v2037_v19 = vadd.f32 1e-06, %v638_v18  ;;  %v673_v60 = vand.u32 2147483648, %v1992_v29 }
 0x1b3   : > { %v655_v11 = vsub.f32 1.5, %v654_v5  ;;  %v826_v28 = vmul.f32 %v1413_v48, %v825_v36  ;;  %1305 = vmatmul.msk.bf16.gmra.mxu0 %vm301_vm0, %v965_v46  ;;  %v849_v18 = vand.u32 2147483648, %v2001_v30  ;;  %vm684_vm9 = vcmp.eq.f32.partialorder %v1949_v2, 0.0 }
 0x1b4   : > { %v1417_v61 = vpop.eup %1416  ;;  %v679_v50 = vsub.f32 1.5, %v678_v34  ;;  %v847_v34 = vand.u32 2147483647, %v2001_v30  ;;  %1420 = vrcp.f32 %v2037_v19  ;;  %vm672_vm10 = vcmp.eq.f32.partialorder %v1992_v29, 0.0 }
 0x1b5   : > { %v664_v41 = vmul.f32 %v1417_v61, %v1992_v29  ;;  %v656_v17 = vmul.f32 %v1409_v47, %v655_v11  ;;  %v827_v54 = vadd.f32 %v1413_v48, %v826_v28  ;;  %v1419_v22 = vpop.eup %1418  ;;  %v835_v47 = vor.u32 1.1754944e-38, %v834_v20  ;;  %v2052_v20 = vld [vmem:[%s2290_s4] ss:$0 sm:$0xff] }
 0x1b6   : > { %v680_v51 = vmul.f32 %v1411_v1, %v679_v50  ;;  %v839_v5 = vmul.f32 %v1419_v22, %v2001_v30  ;;  %v856_v11 = vmul.f32 %v2017_v26, %v855_v49  ;;  %v647_v1 = vsel %vm646_vm14, %v1915_v21, %v645_v31 }
 0x1b7   : > { %v665_v3 = vmul.f32 %v1417_v61, %v664_v41  ;;  %v831_v13 = vsel %vm830_vm5, %v1413_v48, %v827_v54  ;;  %v657_v36 = vmul.f32 %v656_v17, %v1939_v24  ;;  %vm843_vm11 = vweird.f32 %v2001_v30 }
 0x1b8   : > { %v836_v37 = vsel %vm833_vm6, %v835_v47, %v831_v13  ;;  %v840_v59 = vsub.f32 1.0, %v839_v5  ;;  %v1023_v53 = vpop.f32.mrf.mxu0  ;;  %v681_v50 = vmul.f32 %v680_v51, %v1949_v2  ;;  %vm844_vm12 = vweird.f32 %v1419_v22 }
 0x1b9   : > { %v666_v32 = vmul.f32 0.5, %v665_v3  ;;  %v837_v41 = vmul.f32 %v836_v37, %v1957_v27  ;;  %vm2061_vm13 = vcmp.eq.f32.partialorder %v847_v34, 8.507059e+37  ;;  %vm859_vm14 = vweird.f32 %v2017_v26  ;;  %vm845_vm1 = vmor %vm843_vm11, %vm844_vm12 }
 0x1ba   : > { %v841_v28 = vmul.f32 %v1419_v22, %v840_v59  ;;  %v659_v17 = vsel %vm658_vm2, %v1939_v24, %v657_v36  ;;  %v857_v49 = vadd.f32 %v2017_v26, %v856_v11  ;;  %v862_v31 = vand.u32 2147483647, %v1978_v57  ;;  %v1421_v5 = vpop.eup %1420 }
 0x1bb   : > { %v667_v48 = vsub.f32 1.5, %v666_v32  ;;  %v1024_v30 = vadd.f32 %v2052_v20, %v1023_v53  ;;  %v864_v27 = vand.u32 2147483648, %v1978_v57  ;;  %v650_v3 = vsel %vm648_vm15, %v649_v23, %v647_v1 }
 0x1bc   : > { %v842_v54 = vadd.f32 %v1419_v22, %v841_v28  ;;  %v683_v51 = vsel %vm682_vm3, %v1949_v2, %v681_v50  ;;  %vm858_vm2 = vweird.f32 %v1978_v57  ;;  %v954_v34 = vadd.f32 %v1827_v16, %v837_v41 }
 0x1bd   : > { %v668_v39 = vmul.f32 %v1417_v61, %v667_v48  ;;  %v850_v61 = vor.u32 1.1754944e-38, %v849_v18  ;;  %vm2087_vm4 = vmor %vm858_vm2, %vm859_vm14  ;;  %v662_v23 = vsel %vm660_vm7, %v661_v43, %v659_v17  ;;  %vm863_vm15 = vcmp.eq.f32.partialorder %v862_v31, 8.507059e+37 }
 0x1be   : > { %v846_v47 = vsel %vm845_vm1, %v1419_v22, %v842_v54  ;;  %v2095_v22 = vadd.f32 1e-06, %v650_v3  ;;  %v861_v36 = vsel %vm2087_vm4, %v2017_v26, %v857_v49  ;;  %v869_v37 = vmul.f32 %v1421_v5, %v2037_v19 }
 0x1bf   : > { %v669_v13 = vmul.f32 %v668_v39, %v1992_v29  ;;  %v851_v32 = vsel %vm2061_vm13, %v850_v61, %v846_v47  ;;  %v1063_v59 = vmax.f32 %v1024_v30, 0.0  ;;  %v865_v1 = vor.u32 1.1754944e-38, %v864_v27 }
 0x1c0   : > { %v852_v57 = vmul.f32 %v851_v32, %v1961_v35  ;;  %v1025_v11 = vpop.f32.mrf.mxu0  ;;  %v2102_v48 = vadd.f32 1e-06, %v662_v23  ;;  %1422 = vrcp.f32 %v2095_v22  ;;  %v870_v53 = vsub.f32 1.0, %v869_v37 }
 0x1c1   : > { %v671_v24 = vsel %vm670_vm8, %v1992_v29, %v669_v13  ;;  %v1026_v35 = vadd.f32 %v2052_v20, %v1025_v11  ;;  %v866_v26 = vsel %vm863_vm15, %v865_v1, %v861_v36  ;;  %v877_v18 = vand.u32 2147483647, %v2037_v19 }
 0x1c2   : > { %v955_v43 = vadd.f32 %v1827_v16, %v852_v57  ;;  %v879_v50 = vand.u32 2147483648, %v2037_v19  ;;  %1424 = vrcp.f32 %v2102_v48  ;;  %v871_v41 = vmul.f32 %v1421_v5, %v870_v53 }
 0x1c3   : > { %v1064_v28 = vmax.f32 %v1026_v35, 0.0  ;;  %vm874_vm3 = vweird.f32 %v1421_v5  ;;  %vm873_vm5 = vweird.f32 %v2037_v19  ;;  %vm1123_vm6 = vcmask 523264  }
 0x1c4   : > { %v966_v39 = vpack.c.bf16 %v955_v43, %v954_v34  ;;  %v674_v46 = vsel %vm672_vm10, %v673_v60, %v671_v24  ;;  %v686_v17 = vsel %vm684_vm9, %v685_v40, %v683_v51  ;;  %v867_v49 = vmul.f32 %v866_v26, %v1936_v38  ;;  %vm875_vm7 = vmor %vm873_vm5, %vm874_vm3 }
 0x1c5   : > { %v1079_v54 = vpack.c.bf16 %v1064_v28, %v1063_v59  ;;  %v872_v31 = vadd.f32 %v1421_v5, %v871_v41  ;;  %v2124_v30 = vadd.f32 1e-06, %v674_v46  ;;  %v490_v61 = vmul.f32 %v1699_v62, %v1690_v58 }
 0x1c6   : > { %1306 = vmatmul.msk.bf16.gmra.mxu0 %vm301_vm0, %v966_v39  ;;  %v1423_v19 = vpop.eup %1422  ;;  %v880_v29 = vor.u32 1.1754944e-38, %v879_v50  ;;  %v2128_v60 = vadd.f32 1e-06, %v686_v17  ;;  %vm878_vm8 = vcmp.eq.f32.partialorder %v877_v18, 8.507059e+37  ;;  %v491_v40 = vmul.f32 %v1699_v62, %v1737_v25 }
 0x1c7   : > { %v876_v27 = vsel %vm875_vm7, %v1421_v5, %v872_v31  ;;  %1326 = vmatmul.msk.bf16.vlgmr.msra.gmra.mxu1 %vm1123_vm6, %v1079_v54  ;;  %v884_v2 = vmul.f32 %v1423_v19, %v2095_v22  ;;  %1426 = vrcp.f32 %v2124_v30  ;;  %v492_v3 = vmul.f32 %v1699_v62, %v1772_v42 }
 0x1c8   : > { %v1425_v38 = vpop.eup %1424  ;;  %v881_v58 = vsel %vm878_vm8, %v880_v29, %v876_v27  ;;  %v1028_v51 = vpop.f32.mrf.mxu0  ;;  %v892_v13 = vand.u32 2147483647, %v2095_v22  ;;  %v956_v5 = vadd.f32 %v1827_v16, %v867_v49  ;;  %v894_v21 = vand.u32 2147483648, %v2095_v22 }
 0x1c9   : > { %v882_v47 = vmul.f32 %v881_v58, %v490_v61  ;;  %v885_v32 = vsub.f32 1.0, %v884_v2  ;;  %v899_v34 = vmul.f32 %v1425_v38, %v2102_v48  ;;  %v907_v23 = vand.u32 2147483647, %v2102_v48 }
 0x1ca   : > { %v909_v57 = vand.u32 2147483648, %v2102_v48  ;;  %1428 = vrcp.f32 %v2128_v60  ;;  %vm889_vm9 = vweird.f32 %v1423_v19  ;;  %vm888_vm10 = vweird.f32 %v2095_v22 }
 0x1cb   : > { %v957_v62 = vadd.f32 %v1827_v16, %v882_v47  ;;  %v886_v25 = vmul.f32 %v1423_v19, %v885_v32  ;;  %v900_v42 = vsub.f32 1.0, %v899_v34  ;;  %vm2146_vm11 = vcmp.eq.f32.partialorder %v892_v13, 8.507059e+37  ;;  %vm890_vm14 = vmor %vm888_vm10, %vm889_vm9 }
 0x1cc   : > { %vm903_vm12 = vweird.f32 %v2102_v48  ;;  %v924_v37 = vand.u32 2147483648, %v2124_v30  ;;  %vm904_vm13 = vweird.f32 %v1425_v38  ;;  %v1029_v35 = vadd.f32 %v2052_v20, %v1028_v51 }
 0x1cd   : > { %v1427_v59 = vpop.eup %1426  ;;  %v967_v11 = vpack.c.bf16 %v957_v62, %v956_v5  ;;  %v887_v1 = vadd.f32 %v1423_v19, %v886_v25  ;;  %v901_v24 = vmul.f32 %v1425_v38, %v900_v42  ;;  %v895_v43 = vor.u32 1.1754944e-38, %v894_v21  ;;  %vm905_vm4 = vmor %vm903_vm12, %vm904_vm13 }
 0x1ce   : > { %vm2153_vm1 = vcmp.eq.f32.partialorder %v907_v23, 8.507059e+37  ;;  %v914_v22 = vmul.f32 %v1427_v59, %v2124_v30  ;;  %v910_v50 = vor.u32 1.1754944e-38, %v909_v57  ;;  %vm918_vm2 = vweird.f32 %v2124_v30 }
 0x1cf   : > { %1307 = vmatmul.msk.bf16.vlgmr.msra.gmra.mxu3 %vm301_vm0, %v967_v11  ;;  %v891_v26 = vsel %vm890_vm14, %v1423_v19, %v887_v1  ;;  %v902_v18 = vadd.f32 %v1425_v38, %v901_v24  ;;  %v922_v17 = vand.u32 2147483647, %v2124_v30  ;;  %v925_v54 = vor.u32 1.1754944e-38, %v924_v37 }
 0x1d0   : > { %v1429_v28 = vpop.eup %1428  ;;  %v1030_v39 = vpop.f32.mrf.mxu0  ;;  %v896_v41 = vsel %vm2146_vm11, %v895_v43, %v891_v26  ;;  %v915_v46 = vsub.f32 1.0, %v914_v22  ;;  %v1065_v29 = vmax.f32 %v1029_v35, 0.0  ;;  %vm919_vm15 = vweird.f32 %v1427_v59 }
 0x1d1   : > { %v1031_v49 = vadd.f32 %v2052_v20, %v1030_v39  ;;  %v897_v31 = vmul.f32 %v896_v41, %v491_v40  ;;  %v906_v19 = vsel %vm905_vm4, %v1425_v38, %v902_v18  ;;  %v929_v61 = vmul.f32 %v1429_v28, %v2128_v60  ;;  %vm920_vm7 = vmor %vm918_vm2, %vm919_vm15 }
 0x1d2   : > { %v911_v27 = vsel %vm2153_vm1, %v910_v50, %v906_v19  ;;  %v916_v2 = vmul.f32 %v1427_v59, %v915_v46  ;;  %vm933_vm3 = vweird.f32 %v2128_v60  ;;  %vm934_vm5 = vweird.f32 %v1429_v28  ;;  %v1431_v19 = vld [vmem:[%s1498_s30] sm:$0xff] }
 0x1d3   : > { %v1066_v58 = vmax.f32 %v1031_v49, 0.0  ;;  %v912_v51 = vmul.f32 %v911_v27, %v492_v3  ;;  %v930_v48 = vsub.f32 1.0, %v929_v61  ;;  %v937_v47 = vand.u32 2147483647, %v2128_v60  ;;  %v1430_v3 = vld [vmem:[%s2287_s1] ss:$0 sm:$0xff]  ;;  %vm935_vm9 = vmor %vm933_vm3, %vm934_vm5 }
 0x1d4   : > { %v917_v13 = vadd.f32 %v1427_v59, %v916_v2  ;;  %v939_v40 = vand.u32 2147483648, %v2128_v60  ;;  %v958_v5 = vadd.f32 %v1827_v16, %v897_v31  ;;  %v493_v21 = vmul.f32 %v1430_v3, %v1814_v15 }
 0x1d5   : > { %v1080_v38 = vpack.c.bf16 %v1066_v58, %v1065_v29  ;;  %v959_v32 = vadd.f32 %v1827_v16, %v912_v51  ;;  %v931_v34 = vmul.f32 %v1429_v28, %v930_v48  ;;  %vm923_vm8 = vcmp.eq.f32.partialorder %v922_v17, 8.507059e+37  ;;  %v2198_v17 = vld [vmem:[%s2292_s6] ss:$0 sm:$0xff] }
 0x1d6   : > { %v921_v23 = vsel %vm920_vm7, %v1427_v59, %v917_v13  ;;  %v940_v30 = vor.u32 1.1754944e-38, %v939_v40  ;;  %v494_v37 = vmul.f32 %v1430_v3, %v1764_v52  ;;  %vm938_vm10 = vcmp.eq.f32.partialorder %v937_v47, 8.507059e+37 }
 0x1d7   : > { %v968_v57 = vpack.c.bf16 %v959_v32, %v958_v5  ;;  %1327 = vmatmul.msk.bf16.gmra.mxu1 %vm1123_vm6, %v1080_v38  ;;  %v926_v62 = vsel %vm923_vm8, %v925_v54, %v921_v23  ;;  %v932_v25 = vadd.f32 %v1429_v28, %v931_v34 }
 0x1d8   : > { %v1033_v42 = vpop.f32.mrf.mxu0  ;;  %v927_v36 = vmul.f32 %v926_v62, %v493_v21 }
 0x1d9   : > { %v936_v11 = vsel %vm935_vm9, %v1429_v28, %v932_v25  ;;  %v1034_v35 = vadd.f32 %v2052_v20, %v1033_v42 }
 0x1da   : > { %v941_v1 = vsel %vm938_vm10, %v940_v30, %v936_v11  ;;  %v960_v59 = vadd.f32 %v1827_v16, %v927_v36 }
 0x1db   : > { %v942_v15 = vmul.f32 %v941_v1, %v494_v37  ;;  %v1067_v22 = vmax.f32 %v1034_v35, 0.0 }
 0x1dd   : > { %v961_v24 = vadd.f32 %v1827_v16, %v942_v15 }
 0x1df   : > { %1308 = vmatmul.msk.bf16.gmra.mxu3 %vm301_vm0, %v968_v57  ;;  %v969_v43 = vpack.c.bf16 %v961_v24, %v960_v59 }
 0x1e0   : > { %v1035_v53 = vpop.f32.mrf.mxu0 }
 0x1e1   : > { %v1036_v60 = vadd.f32 %v2052_v20, %v1035_v53 }
 0x1e3   : > { %v1068_v26 = vmax.f32 %v1036_v60, 0.0 }
 0x1e5   : > { %v1081_v52 = vpack.c.bf16 %v1068_v26, %v1067_v22 }
 0x1e7   : > { %1328 = vmatmul.msk.bf16.gmra.mxu1 %vm1123_vm6, %v1081_v52 }
 0x1ef   : > { %1309 = vmatmul.msk.bf16.gmra.mxu3 %vm301_vm0, %v969_v43 }
 0x230   : > { %v1038_v18 = vpop.f32.mrf.mxu0 }
 0x231   : > { %v1039_v16 = vadd.f32 %v2052_v20, %v1038_v18 }
 0x233   : > { %v1069_v39 = vmax.f32 %v1039_v16, 0.0 }
 0x238   : > { %v1040_v50 = vpop.f32.mrf.mxu0 }
 0x239   : > { %v1041_v28 = vadd.f32 %v2052_v20, %v1040_v50 }
 0x23b   : > { %v1070_v41 = vmax.f32 %v1041_v28, 0.0 }
 0x23d   : > { %v1082_v46 = vpack.c.bf16 %v1070_v41, %v1069_v39 }
 0x23f   : > { %1329 = vmatmul.msk.bf16.gmra.mxu1 %vm1123_vm6, %v1082_v46 }
 0x243   : > { %v1043_v54 = vpop.f32.mrf.mxu0 }
 0x244   : > { %v1157_v49 = vpop.f32.mrf.mxu1  ;;  %v1044_v29 = vadd.f32 %v2052_v20, %v1043_v54 }
 0x245   : > { %v1158_v31 = vadd.f32 %v2198_v17, %v1157_v49 }
 0x246   : > { %v1071_v51 = vmax.f32 %v1044_v29, 0.0 }
 0x247   : > { %v1197_v61 = vadd.f32 %v1431_v19, %v1158_v31 }
 0x249   : > { %1213 = vst.msk [vmem:[%s2206_s13] sm:$0xff] %vm301_vm0, %v1197_v61 }
 0x24b   : > { %v1045_v27 = vpop.f32.mrf.mxu0 }
 0x24c   : > { %v1046_v2 = vadd.f32 %v2052_v20, %v1045_v27  ;;  %v1159_v58 = vpop.f32.mrf.mxu1 }
 0x24d   : > { %v1160_v13 = vadd.f32 %v2198_v17, %v1159_v58 }
 0x24e   : > { %v1072_v48 = vmax.f32 %v1046_v2, 0.0 }
 0x24f   : > { %v1198_v40 = vadd.f32 %v1160_v13, %v1516_v7 }
 0x250   : > { %v1083_v47 = vpack.c.bf16 %v1072_v48, %v1071_v51 }
 0x251   : > { %1214 = vst.msk [vmem:[%s2206_s13 + $0x8] sm:$0xff] %vm301_vm0, %v1198_v40 }
 0x252   : > { %1330 = vmatmul.msk.bf16.vlgmr.msra.gmra.mxu2 %vm1123_vm6, %v1083_v47  ;;  %v1048_v38 = vpop.f32.mrf.mxu3 }
 0x253   : > { %v1049_v3 = vadd.f32 %v2052_v20, %v1048_v38 }
 0x254   : > { %v1162_v5 = vpop.f32.mrf.mxu1 }
 0x255   : > { %v1163_v32 = vadd.f32 %v2198_v17, %v1162_v5  ;;  %v1073_v57 = vmax.f32 %v1049_v3, 0.0 }
 0x257   : > { %v1199_v34 = vadd.f32 %v1163_v32, %v1501_v0 }
 0x259   : > { %1215 = vst.msk [vmem:[%s2206_s13 + $0x10] sm:$0xff] %vm301_vm0, %v1199_v34 }
 0x25a   : > { %v1050_v21 = vpop.f32.mrf.mxu3 }
 0x25b   : > { %v1051_v23 = vadd.f32 %v2052_v20, %v1050_v21 }
 0x25c   : > { %v1164_v7 = vpop.f32.mrf.mxu1 }
 0x25d   : > { %v1074_v62 = vmax.f32 %v1051_v23, 0.0  ;;  %v1165_v25 = vadd.f32 %v2198_v17, %v1164_v7 }
 0x25f   : > { %v1084_v42 = vpack.c.bf16 %v1074_v62, %v1073_v57  ;;  %v1200_v36 = vadd.f32 %v1165_v25, %v1513_v6 }
 0x261   : > { %1216 = vst.msk [vmem:[%s2206_s13 + $0x18] sm:$0xff] %vm301_vm0, %v1200_v36 }
 0x262   : > { %1331 = vmatmul.msk.bf16.gmra.mxu2 %vm1123_vm6, %v1084_v42  ;;  %v1053_v0 = vpop.f32.mrf.mxu3 }
 0x263   : > { %v1054_v1 = vadd.f32 %v2052_v20, %v1053_v0 }
 0x264   : > { %v1167_v30 = vpop.f32.mrf.mxu1 }
 0x265   : > { %v1168_v37 = vadd.f32 %v2198_v17, %v1167_v30  ;;  %v1075_v6 = vmax.f32 %v1054_v1, 0.0 }
 0x267   : > { %v1201_v11 = vadd.f32 %v1168_v37, %v1508_v4 }
 0x269   : > { %1217 = vst.msk [vmem:[%s2206_s13 + $0x20] sm:$0xff] %vm301_vm0, %v1201_v11 }
 0x26a   : > { %v1055_v15 = vpop.f32.mrf.mxu3 }
 0x26b   : > { %v1056_v59 = vadd.f32 %v2052_v20, %v1055_v15 }
 0x26c   : > { %v1169_v24 = vpop.f32.mrf.mxu1 }
 0x26d   : > { %v1076_v35 = vmax.f32 %v1056_v59, 0.0  ;;  %v1170_v43 = vadd.f32 %v2198_v17, %v1169_v24 }
 0x26f   : > { %v1085_v53 = vpack.c.bf16 %v1076_v35, %v1075_v6  ;;  %v1202_v60 = vadd.f32 %v1170_v43, %v1519_v8 }
 0x271   : > { %1218 = vst.msk [vmem:[%s2206_s13 + $0x28] sm:$0xff] %vm301_vm0, %v1202_v60 }
 0x272   : > { %1332 = vmatmul.msk.bf16.gmra.mxu2 %vm1123_vm6, %v1085_v53  ;;  %v1058_v4 = vpop.f32.mrf.mxu3 }
 0x273   : > { %v1059_v22 = vadd.f32 %v2052_v20, %v1058_v4 }
 0x275   : > { %v1077_v18 = vmax.f32 %v1059_v22, 0.0 }
 0x27a   : > { %v1060_v26 = vpop.f32.mrf.mxu3 }
 0x27b   : > { %v1061_v52 = vadd.f32 %v2052_v20, %v1060_v26 }
 0x27d   : > { %v1078_v16 = vmax.f32 %v1061_v52, 0.0 }
 0x27f   : > { %v1086_v50 = vpack.c.bf16 %v1078_v16, %v1077_v18 }
 0x282   : > { %1333 = vmatmul.msk.bf16.gmra.mxu2 %vm1123_vm6, %v1086_v50 }
 0x2bc   : > { %v1172_v28 = vpop.f32.mrf.mxu1 }
 0x2bd   : > { %v1173_v8 = vadd.f32 %v2198_v17, %v1172_v28 }
 0x2bf   : > { %v1203_v39 = vadd.f32 %v1173_v8, %v1528_v12 }
 0x2c1   : > { %1219 = vst.msk [vmem:[%s2206_s13 + $0x30] sm:$0xff] %vm301_vm0, %v1203_v39 }
 0x2c4   : > { %v1174_v41 = vpop.f32.mrf.mxu1 }
 0x2c5   : > { %v1175_v46 = vadd.f32 %v2198_v17, %v1174_v41 }
 0x2c7   : > { %v1204_v20 = vadd.f32 %v1175_v46, %v1544_v33 }
 0x2c9   : > { %1220 = vst.msk [vmem:[%s2206_s13 + $0x38] sm:$0xff] %vm301_vm0, %v1204_v20 }
 0x2d5   : > { %v1177_v54 = vpop.f32.mrf.mxu2 }
 0x2d6   : > { %v1178_v49 = vadd.f32 %v2198_v17, %v1177_v54 }
 0x2d8   : > { %v1205_v31 = vadd.f32 %v1178_v49, %v1568_v45 }
 0x2da   : > { %1221 = vst.msk [vmem:[%s2206_s13 + $0x40] sm:$0xff] %vm301_vm0, %v1205_v31 }
 0x2dd   : > { %v1179_v12 = vpop.f32.mrf.mxu2 }
 0x2de   : > { %v1180_v19 = vadd.f32 %v2198_v17, %v1179_v12 }
 0x2e0   : > { %v1206_v61 = vadd.f32 %v1180_v19, %v1588_v56 }
 0x2e2   : > { %1222 = vst.msk [vmem:[%s2206_s13 + $0x48] sm:$0xff] %vm301_vm0, %v1206_v61 }
 0x2e5   : > { %v1182_v33 = vpop.f32.mrf.mxu2 }
 0x2e6   : > { %v1183_v29 = vadd.f32 %v2198_v17, %v1182_v33 }
 0x2e8   : > { %v1207_v27 = vadd.f32 %v1183_v29, %v1565_v44 }
 0x2ea   : > { %1223 = vst.msk [vmem:[%s2206_s13 + $0x50] sm:$0xff] %vm301_vm0, %v1207_v27 }
 0x2ed   : > { %v1184_v45 = vpop.f32.mrf.mxu2 }
 0x2ee   : > { %v1185_v2 = vadd.f32 %v2198_v17, %v1184_v45 }
 0x2f0   : > { %v1208_v58 = vadd.f32 %v1185_v2, %v1585_v55 }
 0x2f2   : > { %1224 = vst.msk [vmem:[%s2206_s13 + $0x58] sm:$0xff] %vm301_vm0, %v1208_v58 }
 0x2f5   : > { %v1187_v56 = vpop.f32.mrf.mxu2 }
 0x2f6   : > { %v1188_v51 = vadd.f32 %v2198_v17, %v1187_v56 }
 0x2f8   : > { %v1209_v48 = vadd.f32 %v1188_v51, %v1604_v63 }
 0x2fa   : > { %1225 = vst.msk [vmem:[%s2206_s13 + $0x60] sm:$0xff] %vm301_vm0, %v1209_v48 }
 0x2fd   : > { %v1189_v13 = vpop.f32.mrf.mxu2 }
 0x2fe   : > { %v1190_v44 = vadd.f32 %v2198_v17, %v1189_v13 }
 0x300   : > { %v1210_v47 = vadd.f32 %v1190_v44, %v1616_v10 }
 0x302   : > { %1226 = vst.msk [vmem:[%s2206_s13 + $0x68] sm:$0xff] %vm301_vm0, %v1210_v47 }
 0x305   : > { %v1192_v40 = vpop.f32.mrf.mxu2 }
 0x306   : > { %v1193_v55 = vadd.f32 %v2198_v17, %v1192_v40 }
 0x308   : > { %v1211_v38 = vadd.f32 %v1193_v55, %v1623_v14 }
 0x30a   : > { %1227 = vst.msk [vmem:[%s2206_s13 + $0x70] sm:$0xff] %vm301_vm0, %v1211_v38 }
 0x30d   : > { %v1194_v5 = vpop.f32.mrf.mxu2 }
 0x30e   : > { %v1195_v32 = vadd.f32 %v2198_v17, %v1194_v5 }
 0x310   : > { %v1212_v63 = vadd.f32 %v1195_v32, %v1613_v9 }
 0x312   : > { %1228 = vst.msk [vmem:[%s2206_s13 + $0x78] sm:$0xff] %vm301_vm0, %v1212_v63 }
 0x313 PF: > { %s17_s24 = sadd.s32 1, %s1438_s24  }
 0x314   : > { %p14_p4 = scmp.ge.s32.totalorder %s17_s24, 4  }
 0x316   :  { %16 = sbr.rel (!%p14_p4) target bundleno = 1 (0x1), region = 78 }

// kernel: decoder_block_forward.3
= control target key start
LH: loop header
LB: loop body
LE: loop exit
PB: predicated region body
PF: predicated region fallthrough
CT: control target
= control target key end

     0   :  { %s2210_s24 = smov 0   ;;  %s3086_s0 = inlined_call_operand.vmem [shape: f32[4,64,32], index: 0, kind: input, shape index: {}, may-alias: {0,7}]   ;;  %s3087_s1 = inlined_call_operand.vmem [shape: f32[1,32], index: 1, kind: input, shape index: {}]   ;;  %s3088_s2 = inlined_call_operand.vmem [shape: f32[1,32], index: 2, kind: input, shape index: {}]   ;;  %s3089_s3 = inlined_call_operand.vmem [shape: bf16[32,96], index: 3, kind: input, shape index: {}]   ;;  %s3090_s4 = inlined_call_operand.vmem [shape: f32[1,96], index: 4, kind: input, shape index: {}]   ;;  %s3091_s5 = inlined_call_operand.vmem [shape: bf16[32,32], index: 5, kind: input, shape index: {}]   ;;  %s3092_s6 = inlined_call_operand.vmem [shape: f32[1,32], index: 6, kind: input, shape index: {}]   ;;  %s3093_s7 = inlined_call_operand.vmem [shape: f32[4,64,32], index: 7, kind: output, shape index: {}, may-alias: {0,7}]  }
   0x1 LB: > { %s1882_s25 = sadd.s32 4294967295, %s2155_s24   ;;  %p1886_p0 = scmp.ge.s32.totalorder %s2155_s24, 1  ;;  %s2155_s24 = sphi %s2210_s24, %s17_s24  }
   0x2   : > { %p237_p1 = scmp.lt.s32.totalorder %s2155_s24, 5 }
   0x4   : > { %p238_p2 = pnand %p1886_p0, %p237_p1 }
   0x5   : > { %p269_p3 = scmp.lt.s32.totalorder (!%p238_p2), %s1882_s25, 3  ;;  %s2159_s17 = smov (!%p238_p2), 96  }
   0x6   : > { %241 = sbr.rel (%p238_p2) target bundleno = 2164 (0x874), region = 48  ;;  %s2160_s18 = smov (!%p238_p2), 64  }
   0x7   : > { %s2161_s19 = smov (!%p238_p2), 88   ;;  %s2162_s20 = smov (!%p238_p2), 120  }
   0x8   : > { %s2163_s21 = smov (!%p238_p2), 80   ;;  %s2164_s22 = smov (!%p238_p2), 72  }
   0x9   : > { %s2165_s23 = smov (!%p238_p2), 104   ;;  %s2166_s27 = smov (!%p238_p2), 112  }
   0xa   : > { %s2167_s8 = smov (!%p238_p2), 56   ;;  %s2168_s9 = smov (!%p238_p2), 48  }
   0xb   : > { %s3103_s25 = smov (!%p269_p3, %s1882_s25), 3  ;;  %vm290_vm0 = vcmask 261120   ;;  %v2157_v16 = vmov 32.0   ;;  %v2158_v63 = vmov 31.0   ;;  %s2169_s10 = smov 40  }
   0xc   : > { %s1953_s26 = sshll.u32 %s3103_s25, 6  ;;  %1984 = vrcp.f32 %v2157_v16 }
   0xd   : > { %s2226_s29 = scalar_lea.vmem %s3086_s0, %s1953_s26  ;;  %1986 = vrcp.f32 %v2158_v63 }
   0xe   : > { %v2229_v0 = vld [vmem:[%s2226_s29 + $0x30] sm:$0xff]  ;;  %v2232_v1 = vld [vmem:[%s2226_s29 + $0x20] sm:$0xff]  ;;  %v2241_v6 = vld [vmem:[%s2226_s29 + $0x38] sm:$0xff] }
   0xf   : > { %v280_v2 = vld [vmem:[%s2226_s29] sm:$0xff]  ;;  %v309_v3 = vsel %vm290_vm0, %v2229_v0, 0.0  ;;  %v303_v4 = vsel %vm290_vm0, %v2232_v1, 0.0  ;;  %v2244_v7 = vld [vmem:[%s2226_s29 + $0x28] sm:$0xff]  ;;  %v312_v9 = vsel %vm290_vm0, %v2241_v6, 0.0  ;;  %v2256_v12 = vld [vmem:[%s2226_s29 + $0x10] sm:$0xff] }
  0x10   : > { %v291_v5 = vsel %vm290_vm0, %v280_v2, 0.0  ;;  %310 = vadd.xlane.f32.xlu1 %v309_v3  ;;  %304 = vadd.xlane.f32.xlu0 %v303_v4  ;;  %v2247_v8 = vld [vmem:[%s2226_s29 + $0x8] sm:$0xff]  ;;  %v306_v10 = vsel %vm290_vm0, %v2244_v7, 0.0  ;;  %v2259_v13 = vld [vmem:[%s2226_s29 + $0x18] sm:$0xff]  ;;  %v297_v14 = vsel %vm290_vm0, %v2256_v12, 0.0 }
  0x11   : > { %292 = vadd.xlane.f32.xlu2 %v291_v5  ;;  %v294_v11 = vsel %vm290_vm0, %v2247_v8, 0.0  ;;  %v300_v15 = vsel %vm290_vm0, %v2259_v13, 0.0 }
  0x12   : > { %v1985_v17 = vpop.eup %1984 }
  0x13   : > { %v316_v18 = vmul.f32 32.0, %v1985_v17  ;;  %vm320_vm1 = vweird.f32 %v1985_v17 }
  0x15   : > { %v317_v19 = vsub.f32 1.0, %v316_v18 }
  0x17   : > { %v318_v20 = vmul.f32 %v1985_v17, %v317_v19 }
  0x18   : > { %313 = vadd.xlane.f32.xlu1 %v312_v9  ;;  %307 = vadd.xlane.f32.xlu0 %v306_v10 }
  0x19   : > { %295 = vadd.xlane.f32.xlu2 %v294_v11  ;;  %v319_v21 = vadd.f32 %v1985_v17, %v318_v20 }
  0x1b   : > { %v321_v22 = vsel %vm320_vm1, %v1985_v17, %v319_v21 }
  0x20   : > { %298 = vadd.xlane.f32.xlu0 %v297_v14  ;;  %301 = vadd.xlane.f32.xlu1 %v300_v15 }
  0x83   : > { %v311_v23 = vpop.xlane.xlu1 %310  ;;  %v305_v24 = vpop.xlane.xlu0 %304 }
  0x84   : > { %v328_v25 = vmul.f32 %v321_v22, %v311_v23  ;;  %v326_v26 = vmul.f32 %v321_v22, %v305_v24  ;;  %v293_v27 = vpop.xlane.xlu2 %292 }
  0x85   : > { %v322_v36 = vmul.f32 %v321_v22, %v293_v27 }
  0x86   : > { %v2266_v28 = vsub.f32 %v2229_v0, %v328_v25  ;;  %v2269_v29 = vsub.f32 %v2232_v1, %v326_v26 }
  0x87   : > { %v2286_v44 = vsub.f32 %v280_v2, %v322_v36  ;;  %v1987_v2 = vpop.eup %1986 }
  0x88   : > { %v344_v30 = vmul.f32 %v2266_v28, %v2266_v28  ;;  %v342_v31 = vmul.f32 %v2269_v29, %v2269_v29  ;;  %v371_v3 = vmul.f32 31.0, %v1987_v2  ;;  %vm375_vm2 = vweird.f32 %v1987_v2 }
  0x89   : > { %v338_v55 = vmul.f32 %v2286_v44, %v2286_v44 }
  0x8a   : > { %v364_v32 = vsel %vm290_vm0, %v344_v30, 0.0  ;;  %v358_v33 = vsel %vm290_vm0, %v342_v31, 0.0  ;;  %v372_v4 = vsub.f32 1.0, %v371_v3  ;;  %v2339_v31 = vld [vmem:[%s3087_s1] ss:$0 sm:$0xff] }
  0x8b   : > { %v314_v34 = vpop.xlane.xlu1 %313  ;;  %v308_v35 = vpop.xlane.xlu0 %307  ;;  %365 = vadd.xlane.f32.xlu1 %v364_v32  ;;  %359 = vadd.xlane.f32.xlu2 %v358_v33  ;;  %v346_v59 = vsel %vm290_vm0, %v338_v55, 0.0  ;;  %v1956_v33 = vld [vmem:[%s3089_s3 + $0x8] sm:$0xff] }
  0x8c   : > { %v329_v37 = vmul.f32 %v321_v22, %v314_v34  ;;  %v327_v38 = vmul.f32 %v321_v22, %v308_v35  ;;  %v296_v39 = vpop.xlane.xlu2 %295  ;;  %v373_v5 = vmul.f32 %v1987_v2, %v372_v4  ;;  %1957 = vmatpush.bf16.msra.mxu2 %v1956_v33  ;;  %673 = vmatpush.bf16.msra.mxu0 %v1956_v33 }
  0x8d   : > { %v323_v40 = vmul.f32 %v321_v22, %v296_v39 }
  0x8e   : > { %v2278_v41 = vsub.f32 %v2241_v6, %v329_v37  ;;  %v2281_v42 = vsub.f32 %v2244_v7, %v327_v38  ;;  %v374_v9 = vadd.f32 %v1987_v2, %v373_v5  ;;  %v1955_v37 = vld [vmem:[%s3089_s3] sm:$0xff] }
  0x8f   : > { %v2284_v43 = vsub.f32 %v2247_v8, %v323_v40 }
  0x90   : > { %v343_v45 = vmul.f32 %v2281_v42, %v2281_v42  ;;  %v345_v46 = vmul.f32 %v2278_v41, %v2278_v41  ;;  %v2312_v10 = vsel %vm375_vm2, %v1987_v2, %v374_v9  ;;  %1958 = vmatpush.bf16.msra.mxu2 %v1955_v37  ;;  %674 = vmatpush.bf16.msra.mxu0 %v1955_v37 }
  0x91   : > { %v339_v47 = vmul.f32 %v2284_v43, %v2284_v43 }
  0x92   : > { %v361_v48 = vsel %vm290_vm0, %v343_v45, 0.0  ;;  %v367_v49 = vsel %vm290_vm0, %v345_v46, 0.0 }
  0x93   : > { %362 = vadd.xlane.f32.xlu0 %v361_v48  ;;  %v299_v50 = vpop.xlane.xlu0 %298  ;;  %368 = vadd.xlane.f32.xlu2 %v367_v49  ;;  %v349_v51 = vsel %vm290_vm0, %v339_v47, 0.0  ;;  %v302_v52 = vpop.xlane.xlu1 %301  ;;  %v2355_v48 = vmul.f32 %v2339_v31, %v2269_v29  ;;  %v2359_v49 = vmul.f32 %v2339_v31, %v2286_v44  ;;  %v2370_v29 = vmul.f32 %v2339_v31, %v2284_v43 }
  0x94   : > { %v324_v53 = vmul.f32 %v321_v22, %v299_v50  ;;  %350 = vadd.xlane.f32.xlu1 %v349_v51  ;;  %v325_v54 = vmul.f32 %v321_v22, %v302_v52  ;;  %v2364_v52 = vmul.f32 %v2339_v31, %v2281_v42 }
  0x96   : > { %v2300_v56 = vsub.f32 %v2256_v12, %v324_v53  ;;  %v2303_v57 = vsub.f32 %v2259_v13, %v325_v54 }
  0x98   : > { %v340_v58 = vmul.f32 %v2300_v56, %v2300_v56  ;;  %v341_v61 = vmul.f32 %v2303_v57, %v2303_v57 }
  0x9a   : > { %v352_v60 = vsel %vm290_vm0, %v340_v58, 0.0  ;;  %v355_v62 = vsel %vm290_vm0, %v341_v61, 0.0 }
  0x9b   : > { %353 = vadd.xlane.f32.xlu2 %v352_v60  ;;  %347 = vadd.xlane.f32.xlu0 %v346_v59 }
  0xa3   : > { %356 = vadd.xlane.f32.xlu0 %v355_v62 }
  0xfe   : > { %v366_v11 = vpop.xlane.xlu1 %365  ;;  %v360_v14 = vpop.xlane.xlu2 %359 }
  0xff   : > { %v2315_v15 = vmul.f32 %v2312_v10, %v366_v11  ;;  %v2318_v16 = vmul.f32 %v2312_v10, %v360_v14 }
 0x101   : > { %1988 = vrsqrt.f32 %v2315_v15  ;;  %vm475_vm3 = vcmp.eq.f32.partialorder %v2315_v15, inf  ;;  %vm451_vm4 = vcmp.eq.f32.partialorder %v2318_v16, inf  ;;  %v454_v60 = vand.u32 2147483648, %v2318_v16 }
 0x102   : > { %1990 = vrsqrt.f32 %v2318_v16  ;;  %v478_v62 = vand.u32 2147483648, %v2315_v15  ;;  %vm453_vm5 = vcmp.eq.f32.partialorder %v2318_v16, 0.0  ;;  %vm477_vm6 = vcmp.eq.f32.partialorder %v2315_v15, 0.0 }
 0x106   : > { %v363_v17 = vpop.xlane.xlu0 %362  ;;  %v369_v18 = vpop.xlane.xlu2 %368 }
 0x107   : > { %v1989_v19 = vpop.eup %1988  ;;  %v2323_v20 = vmul.f32 %v2312_v10, %v363_v17  ;;  %v351_v21 = vpop.xlane.xlu1 %350  ;;  %v2326_v22 = vmul.f32 %v2312_v10, %v369_v18 }
 0x108   : > { %v1991_v23 = vpop.eup %1990  ;;  %v469_v24 = vmul.f32 %v1989_v19, %v2315_v15  ;;  %v2330_v25 = vmul.f32 %v2312_v10, %v351_v21 }
 0x109   : > { %v445_v26 = vmul.f32 %v1991_v23, %v2318_v16  ;;  %1992 = vrsqrt.f32 %v2323_v20  ;;  %vm463_vm7 = vcmp.eq.f32.partialorder %v2323_v20, inf  ;;  %vm465_vm8 = vcmp.eq.f32.partialorder %v2323_v20, 0.0 }
 0x10a   : > { %v470_v27 = vmul.f32 %v1989_v19, %v469_v24  ;;  %1994 = vrsqrt.f32 %v2330_v25  ;;  %vm415_vm9 = vcmp.eq.f32.partialorder %v2330_v25, inf  ;;  %vm417_vm10 = vcmp.eq.f32.partialorder %v2330_v25, 0.0 }
 0x10b   : > { %v446_v30 = vmul.f32 %v1991_v23, %v445_v26  ;;  %1996 = vrsqrt.f32 %v2326_v22  ;;  %v466_v26 = vand.u32 2147483648, %v2323_v20  ;;  %vm487_vm11 = vcmp.eq.f32.partialorder %v2326_v22, inf }
 0x10c   : > { %v471_v32 = vmul.f32 0.5, %v470_v27  ;;  %vm489_vm12 = vcmp.eq.f32.partialorder %v2326_v22, 0.0 }
 0x10d   : > { %v447_v34 = vmul.f32 0.5, %v446_v30 }
 0x10e   : > { %v348_v35 = vpop.xlane.xlu0 %347  ;;  %v354_v36 = vpop.xlane.xlu2 %353  ;;  %v472_v39 = vsub.f32 1.5, %v471_v32 }
 0x10f   : > { %v1993_v38 = vpop.eup %1992  ;;  %v448_v40 = vsub.f32 1.5, %v447_v34  ;;  %v2348_v45 = vmul.f32 %v2312_v10, %v348_v35  ;;  %v2351_v46 = vmul.f32 %v2312_v10, %v354_v36  ;;  %v418_v35 = vand.u32 2147483648, %v2330_v25 }
 0x110   : > { %v1995_v47 = vpop.eup %1994  ;;  %v457_v50 = vmul.f32 %v1993_v38, %v2323_v20  ;;  %v473_v58 = vmul.f32 %v1989_v19, %v472_v39 }
 0x111   : > { %v1997_v51 = vpop.eup %1996  ;;  %v449_v53 = vmul.f32 %v1991_v23, %v448_v40  ;;  %v409_v54 = vmul.f32 %v1995_v47, %v2330_v25  ;;  %1998 = vrsqrt.f32 %v2348_v45  ;;  %vm403_vm13 = vcmp.eq.f32.partialorder %v2348_v45, inf }
 0x112   : > { %v458_v44 = vmul.f32 %v1993_v38, %v457_v50  ;;  %v481_v55 = vmul.f32 %v1997_v51, %v2326_v22  ;;  %2000 = vrsqrt.f32 %v2351_v46  ;;  %v474_v14 = vmul.f32 %v473_v58, %v2315_v15 }
 0x113   : > { %v450_v42 = vmul.f32 %v449_v53, %v2318_v16  ;;  %v410_v59 = vmul.f32 %v1995_v47, %v409_v54  ;;  %vm405_vm14 = vcmp.eq.f32.partialorder %v2348_v45, 0.0  ;;  %vm427_vm15 = vcmp.eq.f32.partialorder %v2351_v46, inf }
 0x114   : > { %v459_v61 = vmul.f32 0.5, %v458_v44  ;;  %v482_v43 = vmul.f32 %v1997_v51, %v481_v55  ;;  %v476_v33 = vsel %vm475_vm3, %v2315_v15, %v474_v14  ;;  %v406_v55 = vand.u32 2147483648, %v2348_v45 }
 0x115   : > { %v452_v63 = vsel %vm451_vm4, %v2318_v16, %v450_v42  ;;  %v411_v2 = vmul.f32 0.5, %v410_v59  ;;  %vm429_vm4 = vcmp.eq.f32.partialorder %v2351_v46, 0.0 }
 0x116   : > { %v460_v3 = vsub.f32 1.5, %v459_v61  ;;  %v483_v4 = vmul.f32 0.5, %v482_v43  ;;  %v357_v5 = vpop.xlane.xlu0 %356  ;;  %v455_v9 = vsel %vm453_vm5, %v454_v60, %v452_v63  ;;  %v430_v63 = vand.u32 2147483648, %v2351_v46 }
 0x117   : > { %v1999_v11 = vpop.eup %1998  ;;  %v412_v17 = vsub.f32 1.5, %v411_v2  ;;  %v2385_v18 = vmul.f32 %v2312_v10, %v357_v5  ;;  %v2387_v19 = vadd.f32 1e-06, %v455_v9 }
 0x118   : > { %v461_v21 = vmul.f32 %v1993_v38, %v460_v3  ;;  %v484_v16 = vsub.f32 1.5, %v483_v4  ;;  %v397_v23 = vmul.f32 %v1999_v11, %v2348_v45  ;;  %v2001_v24 = vpop.eup %2000 }
 0x119   : > { %v413_v27 = vmul.f32 %v1995_v47, %v412_v17  ;;  %2002 = vrsqrt.f32 %v2385_v18  ;;  %v421_v32 = vmul.f32 %v2001_v24, %v2351_v46  ;;  %v490_v47 = vand.u32 2147483648, %v2326_v22 }
 0x11a   : > { %v462_v30 = vmul.f32 %v461_v21, %v2323_v20  ;;  %v398_v10 = vmul.f32 %v1999_v11, %v397_v23  ;;  %2004 = vrcp.f32 %v2387_v19  ;;  %v485_v37 = vmul.f32 %v1997_v51, %v484_v16 }
 0x11b   : > { %v414_v34 = vmul.f32 %v413_v27, %v2330_v25  ;;  %v422_v39 = vmul.f32 %v2001_v24, %v421_v32  ;;  %v569_v2 = vand.u32 2147483647, %v2387_v19  ;;  %v442_v5 = vand.u32 2147483648, %v2385_v18 }
 0x11c   : > { %v464_v36 = vsel %vm463_vm7, %v2323_v20, %v462_v30  ;;  %v399_v38 = vmul.f32 0.5, %v398_v10  ;;  %v479_v20 = vsel %vm477_vm6, %v478_v62, %v476_v33  ;;  %v486_v42 = vmul.f32 %v485_v37, %v2326_v22 }
 0x11d   : > { %v416_v40 = vsel %vm415_vm9, %v2330_v25, %v414_v34  ;;  %v467_v50 = vsel %vm465_vm8, %v466_v26, %v464_v36  ;;  %v423_v54 = vmul.f32 0.5, %v422_v39  ;;  %v2431_v4 = vadd.f32 1e-06, %v479_v20 }
 0x11e   : > { %v400_v53 = vsub.f32 1.5, %v399_v38  ;;  %v2413_v44 = vadd.f32 1e-06, %v467_v50  ;;  %v419_v58 = vsel %vm417_vm10, %v418_v35, %v416_v40  ;;  %vm565_vm1 = vweird.f32 %v2387_v19 }
 0x11f   : > { %v2003_v51 = vpop.eup %2002  ;;  %v424_v43 = vsub.f32 1.5, %v423_v54  ;;  %v2426_v3 = vadd.f32 1e-06, %v419_v58  ;;  %v571_v9 = vand.u32 2147483648, %v2387_v19  ;;  %vm439_vm2 = vcmp.eq.f32.partialorder %v2385_v18, inf }
 0x120   : > { %v401_v59 = vmul.f32 %v1999_v11, %v400_v53  ;;  %v433_v60 = vmul.f32 %v2003_v51, %v2385_v18  ;;  %2006 = vrcp.f32 %v2413_v44  ;;  %v2005_v61 = vpop.eup %2004  ;;  %v488_v11 = vsel %vm487_vm11, %v2326_v22, %v486_v42 }
 0x121   : > { %v561_v62 = vmul.f32 %v2005_v61, %v2387_v19  ;;  %2008 = vrcp.f32 %v2426_v3  ;;  %v425_v16 = vmul.f32 %v2001_v24, %v424_v43  ;;  %vm2444_vm3 = vcmp.eq.f32.partialorder %v569_v2, 8.507059e+37  ;;  %v2485_v43 = vld [vmem:[%s3088_s2] ss:$0 sm:$0xff] }
 0x122   : > { %v402_v25 = vmul.f32 %v401_v59, %v2348_v45  ;;  %v434_v15 = vmul.f32 %v2003_v51, %v433_v60  ;;  %v584_v26 = vand.u32 2147483647, %v2413_v44  ;;  %vm566_vm5 = vweird.f32 %v2005_v61 }
 0x123   : > { %v562_v21 = vsub.f32 1.0, %v561_v62  ;;  %vm441_vm6 = vcmp.eq.f32.partialorder %v2385_v18, 0.0  ;;  %v572_v24 = vor.u32 1.1754944e-38, %v571_v9  ;;  %vm580_vm7 = vweird.f32 %v2413_v44  ;;  %vm567_vm8 = vmor %vm565_vm1, %vm566_vm5 }
 0x124   : > { %v404_v14 = vsel %vm403_vm13, %v2348_v45, %v402_v25  ;;  %v435_v17 = vmul.f32 0.5, %v434_v15  ;;  %v491_v35 = vsel %vm489_vm12, %v490_v47, %v488_v11  ;;  %v586_v37 = vand.u32 2147483648, %v2413_v44 }
 0x125   : > { %v407_v27 = vsel %vm405_vm14, %v406_v55, %v404_v14  ;;  %v563_v32 = vmul.f32 %v2005_v61, %v562_v21  ;;  %v426_v39 = vmul.f32 %v425_v16, %v2351_v46  ;;  %vm2464_vm9 = vcmp.eq.f32.partialorder %v584_v26, 8.507059e+37 }
 0x126   : > { %v2007_v30 = vpop.eup %2006  ;;  %v436_v10 = vsub.f32 1.5, %v435_v17  ;;  %v2452_v33 = vadd.f32 1e-06, %v407_v27  ;;  %v524_v22 = vand.u32 2147483647, %v2426_v3  ;;  %v526_v54 = vand.u32 2147483648, %v2426_v3 }
 0x127   : > { %v576_v34 = vmul.f32 %v2007_v30, %v2413_v44  ;;  %v564_v36 = vadd.f32 %v2005_v61, %v563_v32  ;;  %v2009_v38 = vpop.eup %2008  ;;  %vm581_vm10 = vweird.f32 %v2007_v30  ;;  %v587_v20 = vor.u32 1.1754944e-38, %v586_v37 }
 0x128   : > { %v437_v45 = vmul.f32 %v2003_v51, %v436_v10  ;;  %2010 = vrcp.f32 %v2452_v33  ;;  %v516_v53 = vmul.f32 %v2009_v38, %v2426_v3  ;;  %v2471_v51 = vadd.f32 1e-06, %v491_v35  ;;  %vm582_vm13 = vmor %vm580_vm7, %vm581_vm10 }
 0x129   : > { %v577_v40 = vsub.f32 1.0, %v576_v34  ;;  %v568_v47 = vsel %vm567_vm8, %v2005_v61, %v564_v36  ;;  %vm520_vm11 = vweird.f32 %v2426_v3  ;;  %2012 = vrcp.f32 %v2431_v4 }
 0x12a   : > { %v438_v55 = vmul.f32 %v437_v45, %v2385_v18  ;;  %v573_v19 = vsel %vm2444_vm3, %v572_v24, %v568_v47  ;;  %v517_v42 = vsub.f32 1.0, %v516_v53  ;;  %v428_v59 = vsel %vm427_vm15, %v2351_v46, %v426_v39 }
 0x12b   : > { %v578_v58 = vmul.f32 %v2007_v30, %v577_v40  ;;  %v574_v60 = vmul.f32 %v573_v19, %v2355_v48  ;;  %vm2487_vm12 = vcmp.eq.f32.partialorder %v524_v22, 8.507059e+37  ;;  %vm521_vm14 = vweird.f32 %v2009_v38 }
 0x12c   : > { %v518_v15 = vmul.f32 %v2009_v38, %v517_v42  ;;  %v527_v62 = vor.u32 1.1754944e-38, %v526_v54  ;;  %2014 = vrcp.f32 %v2471_v51  ;;  %v440_v48 = vsel %vm439_vm2, %v2385_v18, %v438_v55  ;;  %vm522_vm1 = vmor %vm520_vm11, %vm521_vm14 }
 0x12d   : > { %v579_v61 = vadd.f32 %v2007_v30, %v578_v58  ;;  %vm505_vm15 = vweird.f32 %v2452_v33  ;;  %v509_v44 = vand.u32 2147483647, %v2452_v33  ;;  %v511_v17 = vand.u32 2147483648, %v2452_v33 }
 0x12e   : > { %v2011_v25 = vpop.eup %2010  ;;  %v519_v21 = vadd.f32 %v2009_v38, %v518_v15  ;;  %v627_v23 = vadd.f32 %v2485_v43, %v574_v60  ;;  %v431_v27 = vsel %vm429_vm4, %v430_v63, %v428_v59  ;;  %v443_v32 = vsel %vm441_vm6, %v442_v5, %v440_v48 }
 0x12f   : > { %v583_v9 = vsel %vm582_vm13, %v2007_v30, %v579_v61  ;;  %v501_v11 = vmul.f32 %v2011_v25, %v2452_v33  ;;  %v2013_v30 = vpop.eup %2012  ;;  %vm506_vm2 = vweird.f32 %v2011_v25  ;;  %vm2521_vm3 = vcmp.eq.f32.partialorder %v509_v44, 8.507059e+37 }
 0x130   : > { %v588_v14 = vsel %vm2464_vm9, %v587_v20, %v583_v9  ;;  %v523_v10 = vsel %vm522_vm1, %v2009_v38, %v519_v21  ;;  %v591_v35 = vmul.f32 %v2013_v30, %v2431_v4  ;;  %v512_v45 = vor.u32 1.1754944e-38, %v511_v17  ;;  %vm507_vm5 = vmor %vm505_vm15, %vm506_vm2 }
 0x131   : > { %v589_v16 = vmul.f32 %v588_v14, %v2364_v52  ;;  %v502_v26 = vsub.f32 1.0, %v501_v11  ;;  %v2515_v52 = vadd.f32 1e-06, %v431_v27  ;;  %v528_v3 = vsel %vm2487_vm12, %v527_v62, %v523_v10 }
 0x132   : > { %v2015_v46 = vpop.eup %2014  ;;  %vm595_vm4 = vweird.f32 %v2431_v4  ;;  %v2526_v18 = vadd.f32 1e-06, %v443_v32  ;;  %v592_v37 = vsub.f32 1.0, %v591_v35  ;;  %v529_v39 = vmul.f32 %v528_v3, %v2370_v29 }
 0x133   : > { %v628_v24 = vadd.f32 %v2485_v43, %v589_v16  ;;  %v503_v34 = vmul.f32 %v2011_v25, %v502_v26  ;;  %v606_v38 = vmul.f32 %v2015_v46, %v2471_v51  ;;  %v599_v40 = vand.u32 2147483647, %v2431_v4 }
 0x134   : > { %v601_v50 = vand.u32 2147483648, %v2431_v4  ;;  %2016 = vrcp.f32 %v2515_v52  ;;  %v593_v47 = vmul.f32 %v2013_v30, %v592_v37  ;;  %vm596_vm6 = vweird.f32 %v2013_v30 }
 0x135   : > { %v633_v5 = vpack.c.bf16 %v628_v24, %v627_v23  ;;  %v504_v36 = vadd.f32 %v2011_v25, %v503_v34  ;;  %v607_v53 = vsub.f32 1.0, %v606_v38  ;;  %v614_v33 = vand.u32 2147483647, %v2471_v51  ;;  %vm597_vm8 = vmor %vm595_vm4, %vm596_vm6 }
 0x136   : > { %v616_v55 = vand.u32 2147483648, %v2471_v51  ;;  %2018 = vrcp.f32 %v2526_v18  ;;  %v594_v19 = vadd.f32 %v2013_v30, %v593_v47  ;;  %vm611_vm7 = vweird.f32 %v2015_v46 }
 0x137   : > { %1901 = vmatmul.msk.bf16.vlgmr.msra.gmra.mxu2 %vm290_vm0, %v633_v5  ;;  %v508_v22 = vsel %vm507_vm5, %v2011_v25, %v504_v36  ;;  %v608_v58 = vmul.f32 %v2015_v46, %v607_v53  ;;  %v394_v20 = vmul.f32 %v2339_v31, %v2266_v28  ;;  %vm600_vm9 = vcmp.eq.f32.partialorder %v599_v40, 8.507059e+37 }
 0x138   : > { %v513_v54 = vsel %vm2521_vm3, %v512_v45, %v508_v22  ;;  %v602_v42 = vor.u32 1.1754944e-38, %v601_v50  ;;  %vm610_vm10 = vweird.f32 %v2471_v51  ;;  %v624_v60 = vadd.f32 %v2485_v43, %v529_v39 }
 0x139   : > { %v514_v29 = vmul.f32 %v513_v54, %v2359_v49  ;;  %v598_v61 = vsel %vm597_vm8, %v2013_v30, %v594_v19  ;;  %v609_v2 = vadd.f32 %v2015_v46, %v608_v58  ;;  %v395_v25 = vmul.f32 %v2339_v31, %v2278_v41  ;;  %vm612_vm11 = vmor %vm610_vm10, %vm611_vm7 }
 0x13a   : > { %v2017_v49 = vpop.eup %2016  ;;  %v603_v15 = vsel %vm600_vm9, %v602_v42, %v598_v61  ;;  %vm615_vm12 = vcmp.eq.f32.partialorder %v614_v33, 8.507059e+37  ;;  %v617_v28 = vor.u32 1.1754944e-38, %v616_v55  ;;  %v541_v14 = vand.u32 2147483648, %v2515_v52 }
 0x13b   : > { %v623_v59 = vadd.f32 %v2485_v43, %v514_v29  ;;  %v604_v62 = vmul.f32 %v603_v15, %v394_v20  ;;  %v613_v48 = vsel %vm612_vm11, %v2015_v46, %v609_v2  ;;  %v531_v9 = vmul.f32 %v2017_v49, %v2515_v52 }
 0x13c   : > { %v2019_v51 = vpop.eup %2018  ;;  %v618_v11 = vsel %vm615_vm12, %v617_v28, %v613_v48  ;;  %vm535_vm13 = vweird.f32 %v2515_v52  ;;  %vm536_vm14 = vweird.f32 %v2017_v49  ;;  %v539_v41 = vand.u32 2147483647, %v2515_v52 }
 0x13d   : > { %v631_v4 = vpack.c.bf16 %v624_v60, %v623_v59  ;;  %v619_v44 = vmul.f32 %v618_v11, %v395_v25  ;;  %v532_v17 = vsub.f32 1.0, %v531_v9  ;;  %v546_v21 = vmul.f32 %v2019_v51, %v2526_v18  ;;  %vm537_vm1 = vmor %vm535_vm13, %vm536_vm14 }
 0x13e   : > { %v629_v16 = vadd.f32 %v2485_v43, %v604_v62  ;;  %v542_v30 = vor.u32 1.1754944e-38, %v541_v14  ;;  %v554_v10 = vand.u32 2147483647, %v2526_v18  ;;  %v556_v32 = vand.u32 2147483648, %v2526_v18 }
 0x13f   : > { %1899 = vmatmul.msk.bf16.vlgmr.msra.gmra.mxu0 %vm290_vm0, %v631_v4  ;;  %v630_v23 = vadd.f32 %v2485_v43, %v619_v44  ;;  %v533_v26 = vmul.f32 %v2017_v49, %v532_v17  ;;  %v547_v27 = vsub.f32 1.0, %v546_v21  ;;  %vm551_vm15 = vweird.f32 %v2019_v51 }
 0x140   : > { %v390_v35 = vmul.f32 %v2339_v31, %v2300_v56  ;;  %vm540_vm2 = vcmp.eq.f32.partialorder %v539_v41, 8.507059e+37  ;;  %vm550_vm3 = vweird.f32 %v2526_v18  ;;  %v557_v5 = vor.u32 1.1754944e-38, %v556_v32 }
 0x141   : > { %v634_v24 = vpack.c.bf16 %v630_v23, %v629_v16  ;;  %v534_v34 = vadd.f32 %v2017_v49, %v533_v26  ;;  %v548_v3 = vmul.f32 %v2019_v51, %v547_v27  ;;  %vm552_vm4 = vmor %vm550_vm3, %vm551_vm15  ;;  %v391_v36 = vmul.f32 %v2339_v31, %v2303_v57  ;;  %v1982_v57 = vld [vmem:[%s3090_s4] ss:$0 sm:$0xff] }
 0x142   : > { %vm555_vm5 = vcmp.eq.f32.partialorder %v554_v10, 8.507059e+37  ;;  %vm716_vm6 = vcmask 64512   ;;  %vm778_vm7 = vcmask 523264   ;;  %vm1166_vm8 = vcmask 1043456  }
 0x143   : > { %v538_v46 = vsel %vm537_vm1, %v2017_v49, %v534_v34  ;;  %v549_v63 = vadd.f32 %v2019_v51, %v548_v3 }
 0x144   : > { %v543_v45 = vsel %vm540_vm2, %v542_v30, %v538_v46 }
 0x145   : > { %v544_v37 = vmul.f32 %v543_v45, %v390_v35  ;;  %v553_v38 = vsel %vm552_vm4, %v2019_v51, %v549_v63 }
 0x146   : > { %v558_v56 = vsel %vm555_vm5, %v557_v5, %v553_v38 }
 0x147   : > { %1902 = vmatmul.msk.bf16.gmra.mxu2 %vm290_vm0, %v634_v24  ;;  %v559_v39 = vmul.f32 %v558_v56, %v391_v36  ;;  %v625_v52 = vadd.f32 %v2485_v43, %v544_v37 }
 0x149   : > { %v626_v40 = vadd.f32 %v2485_v43, %v559_v39 }
 0x14b   : > { %v632_v50 = vpack.c.bf16 %v626_v40, %v625_v52 }
 0x14f   : > { %1900 = vmatmul.msk.bf16.gmra.mxu0 %vm290_vm0, %v632_v50 }
 0x1ba   : > { %v686_v18 = vpop.f32.mrf.mxu2 }
 0x1bb   : > { %v687_v47 = vadd.f32 %v1982_v57, %v686_v18 }
 0x1bc   : > { %v676_v22 = vpop.f32.mrf.mxu0 }
 0x1bd   : > { %v677_v29 = vadd.f32 %v1982_v57, %v676_v22 }
 0x1c2   : > { %v688_v31 = vpop.f32.mrf.mxu2 }
 0x1c3   : > { %v689_v53 = vadd.f32 %v1982_v57, %v688_v31 }
 0x1c4   : > { %v678_v54 = vpop.f32.mrf.mxu0 }
 0x1c5   : > { %v2576_v33 = vpack.c.bf16 %v689_v53, %v687_v47  ;;  %v679_v55 = vadd.f32 %v1982_v57, %v678_v54 }
 0x1c7   : > { %712 = vrot.lane.b32.xlu2 %v2576_v33, %s2159_s17  ;;  %v2579_v58 = vpack.c.bf16 %v679_v55, %v677_v29 }
 0x1ca   : > { %v691_v43 = vpop.f32.mrf.mxu2 }
 0x1cb   : > { %v692_v42 = vadd.f32 %v1982_v57, %v691_v43 }
 0x1cc   : > { %v681_v19 = vpop.f32.mrf.mxu0 }
 0x1cd   : > { %v682_v61 = vadd.f32 %v1982_v57, %v681_v19 }
 0x1cf   : > { %708 = vrot.lane.b32.xlu2 %v2579_v58, %s2159_s17 }
 0x1d2   : > { %v693_v20 = vpop.f32.mrf.mxu2 }
 0x1d3   : > { %v694_v59 = vadd.f32 %v1982_v57, %v693_v20 }
 0x1d4   : > { %v683_v60 = vpop.f32.mrf.mxu0 }
 0x1d5   : > { %v2582_v2 = vpack.c.bf16 %v694_v59, %v692_v42  ;;  %v684_v49 = vadd.f32 %v1982_v57, %v683_v60 }
 0x1d7   : > { %v2584_v25 = vpack.c.bf16 %v684_v49, %v682_v61  ;;  %877 = vrot.lane.b32.xlu2 %v2582_v2, %s2160_s18  ;;  %714 = vrot.lane.b32.xlu1 %v2582_v2, %s2159_s17 }
 0x1d9   : > { %710 = vrot.lane.b32.xlu0 %v2584_v25, %s2159_s17 }
 0x221   : > { %v713_v15 = vpop.permute.xlu2 %712 }
 0x222   : > { %v736_v9 = vsel %vm716_vm6, %v713_v15, 0 }
 0x229   : > { %v709_v28 = vpop.permute.xlu2 %708 }
 0x22a   : > { %v730_v14 = vsel %vm716_vm6, %v709_v28, 0 }
 0x231   : > { %v878_v4 = vpop.permute.xlu2 %877 }
 0x232   : > { %899 = vmatpush.bf16.msrb.mxu2 %v878_v4 }
 0x249   : > { %v715_v62 = vpop.permute.xlu1 %714 }
 0x24a   : > { %v739_v48 = vsel %vm716_vm6, %v715_v62, 0 }
 0x24b   : > { %745 = vmatpush.bf16.xpose.msra.mxu1 %v739_v48  ;;  %v711_v51 = vpop.permute.xlu0 %710 }
 0x24c   : > { %v733_v11 = vsel %vm716_vm6, %v711_v51, 0 }
 0x253   : > { %746 = vmatpush.bf16.xpose.msra.mxu1 %v736_v9 }
 0x25b   : > { %747 = vmatpush.bf16.xpose.msra.mxu1 %v733_v11 }
 0x263   : > { %748 = vmatpush.bf16.xpose.msra.mxu1 %v730_v14 }
 0x26a   : > { %1903 = vmatmul.msk.bf16.vlgmr.msra.gmra.mxu1 %vm716_vm6, %v2579_v58 }
 0x27a   : > { %1904 = vmatmul.msk.bf16.gmra.mxu1 %vm716_vm6, %v2584_v25 }
 0x28a   : > { %1905 = vmatmul.msk.bf16.gmra.mxu1 %vm716_vm6, %v2576_v33 }
 0x29a   : > { %1906 = vmatmul.msk.bf16.gmra.mxu1 %vm716_vm6, %v2582_v2 }
 0x2e7   : > { %v750_v44 = vpop.f32.mrf.mxu1 }
 0x2e8   : > { %v770_v17 = vmul.f32 0.35355338, %v750_v44 }
 0x2ea   : > { %v779_v21 = vsel %vm778_vm7, %v770_v17, -inf }
 0x2eb   : > { %780 = vmax.xlane.f32.xlu1 %v779_v21 }
 0x2ef   : > { %v752_v41 = vpop.f32.mrf.mxu1 }
 0x2f0   : > { %v771_v16 = vmul.f32 0.35355338, %v752_v41 }
 0x2f2   : > { %v782_v23 = vsel %vm778_vm7, %v771_v16, -inf }
 0x2f3   : > { %783 = vmax.xlane.f32.xlu0 %v782_v23 }
 0x2f7   : > { %v755_v26 = vpop.f32.mrf.mxu1 }
 0x2f8   : > { %v772_v27 = vmul.f32 0.35355338, %v755_v26 }
 0x2fa   : > { %v785_v30 = vsel %vm778_vm7, %v772_v27, -inf }
 0x2fb   : > { %786 = vmax.xlane.f32.xlu2 %v785_v30 }
 0x2ff   : > { %v757_v10 = vpop.f32.mrf.mxu1 }
 0x300   : > { %v773_v32 = vmul.f32 0.35355338, %v757_v10 }
 0x302   : > { %v788_v24 = vsel %vm778_vm7, %v773_v32, -inf }
 0x303   : > { %789 = vmax.xlane.f32.xlu1 %v788_v24 }
 0x307   : > { %v760_v34 = vpop.f32.mrf.mxu1 }
 0x308   : > { %v774_v3 = vmul.f32 0.35355338, %v760_v34 }
 0x30a   : > { %v791_v35 = vsel %vm778_vm7, %v774_v3, -inf }
 0x30b   : > { %792 = vmax.xlane.f32.xlu0 %v791_v35 }
 0x30f   : > { %v762_v46 = vpop.f32.mrf.mxu1 }
 0x310   : > { %v775_v63 = vmul.f32 0.35355338, %v762_v46 }
 0x312   : > { %v794_v45 = vsel %vm778_vm7, %v775_v63, -inf }
 0x313   : > { %795 = vmax.xlane.f32.xlu2 %v794_v45 }
 0x317   : > { %v765_v5 = vpop.f32.mrf.mxu1 }
 0x318   : > { %v776_v36 = vmul.f32 0.35355338, %v765_v5 }
 0x31a   : > { %v797_v37 = vsel %vm778_vm7, %v776_v36, -inf }
 0x31b   : > { %798 = vmax.xlane.f32.xlu1 %v797_v37 }
 0x31f   : > { %v767_v38 = vpop.f32.mrf.mxu1 }
 0x320   : > { %v777_v56 = vmul.f32 0.35355338, %v767_v38 }
 0x322   : > { %v800_v39 = vsel %vm778_vm7, %v777_v56, -inf }
 0x323   : > { %801 = vmax.xlane.f32.xlu0 %v800_v39 }
 0x32b   : > { %871 = vrot.lane.b32.xlu2 %v2579_v58, %s2160_s18 }
 0x35e   : > { %v781_v52 = vpop.xlane.xlu1 %780 }
 0x35f   : > { %v803_v40 = vsub.f32 %v770_v17, %v781_v52 }
 0x361   : > { %v811_v50 = vmul.f32 1.442695, %v803_v40 }
 0x363   : > { %2020 = vpow2.f32 %v811_v50 }
 0x366   : > { %v784_v18 = vpop.xlane.xlu0 %783 }
 0x367   : > { %v804_v22 = vsub.f32 %v771_v16, %v784_v18 }
 0x369   : > { %v2612_v57 = vpop.eup %2020  ;;  %v813_v31 = vmul.f32 1.442695, %v804_v22 }
 0x36a   : > { %v827_v47 = vsel %vm778_vm7, %v2612_v57, 0.0 }
 0x36b   : > { %2022 = vpow2.f32 %v813_v31  ;;  %828 = vadd.xlane.f32.xlu1 %v827_v47 }
 0x36e   : > { %v787_v53 = vpop.xlane.xlu2 %786 }
 0x36f   : > { %v805_v54 = vsub.f32 %v772_v27, %v787_v53 }
 0x371   : > { %v2616_v55 = vpop.eup %2022  ;;  %v815_v43 = vmul.f32 1.442695, %v805_v54 }
 0x372   : > { %v830_v29 = vsel %vm778_vm7, %v2616_v55, 0.0 }
 0x373   : > { %2024 = vpow2.f32 %v815_v43  ;;  %831 = vadd.xlane.f32.xlu0 %v830_v29 }
 0x376   : > { %v790_v28 = vpop.xlane.xlu1 %789 }
 0x377   : > { %v806_v62 = vsub.f32 %v773_v32, %v790_v28 }
 0x379   : > { %v2620_v19 = vpop.eup %2024  ;;  %v817_v51 = vmul.f32 1.442695, %v806_v62 }
 0x37a   : > { %v833_v20 = vsel %vm778_vm7, %v2620_v19, 0.0 }
 0x37b   : > { %834 = vadd.xlane.f32.xlu2 %v833_v20 }
 0x37e   : > { %v793_v15 = vpop.xlane.xlu0 %792 }
 0x37f   : > { %v807_v4 = vsub.f32 %v774_v3, %v793_v15 }
 0x381   : > { %v819_v48 = vmul.f32 1.442695, %v807_v4 }
 0x384   : > { %875 = vrot.lane.b32.xlu1 %v2576_v33, %s2160_s18 }
 0x386   : > { %v796_v42 = vpop.xlane.xlu2 %795 }
 0x387   : > { %v808_v59 = vsub.f32 %v775_v63, %v796_v42  ;;  %873 = vrot.lane.b32.xlu0 %v2584_v25, %s2160_s18 }
 0x389   : > { %v821_v60 = vmul.f32 1.442695, %v808_v59 }
 0x38b   : > { %2026 = vpow2.f32 %v821_v60 }
 0x38c   : > { %2028 = vpow2.f32 %v819_v48 }
 0x38d   : > { %2030 = vpow2.f32 %v817_v51 }
 0x38e   : > { %v799_v11 = vpop.xlane.xlu1 %798  ;;  %v872_v3 = vpop.permute.xlu2 %871 }
 0x38f   : > { %v809_v44 = vsub.f32 %v776_v36, %v799_v11 }
 0x391   : > { %v2628_v61 = vpop.eup %2026  ;;  %v823_v41 = vmul.f32 1.442695, %v809_v44 }
 0x392   : > { %v842_v49 = vsel %vm778_vm7, %v2628_v61, 0.0  ;;  %v2632_v21 = vpop.eup %2028 }
 0x393   : > { %843 = vadd.xlane.f32.xlu2 %v842_v49  ;;  %v2635_v16 = vpop.eup %2030  ;;  %v839_v23 = vsel %vm778_vm7, %v2632_v21, 0.0 }
 0x394   : > { %v836_v26 = vsel %vm778_vm7, %v2635_v16, 0.0 }
 0x396   : > { %v802_v9 = vpop.xlane.xlu0 %801 }
 0x397   : > { %v810_v14 = vsub.f32 %v777_v56, %v802_v9 }
 0x399   : > { %v825_v17 = vmul.f32 1.442695, %v810_v14 }
 0x39b   : > { %2032 = vpow2.f32 %v825_v17 }
 0x39c   : > { %2034 = vpow2.f32 %v823_v41 }
 0x3a1   : > { %v2641_v27 = vpop.eup %2032 }
 0x3a2   : > { %v2644_v30 = vpop.eup %2034  ;;  %v848_v10 = vsel %vm778_vm7, %v2641_v27, 0.0 }
 0x3a3   : > { %v845_v32 = vsel %vm778_vm7, %v2644_v30, 0.0 }
 0x3ab   : > { %942 = vrot.lane.b32.xlu2 %v2582_v2, %s2161_s19 }
 0x3ae   : > { %840 = vadd.xlane.f32.xlu1 %v839_v23 }
 0x3b1   : > { %837 = vadd.xlane.f32.xlu0 %v836_v26 }
 0x3b3   : > { %928 = vrot.lane.b32.xlu2 %v2579_v58, %s2162_s20 }
 0x3b6   : > { %849 = vadd.xlane.f32.xlu1 %v848_v10 }
 0x3b9   : > { %846 = vadd.xlane.f32.xlu0 %v845_v32 }
 0x3bb   : > { %1257 = vrot.lane.b32.xlu2 %v2582_v2, %s2163_s21 }
 0x3c3   : > { %934 = vrot.lane.b32.xlu2 %v2582_v2, %s2162_s20 }
 0x3cb   : > { %1251 = vrot.lane.b32.xlu2 %v2579_v58, %s2163_s21 }
 0x3cd   : > { %940 = vrot.lane.b32.xlu0 %v2576_v33, %s2161_s19 }
 0x3cf   : > { %938 = vrot.lane.b32.xlu1 %v2584_v25, %s2161_s19 }
 0x3d3   : > { %1529 = vrot.lane.b32.xlu2 %v2579_v58, %s2164_s22 }
 0x3d5   : > { %936 = vrot.lane.b32.xlu0 %v2579_v58, %s2161_s19 }
 0x3d7   : > { %930 = vrot.lane.b32.xlu1 %v2584_v25, %s2162_s20 }
 0x3db   : > { %1523 = vrot.lane.b32.xlu2 %v2584_v25, %s2165_s23 }
 0x3dd   : > { %932 = vrot.lane.b32.xlu0 %v2576_v33, %s2162_s20 }
 0x3de   : > { %v829_v24 = vpop.xlane.xlu1 %828 }
 0x3df   : > { %1255 = vrot.lane.b32.xlu1 %v2576_v33, %s2163_s21 }
 0x3e3   : > { %1249 = vrot.lane.b32.xlu2 %v2582_v2, %s2166_s27 }
 0x3e5   : > { %1535 = vrot.lane.b32.xlu0 %v2582_v2, %s2164_s22 }
 0x3e6   : > { %v832_v34 = vpop.xlane.xlu0 %831 }
 0x3e7   : > { %1253 = vrot.lane.b32.xlu1 %v2584_v25, %s2163_s21  ;;  %2036 = vrcp.f32 %v832_v34  ;;  %s3051_s21 = scalar_lea.vmem %s3093_s7, %s1953_s26 }
 0x3e8   : > { %2038 = vrcp.f32 %v829_v24 }
 0x3ed   : > { %1533 = vrot.lane.b32.xlu0 %v2576_v33, %s2164_s22  ;;  %v2037_v46 = vpop.eup %2036 }
 0x3ee   : > { %v2039_v45 = vpop.eup %2038  ;;  %v860_v5 = vmul.f32 %v2037_v46, %v2616_v55  ;;  %v835_v37 = vpop.xlane.xlu2 %834  ;;  %v696_v55 = vld [vmem:[%s3091_s5] sm:$0xf] }
 0x3ef   : > { %1531 = vrot.lane.b32.xlu1 %v2584_v25, %s2164_s22  ;;  %v859_v36 = vmul.f32 %v2039_v45, %v2612_v57  ;;  %2040 = vrcp.f32 %v835_v37  ;;  %v1212_v20 = vsel %vm1166_vm8, %v696_v55, 0 }
 0x3f0   : > { %1221 = vmatpush.bf16.msrb.mxu1 %v1212_v20 }
 0x3f1   : > { %v867_v38 = vpack.c.bf16 %v860_v5, %v859_v36 }
 0x3f5   : > { %1243 = vrot.lane.b32.xlu0 %v2579_v58, %s2166_s27  ;;  %v2041_v50 = vpop.eup %2040 }
 0x3f6   : > { %v876_v35 = vpop.permute.xlu1 %875  ;;  %v861_v22 = vmul.f32 %v2041_v50, %v2620_v19 }
 0x3f7   : > { %1521 = vrot.lane.b32.xlu1 %v2579_v58, %s2165_s23  ;;  %900 = vmatpush.bf16.msrb.mxu2 %v876_v35 }
 0x3f9   : > { %v874_v63 = vpop.permute.xlu0 %873 }
 0x3fb   : > { %901 = vmatpush.bf16.msrb.mxu2 %v874_v63 }
 0x3fd   : > { %1245 = vrot.lane.b32.xlu0 %v2584_v25, %s2166_s27 }
 0x3ff   : > { %1247 = vrot.lane.b32.xlu1 %v2576_v33, %s2166_s27  ;;  %902 = vmatpush.bf16.msrb.mxu2 %v872_v3 }
 0x402   : > { %1907 = vmatmul.msk.bf16.vlgmr.msrb.gmra.mxu2 %vm778_vm7, %v867_v38 }
 0x405   : > { %1525 = vrot.lane.b32.xlu0 %v2576_v33, %s2165_s23 }
 0x406   : > { %v844_v56 = vpop.xlane.xlu2 %843 }
 0x407   : > { %1527 = vrot.lane.b32.xlu1 %v2582_v2, %s2165_s23 }
 0x40e   : > { %v943_v39 = vpop.permute.xlu2 %942 }
 0x40f   : > { %v966_v52 = vsel %vm716_vm6, %v943_v39, 0 }
 0x410   : > { %972 = vmatpush.bf16.xpose.msra.mxu3 %v966_v52 }
 0x416   : > { %v929_v28 = vpop.permute.xlu2 %928 }
 0x41e   : > { %v1258_v14 = vpop.permute.xlu2 %1257 }
 0x421   : > { %v841_v31 = vpop.xlane.xlu1 %840 }
 0x424   : > { %v838_v40 = vpop.xlane.xlu0 %837 }
 0x425   : > { %2042 = vrcp.f32 %v838_v40 }
 0x426   : > { %2044 = vrcp.f32 %v841_v31 }
 0x427   : > { %2046 = vrcp.f32 %v844_v56 }
 0x429   : > { %v850_v29 = vpop.xlane.xlu1 %849 }
 0x42b   : > { %v2043_v18 = vpop.eup %2042 }
 0x42c   : > { %v862_v57 = vmul.f32 %v2043_v18, %v2635_v16  ;;  %v2045_v53 = vpop.eup %2044  ;;  %v847_v54 = vpop.xlane.xlu0 %846  ;;  %v1281_v16 = vsel %vm716_vm6, %v1258_v14, 0 }
 0x42d   : > { %v2047_v43 = vpop.eup %2046  ;;  %v863_v19 = vmul.f32 %v2045_v53, %v2632_v21  ;;  %2048 = vrcp.f32 %v847_v54 }
 0x42e   : > { %v868_v47 = vpack.c.bf16 %v862_v57, %v861_v22  ;;  %v864_v42 = vmul.f32 %v2047_v43, %v2628_v61  ;;  %2050 = vrcp.f32 %v850_v29 }
 0x430   : > { %1908 = vmatmul.msk.bf16.gmra.mxu2 %vm778_vm7, %v868_v47  ;;  %v869_v59 = vpack.c.bf16 %v864_v42, %v863_v19 }
 0x433   : > { %v2049_v4 = vpop.eup %2048 }
 0x434   : > { %v2051_v9 = vpop.eup %2050  ;;  %v865_v61 = vmul.f32 %v2049_v4, %v2644_v30  ;;  %v935_v30 = vpop.permute.xlu2 %934 }
 0x435   : > { %v866_v11 = vmul.f32 %v2051_v9, %v2641_v27 }
 0x437   : > { %v870_v44 = vpack.c.bf16 %v866_v11, %v865_v61 }
 0x43c   : > { %v1252_v3 = vpop.permute.xlu2 %1251 }
 0x43d   : > { %v1272_v63 = vsel %vm716_vm6, %v1252_v3, 0 }
 0x43f   : > { %v941_v60 = vpop.permute.xlu0 %940 }
 0x440   : > { %1909 = vmatmul.msk.bf16.gmra.mxu2 %vm778_vm7, %v869_v59  ;;  %v963_v49 = vsel %vm716_vm6, %v941_v60, 0 }
 0x441   : > { %v939_v15 = vpop.permute.xlu1 %938  ;;  %973 = vmatpush.bf16.xpose.msra.mxu3 %v963_v49 }
 0x442   : > { %v960_v48 = vsel %vm716_vm6, %v939_v15, 0 }
 0x444   : > { %v1530_v45 = vpop.permute.xlu2 %1529 }
 0x445   : > { %v1550_v5 = vsel %vm716_vm6, %v1530_v45, 0 }
 0x447   : > { %v937_v62 = vpop.permute.xlu0 %936 }
 0x448   : > { %v957_v21 = vsel %vm716_vm6, %v937_v62, 0 }
 0x449   : > { %v931_v51 = vpop.permute.xlu1 %930  ;;  %974 = vmatpush.bf16.xpose.msra.mxu3 %v960_v48 }
 0x44c   : > { %v1524_v57 = vpop.permute.xlu2 %1523 }
 0x44f   : > { %v933_v17 = vpop.permute.xlu0 %932 }
 0x450   : > { %1910 = vmatmul.msk.bf16.gmra.mxu2 %vm778_vm7, %v870_v44 }
 0x451   : > { %v1256_v41 = vpop.permute.xlu1 %1255  ;;  %975 = vmatpush.bf16.xpose.msra.mxu3 %v957_v21 }
 0x452   : > { %v1278_v27 = vsel %vm716_vm6, %v1256_v41, 0 }
 0x454   : > { %v1250_v47 = vpop.permute.xlu2 %1249 }
 0x457   : > { %v1536_v23 = vpop.permute.xlu0 %1535 }
 0x458   : > { %v1559_v26 = vsel %vm716_vm6, %v1536_v23, 0  ;;  %1911 = vmatmul.msk.bf16.vlgmr.msra.gmra.mxu3 %vm716_vm6, %v929_v28 }
 0x459   : > { %1287 = vmatpush.bf16.xpose.msrb.mxu3 %v1281_v16  ;;  %1565 = vmatpush.bf16.xpose.msra.mxu1 %v1559_v26  ;;  %v1254_v10 = vpop.permute.xlu1 %1253 }
 0x45a   : > { %v1275_v34 = vsel %vm716_vm6, %v1254_v10, 0 }
 0x45f   : > { %v1534_v32 = vpop.permute.xlu0 %1533 }
 0x460   : > { %v1556_v24 = vsel %vm716_vm6, %v1534_v32, 0 }
 0x461   : > { %1288 = vmatpush.bf16.xpose.msrb.mxu3 %v1278_v27  ;;  %1566 = vmatpush.bf16.xpose.msra.mxu1 %v1556_v24  ;;  %v1532_v35 = vpop.permute.xlu1 %1531 }
 0x462   : > { %v1553_v46 = vsel %vm716_vm6, %v1532_v35, 0 }
 0x467   : > { %v1244_v56 = vpop.permute.xlu0 %1243 }
 0x468   : > { %1912 = vmatmul.msk.bf16.gmra.mxu3 %vm716_vm6, %v931_v51 }
 0x469   : > { %1289 = vmatpush.bf16.xpose.msrb.mxu3 %v1275_v34  ;;  %1567 = vmatpush.bf16.xpose.msra.mxu1 %v1553_v46  ;;  %v1522_v52 = vpop.permute.xlu1 %1521 }
 0x46f   : > { %v1246_v39 = vpop.permute.xlu0 %1245 }
 0x471   : > { %1290 = vmatpush.bf16.xpose.msrb.mxu3 %v1272_v63  ;;  %1568 = vmatpush.bf16.xpose.msra.mxu1 %v1550_v5  ;;  %v1248_v50 = vpop.permute.xlu1 %1247 }
 0x477   : > { %v1526_v16 = vpop.permute.xlu0 %1525 }
 0x478   : > { %1913 = vmatmul.msk.bf16.gmra.mxu3 %vm716_vm6, %v933_v17 }
 0x479   : > { %v1528_v10 = vpop.permute.xlu1 %1527 }
 0x485   : > { %v904_v36 = vpop.f32.mrf.mxu2 }
 0x488   : > { %1914 = vmatmul.msk.bf16.gmra.mxu3 %vm716_vm6, %v935_v30 }
 0x48d   : > { %v906_v37 = vpop.f32.mrf.mxu2 }
 0x48e   : > { %v924_v38 = vpack.c.bf16 %v906_v37, %v904_v36 }
 0x490   : > { %1923 = vmatmul.msk.bf16.vlgmr.msrb.gmra.mxu1 %vm716_vm6, %v924_v38 }
 0x498   : > { %1927 = vmatmul.msk.bf16.vlgmr.msrb.gmra.mxu3 %vm716_vm6, %v1244_v56 }
 0x4a8   : > { %1928 = vmatmul.msk.bf16.gmra.mxu3 %vm716_vm6, %v1246_v39 }
 0x4b3   : > { %v909_v40 = vpop.f32.mrf.mxu2 }
 0x4b8   : > { %1929 = vmatmul.msk.bf16.gmra.mxu3 %vm716_vm6, %v1248_v50 }
 0x4bb   : > { %v911_v18 = vpop.f32.mrf.mxu2 }
 0x4bc   : > { %v925_v22 = vpack.c.bf16 %v911_v18, %v909_v40 }
 0x4be   : > { %1924 = vmatmul.msk.bf16.gmra.mxu1 %vm716_vm6, %v925_v22 }
 0x4c3   : > { %v914_v31 = vpop.f32.mrf.mxu2 }
 0x4c8   : > { %1930 = vmatmul.msk.bf16.gmra.mxu3 %vm716_vm6, %v1250_v47 }
 0x4cb   : > { %v916_v53 = vpop.f32.mrf.mxu2 }
 0x4cc   : > { %v926_v54 = vpack.c.bf16 %v916_v53, %v914_v31 }
 0x4ce   : > { %1925 = vmatmul.msk.bf16.gmra.mxu1 %vm716_vm6, %v926_v54 }
 0x4d3   : > { %v919_v55 = vpop.f32.mrf.mxu2 }
 0x4db   : > { %v921_v43 = vpop.f32.mrf.mxu2  ;;  %v977_v29 = vpop.f32.mrf.mxu3 }
 0x4dc   : > { %v927_v20 = vpack.c.bf16 %v921_v43, %v919_v55  ;;  %v997_v19 = vmul.f32 0.35355338, %v977_v29 }
 0x4de   : > { %1926 = vmatmul.msk.bf16.gmra.mxu1 %vm716_vm6, %v927_v20  ;;  %v1005_v42 = vsel %vm778_vm7, %v997_v19, -inf }
 0x4df   : > { %1006 = vmax.xlane.f32.xlu0 %v1005_v42 }
 0x4e3   : > { %v979_v59 = vpop.f32.mrf.mxu3 }
 0x4e4   : > { %v998_v60 = vmul.f32 0.35355338, %v979_v59 }
 0x4e6   : > { %v1008_v49 = vsel %vm778_vm7, %v998_v60, -inf }
 0x4e7   : > { %1009 = vmax.xlane.f32.xlu2 %v1008_v49 }
 0x4eb   : > { %v982_v15 = vpop.f32.mrf.mxu3 }
 0x4ec   : > { %v999_v28 = vmul.f32 0.35355338, %v982_v15 }
 0x4ee   : > { %1939 = vmatmul.msk.bf16.vlgmr.msra.gmra.mxu1 %vm716_vm6, %v1522_v52  ;;  %v1011_v4 = vsel %vm778_vm7, %v999_v28, -inf }
 0x4ef   : > { %1012 = vmax.xlane.f32.xlu1 %v1011_v4 }
 0x4f3   : > { %v984_v62 = vpop.f32.mrf.mxu3 }
 0x4f4   : > { %v2720_v48 = vmul.f32 0.35355338, %v984_v62 }
 0x4f6   : > { %v1014_v9 = vsel %vm778_vm7, %v2720_v48, -inf }
 0x4f7   : > { %1015 = vmax.xlane.f32.xlu0 %v1014_v9 }
 0x4fb   : > { %v987_v51 = vpop.f32.mrf.mxu3 }
 0x4fc   : > { %v1001_v61 = vmul.f32 0.35355338, %v987_v51 }
 0x4fe   : > { %1940 = vmatmul.msk.bf16.gmra.mxu1 %vm716_vm6, %v1524_v57  ;;  %v1017_v11 = vsel %vm778_vm7, %v1001_v61, -inf }
 0x4ff   : > { %1018 = vmax.xlane.f32.xlu2 %v1017_v11 }
 0x503   : > { %v989_v14 = vpop.f32.mrf.mxu3 }
 0x504   : > { %v2726_v44 = vmul.f32 0.35355338, %v989_v14 }
 0x506   : > { %v1020_v17 = vsel %vm778_vm7, %v2726_v44, -inf }
 0x507   : > { %1021 = vmax.xlane.f32.xlu1 %v1020_v17 }
 0x50b   : > { %v992_v21 = vpop.f32.mrf.mxu3 }
 0x50c   : > { %v2730_v41 = vmul.f32 0.35355338, %v992_v21 }
 0x50d   : > { %v2748_v3 = vpop.f32.mrf.mxu1 }
 0x50e   : > { %1941 = vmatmul.msk.bf16.gmra.mxu1 %vm716_vm6, %v1526_v16  ;;  %v1023_v23 = vsel %vm778_vm7, %v2730_v41, -inf }
 0x50f   : > { %1024 = vmax.xlane.f32.xlu0 %v1023_v23 }
 0x513   : > { %v994_v26 = vpop.f32.mrf.mxu3 }
 0x514   : > { %v2735_v30 = vmul.f32 0.35355338, %v994_v26 }
 0x515   : > { %v2752_v36 = vpop.f32.mrf.mxu1 }
 0x516   : > { %v1026_v27 = vsel %vm778_vm7, %v2735_v30, -inf }
 0x517   : > { %1027 = vmax.xlane.f32.xlu2 %v1026_v27 }
 0x51b   : > { %v2744_v32 = vpop.f32.mrf.mxu3 }
 0x51e   : > { %1942 = vmatmul.msk.bf16.gmra.mxu1 %vm716_vm6, %v1528_v10 }
 0x520   : > { %1103 = vrot.lane.b32.xlu1 %v2582_v2, %s2167_s8 }
 0x523   : > { %v1294_v24 = vpop.f32.mrf.mxu3 }
 0x524   : > { %v2746_v34 = vmul.f32 0.35355338, %v1294_v24 }
 0x526   : > { %v1323_v35 = vsel %vm778_vm7, %v2746_v34, -inf }
 0x528   : > { %1097 = vrot.lane.b32.xlu1 %v2579_v58, %s2167_s8 }
 0x52b   : > { %v1297_v56 = vpop.f32.mrf.mxu3 }
 0x533   : > { %v1299_v47 = vpop.f32.mrf.mxu3 }
 0x534   : > { %v2770_v29 = vmul.f32 0.35355338, %v1299_v47 }
 0x536   : > { %v1329_v59 = vsel %vm778_vm7, %v2770_v29, -inf }
 0x53b   : > { %v2758_v50 = vpop.f32.mrf.mxu1  ;;  %v1302_v43 = vpop.f32.mrf.mxu3 }
 0x543   : > { %v2766_v54 = vpop.f32.mrf.mxu1  ;;  %v1304_v15 = vpop.f32.mrf.mxu3 }
 0x544   : > { %v2786_v9 = vmul.f32 0.35355338, %v1304_v15 }
 0x546   : > { %v1335_v17 = vsel %vm778_vm7, %v2786_v9, -inf }
 0x54b   : > { %v1307_v11 = vpop.f32.mrf.mxu3 }
 0x552   : > { %v1007_v46 = vpop.xlane.xlu0 %1006  ;;  %1324 = vmax.xlane.f32.xlu1 %v1323_v35 }
 0x553   : > { %v1029_v63 = vsub.f32 %v997_v19, %v1007_v46  ;;  %v1309_v27 = vpop.f32.mrf.mxu3 }
 0x554   : > { %v2797_v10 = vmul.f32 0.35355338, %v1309_v27 }
 0x555   : > { %v1037_v45 = vmul.f32 1.442695, %v1029_v63  ;;  %v2805_v63 = vmul.f32 0.35355338, %v2744_v32 }
 0x556   : > { %v1341_v46 = vsel %vm778_vm7, %v2797_v10, -inf }
 0x557   : > { %2052 = vpow2.f32 %v1037_v45 }
 0x55a   : > { %v1010_v5 = vpop.xlane.xlu2 %1009 }
 0x55b   : > { %v1030_v37 = vsub.f32 %v998_v60, %v1010_v5  ;;  %v2776_v60 = vpop.f32.mrf.mxu1  ;;  %v1320_v5 = vsel %vm778_vm7, %v2805_v63, -inf }
 0x55d   : > { %v2754_v38 = vpop.eup %2052  ;;  %v1039_v39 = vmul.f32 1.442695, %v1030_v37 }
 0x55e   : > { %v1053_v52 = vsel %vm778_vm7, %v2754_v38, 0.0 }
 0x55f   : > { %2054 = vpow2.f32 %v1039_v39  ;;  %1054 = vadd.xlane.f32.xlu0 %v1053_v52  ;;  %v2810_v52 = vmul.f32 0.35355338, %v1297_v56 }
 0x562   : > { %v1013_v40 = vpop.xlane.xlu1 %1012 }
 0x563   : > { %v1031_v18 = vsub.f32 %v999_v28, %v1013_v40  ;;  %v2784_v62 = vpop.f32.mrf.mxu1 }
 0x565   : > { %v2760_v22 = vpop.eup %2054  ;;  %v1041_v57 = vmul.f32 1.442695, %v1031_v18  ;;  %v1326_v18 = vsel %vm778_vm7, %v2810_v52, -inf }
 0x566   : > { %v1056_v31 = vsel %vm778_vm7, %v2760_v22, 0.0 }
 0x567   : > { %2056 = vpow2.f32 %v1041_v57  ;;  %1057 = vadd.xlane.f32.xlu2 %v1056_v31  ;;  %v2818_v57 = vmul.f32 0.35355338, %v1302_v43 }
 0x56a   : > { %v1016_v49 = vpop.xlane.xlu0 %1015 }
 0x56b   : > { %v2791_v16 = vpop.f32.mrf.mxu1  ;;  %v1032_v35 = vsub.f32 %v2720_v48, %v1016_v49 }
 0x56d   : > { %v2764_v53 = vpop.eup %2056  ;;  %v1043_v45 = vmul.f32 1.442695, %v1032_v35 }
 0x56e   : > { %v1059_v55 = vsel %vm778_vm7, %v2764_v53, 0.0 }
 0x56f   : > { %1060 = vadd.xlane.f32.xlu1 %v1059_v55  ;;  %v2826_v55 = vmul.f32 0.35355338, %v1307_v11 }
 0x572   : > { %v1019_v20 = vpop.xlane.xlu2 %1018 }
 0x573   : > { %v1033_v19 = vsub.f32 %v1001_v61, %v1019_v20  ;;  %1101 = vrot.lane.b32.xlu0 %v2576_v33, %s2167_s8  ;;  %v2799_v24 = vpop.f32.mrf.mxu1 }
 0x575   : > { %v1045_v42 = vmul.f32 1.442695, %v1033_v19  ;;  %v1338_v19 = vsel %vm778_vm7, %v2826_v55, -inf }
 0x577   : > { %2058 = vpow2.f32 %v1045_v42  ;;  %1330 = vmax.xlane.f32.xlu1 %v1329_v59 }
 0x57a   : > { %v1022_v21 = vpop.xlane.xlu1 %1021 }
 0x57b   : > { %v1034_v37 = vsub.f32 %v2726_v44, %v1022_v21  ;;  %v1570_v39 = vpop.f32.mrf.mxu1  ;;  %v1332_v44 = vsel %vm778_vm7, %v2818_v57, -inf }
 0x57d   : > { %v2778_v28 = vpop.eup %2058  ;;  %v1047_v40 = vmul.f32 1.442695, %v1034_v37  ;;  %v2852_v37 = vmul.f32 0.35355338, %v1570_v39 }
 0x57e   : > { %v1065_v4 = vsel %vm778_vm7, %v2778_v28, 0.0 }
 0x57f   : > { %1099 = vrot.lane.b32.xlu2 %v2584_v25, %s2167_s8  ;;  %1066 = vadd.xlane.f32.xlu1 %v1065_v4 }
 0x582   : > { %v1025_v51 = vpop.xlane.xlu0 %1024 }
 0x583   : > { %v1035_v61 = vsub.f32 %v2730_v41, %v1025_v51  ;;  %v1572_v31 = vpop.f32.mrf.mxu1 }
 0x584   : > { %v2830_v43 = vmul.f32 0.35355338, %v1572_v31 }
 0x585   : > { %v1049_v14 = vmul.f32 1.442695, %v1035_v61 }
 0x586   : > { %v1601_v42 = vsel %vm778_vm7, %v2830_v43, -inf }
 0x587   : > { %2060 = vpow2.f32 %v1049_v14  ;;  %1336 = vmax.xlane.f32.xlu1 %v1335_v17 }
 0x588   : > { %2062 = vpow2.f32 %v1043_v45 }
 0x589   : > { %2064 = vpow2.f32 %v1047_v40 }
 0x58a   : > { %v1028_v4 = vpop.xlane.xlu2 %1027 }
 0x58b   : > { %v1575_v20 = vpop.f32.mrf.mxu1  ;;  %v1036_v61 = vsub.f32 %v2735_v30, %v1028_v4 }
 0x58d   : > { %v2793_v23 = vpop.eup %2060  ;;  %v1051_v14 = vmul.f32 1.442695, %v1036_v61 }
 0x58e   : > { %v1071_v26 = vsel %vm778_vm7, %v2793_v23, 0.0  ;;  %v2812_v48 = vpop.eup %2062 }
 0x58f   : > { %1072 = vadd.xlane.f32.xlu1 %v1071_v26  ;;  %v1062_v32 = vsel %vm778_vm7, %v2812_v48, 0.0  ;;  %v2820_v47 = vpop.eup %2064 }
 0x590   : > { %v1068_v56 = vsel %vm778_vm7, %v2820_v47, 0.0 }
 0x592   : > { %v1104_v41 = vpop.permute.xlu1 %1103 }
 0x593   : > { %1125 = vmatpush.bf16.msrb.mxu0 %v1104_v41  ;;  %v1577_v59 = vpop.f32.mrf.mxu1 }
 0x594   : > { %v2834_v49 = vmul.f32 0.35355338, %v1577_v59 }
 0x596   : > { %v1607_v15 = vsel %vm778_vm7, %v2834_v49, -inf }
 0x597   : > { %1342 = vmax.xlane.f32.xlu1 %v1341_v46 }
 0x59a   : > { %v1098_v46 = vpop.permute.xlu1 %1097 }
 0x59b   : > { %v2847_v30 = vpop.f32.mrf.mxu1 }
 0x59d   : > { %1321 = vmax.xlane.f32.xlu0 %v1320_v5 }
 0x5a3   : > { %v1582_v40 = vpop.f32.mrf.mxu1 }
 0x5a5   : > { %1327 = vmax.xlane.f32.xlu0 %v1326_v18  ;;  %v2856_v18 = vmul.f32 0.35355338, %v1575_v20 }
 0x5a8   : > { %1063 = vadd.xlane.f32.xlu2 %v1062_v32  ;;  %v1604_v32 = vsel %vm778_vm7, %v2856_v18, -inf }
 0x5ad   : > { %1333 = vmax.xlane.f32.xlu0 %v1332_v44  ;;  %v1585_v44 = vpop.f32.mrf.mxu1 }
 0x5ae   : > { %v2864_v39 = vmul.f32 0.35355338, %v1585_v44 }
 0x5b0   : > { %1069 = vadd.xlane.f32.xlu2 %v1068_v56  ;;  %v1616_v56 = vsel %vm778_vm7, %v2864_v39, -inf }
 0x5b5   : > { %1339 = vmax.xlane.f32.xlu0 %v1338_v19 }
 0x5bd   : > { %1602 = vmax.xlane.f32.xlu0 %v1601_v42 }
 0x5c5   : > { %1608 = vmax.xlane.f32.xlu0 %v1607_v15  ;;  %v1325_v19 = vpop.xlane.xlu1 %1324 }
 0x5c6   : > { %v1345_v59 = vsub.f32 %v2746_v34, %v1325_v19 }
 0x5c8   : > { %1418 = vrot.lane.b32.xlu2 %v2582_v2, %s2168_s9 }
 0x5d2   : > { %v1055_v51 = vpop.xlane.xlu0 %1054 }
 0x5d9   : > { %1696 = vrot.lane.b32.xlu0 %v2582_v2, %s2169_s10 }
 0x5da   : > { %v1058_v11 = vpop.xlane.xlu2 %1057 }
 0x5db   : > { %2066 = vrcp.f32 %v1058_v11 }
 0x5dc   : > { %2068 = vrcp.f32 %v1055_v51  ;;  %v1354_v51 = vmul.f32 1.442695, %v1345_v59 }
 0x5dd   : > { %2070 = vpow2.f32 %v1051_v14 }
 0x5e1   : > { %v2067_v21 = vpop.eup %2066 }
 0x5e2   : > { %v1100_v26 = vpop.permute.xlu2 %1099  ;;  %v2069_v27 = vpop.eup %2068  ;;  %v1086_v41 = vmul.f32 %v2067_v21, %v2760_v22  ;;  %v1598_v22 = vsel %vm778_vm7, %v2852_v37, -inf }
 0x5e3   : > { %v2844_v35 = vpop.eup %2070  ;;  %v1085_v2 = vmul.f32 %v2069_v27, %v2754_v38  ;;  %v2858_v38 = vmul.f32 0.35355338, %v1582_v40  ;;  %v1061_v15 = vpop.xlane.xlu1 %1060 }
 0x5e4   : > { %v1074_v5 = vsel %vm778_vm7, %v2844_v35, 0.0 }
 0x5e5   : > { %v1102_v17 = vpop.permute.xlu0 %1101  ;;  %v1093_v45 = vpack.c.bf16 %v1086_v41, %v1085_v2  ;;  %v1613_v31 = vsel %vm778_vm7, %v2858_v38, -inf }
 0x5e6   : > { %1126 = vmatpush.bf16.msrb.mxu0 %v1102_v17 }
 0x5ea   : > { %1127 = vmatpush.bf16.msrb.mxu0 %v1100_v26 }
 0x5eb   : > { %v2878_v17 = vpop.xlane.xlu1 %1330 }
 0x5ee   : > { %1128 = vmatpush.bf16.msrb.mxu0 %v1098_v46 }
 0x5f1   : > { %1075 = vadd.xlane.f32.xlu2 %v1074_v5  ;;  %1915 = vmatmul.msk.bf16.vlgmr.msrb.gmra.mxu0 %vm778_vm7, %v1093_v45  ;;  %v1587_v5 = vpop.f32.mrf.mxu1 }
 0x5f3   : > { %v1067_v40 = vpop.xlane.xlu1 %1066 }
 0x5f9   : > { %1599 = vmax.xlane.f32.xlu2 %v1598_v22 }
 0x601   : > { %1605 = vmax.xlane.f32.xlu2 %v1604_v32  ;;  %v2891_v32 = vmul.f32 0.35355338, %v1587_v5 }
 0x603   : > { %1614 = vmax.xlane.f32.xlu0 %v1613_v31 }
 0x60b   : > { %1617 = vmax.xlane.f32.xlu0 %v1616_v56 }
 0x610   : > { %v1322_v20 = vpop.xlane.xlu0 %1321 }
 0x611   : > { %v1344_v42 = vsub.f32 %v2805_v63, %v1322_v20 }
 0x613   : > { %v1352_v4 = vmul.f32 1.442695, %v1344_v42 }
 0x615   : > { %2072 = vpow2.f32 %v1352_v4 }
 0x616   : > { %2074 = vrcp.f32 %v1061_v15 }
 0x617   : > { %2076 = vpow2.f32 %v1354_v51 }
 0x618   : > { %v2870_v61 = vpop.xlane.xlu0 %1327 }
 0x619   : > { %1416 = vrot.lane.b32.xlu2 %v2576_v33, %s2168_s9 }
 0x61b   : > { %v2874_v11 = vpop.eup %2072  ;;  %v1064_v14 = vpop.xlane.xlu2 %1063 }
 0x61c   : > { %2078 = vrcp.f32 %v1064_v14  ;;  %v1368_v63 = vsel %vm778_vm7, %v2874_v11, 0.0  ;;  %v2075_v34 = vpop.eup %2074 }
 0x61d   : > { %1369 = vadd.xlane.f32.xlu1 %v1368_v63  ;;  %v2882_v26 = vpop.eup %2076  ;;  %v1087_v46 = vmul.f32 %v2075_v34, %v2764_v53  ;;  %v1619_v53 = vsel %vm778_vm7, %v2891_v32, -inf  ;;  %v2906_v63 = vmul.f32 0.35355338, %v2847_v30  ;;  %v697_v34 = vld [vmem:[%s3091_s5 + $0x4] sm:$0xf] }
 0x61e   : > { %v1371_v45 = vsel %vm778_vm7, %v2882_v26, 0.0 }
 0x620   : > { %v2880_v21 = vpop.xlane.xlu0 %1333 }
 0x621   : > { %1694 = vrot.lane.b32.xlu2 %v2576_v33, %s2169_s10 }
 0x622   : > { %v2079_v27 = vpop.eup %2078 }
 0x623   : > { %v1070_v41 = vpop.xlane.xlu2 %1069  ;;  %v1088_v2 = vmul.f32 %v2079_v27, %v2812_v48  ;;  %v1168_v27 = vsel %vm1166_vm8, %v697_v34, 0 }
 0x624   : > { %2080 = vrcp.f32 %v1070_v41  ;;  %1177 = vmatpush.bf16.msra.mxu2 %v1168_v27 }
 0x625   : > { %1372 = vadd.xlane.f32.xlu1 %v1371_v45  ;;  %v1094_v22 = vpack.c.bf16 %v1088_v2, %v1087_v46  ;;  %2082 = vrcp.f32 %v1067_v40 }
 0x627   : > { %1916 = vmatmul.msk.bf16.gmra.mxu0 %vm778_vm7, %v1094_v22 }
 0x628   : > { %v2893_v31 = vpop.xlane.xlu0 %1339 }
 0x62a   : > { %v2081_v48 = vpop.eup %2080 }
 0x62b   : > { %v1419_v33 = vpop.permute.xlu2 %1418  ;;  %v2083_v44 = vpop.eup %2082  ;;  %v1090_v20 = vmul.f32 %v2081_v48, %v2820_v47  ;;  %v1610_v47 = vsel %vm778_vm7, %v2906_v63, -inf  ;;  %v1348_v48 = vsub.f32 %v2818_v57, %v2880_v21 }
 0x62c   : > { %1440 = vmatpush.bf16.msra.mxu0 %v1419_v33  ;;  %v1089_v59 = vmul.f32 %v2083_v44, %v2778_v28  ;;  %v2910_v28 = vpop.xlane.xlu1 %1336  ;;  %v1347_v33 = vsub.f32 %v2770_v29, %v2878_v17 }
 0x62d   : > { %1620 = vmax.xlane.f32.xlu1 %v1619_v53  ;;  %v1349_v27 = vsub.f32 %v2786_v9, %v2910_v28 }
 0x62e   : > { %v1095_v15 = vpack.c.bf16 %v1090_v20, %v1089_v59 }
 0x630   : > { %v1603_v56 = vpop.xlane.xlu0 %1602 }
 0x631   : > { %v1623_v19 = vsub.f32 %v2830_v43, %v1603_v56  ;;  %v1358_v56 = vmul.f32 1.442695, %v1347_v33 }
 0x633   : > { %v1632_v42 = vmul.f32 1.442695, %v1623_v19 }
 0x634   : > { %v1073_v30 = vpop.xlane.xlu1 %1072 }
 0x635   : > { %2084 = vpow2.f32 %v1632_v42 }
 0x636   : > { %2086 = vrcp.f32 %v1073_v30 }
 0x637   : > { %1917 = vmatmul.msk.bf16.gmra.mxu0 %vm778_vm7, %v1095_v15 }
 0x638   : > { %v1609_v14 = vpop.xlane.xlu0 %1608 }
 0x63b   : > { %v2901_v4 = vpop.eup %2084 }
 0x63c   : > { %v1649_v51 = vsel %vm778_vm7, %v2901_v4, 0.0  ;;  %v2087_v46 = vpop.eup %2086 }
 0x63d   : > { %1650 = vadd.xlane.f32.xlu1 %v1649_v51  ;;  %v1091_v5 = vmul.f32 %v2087_v46, %v2793_v23  ;;  %v1360_v23 = vmul.f32 1.442695, %v1348_v48 }
 0x64a   : > { %1611 = vmax.xlane.f32.xlu2 %v1610_v47 }
 0x64b   : > { %v1697_v43 = vpop.permute.xlu0 %1696 }
 0x64c   : > { %1718 = vmatpush.bf16.msra.mxu3 %v1697_v43 }
 0x656   : > { %1414 = vrot.lane.b32.xlu1 %v2584_v25, %s2168_s9 }
 0x662   : > { %1692 = vrot.lane.b32.xlu2 %v2584_v25, %s2169_s10 }
 0x664   : > { %v1076_v41 = vpop.xlane.xlu2 %1075 }
 0x665   : > { %2088 = vrcp.f32 %v1076_v41  ;;  %v1346_v41 = vsub.f32 %v2810_v52, %v2870_v61 }
 0x66a   : > { %1412 = vrot.lane.b32.xlu2 %v2579_v58, %s2168_s9 }
 0x66b   : > { %v2089_v2 = vpop.eup %2088 }
 0x66c   : > { %v1600_v45 = vpop.xlane.xlu2 %1599  ;;  %v1092_v22 = vmul.f32 %v2089_v2, %v2844_v35  ;;  %v1362_v2 = vmul.f32 1.442695, %v1349_v27 }
 0x66d   : > { %v1622_v40 = vsub.f32 %v2852_v37, %v1600_v45  ;;  %v1350_v37 = vsub.f32 %v2826_v55, %v2893_v31  ;;  %v1625_v55 = vsub.f32 %v2834_v49, %v1609_v14  ;;  %v1343_v14 = vpop.xlane.xlu1 %1342 }
 0x66e   : > { %v1130_v53 = vpop.f32.mrf.mxu0  ;;  %v1096_v25 = vpack.c.bf16 %v1092_v22, %v1091_v5  ;;  %v1356_v5 = vmul.f32 1.442695, %v1346_v41 }
 0x66f   : > { %v1630_v44 = vmul.f32 1.442695, %v1622_v40  ;;  %v1636_v51 = vmul.f32 1.442695, %v1625_v55 }
 0x670   : > { %1918 = vmatmul.msk.bf16.gmra.mxu0 %vm778_vm7, %v1096_v25 }
 0x671   : > { %2090 = vpow2.f32 %v1630_v44 }
 0x672   : > { %1690 = vrot.lane.b32.xlu2 %v2579_v58, %s2169_s10  ;;  %2092 = vpow2.f32 %v1358_v56  ;;  %v1364_v58 = vmul.f32 1.442695, %v1350_v37 }
 0x673   : > { %2094 = vpow2.f32 %v1360_v23 }
 0x674   : > { %v1606_v35 = vpop.xlane.xlu2 %1605  ;;  %2096 = vpow2.f32 %v1364_v58 }
 0x675   : > { %v1624_v57 = vsub.f32 %v2856_v18, %v1606_v35 }
 0x676   : > { %v1132_v29 = vpop.f32.mrf.mxu0  ;;  %v1615_v46 = vpop.xlane.xlu0 %1614 }
 0x677   : > { %v2934_v17 = vpop.eup %2090  ;;  %v1150_v21 = vpack.c.bf16 %v1132_v29, %v1130_v53  ;;  %v1634_v20 = vmul.f32 1.442695, %v1624_v57  ;;  %v1627_v9 = vsub.f32 %v2858_v38, %v1615_v46 }
 0x678   : > { %v1646_v19 = vsel %vm778_vm7, %v2934_v17, 0.0  ;;  %v2940_v42 = vpop.eup %2092 }
 0x679   : > { %1919 = vmatmul.msk.bf16.vlgmr.msra.gmra.mxu2 %vm716_vm6, %v1150_v21  ;;  %1647 = vadd.xlane.f32.xlu0 %v1646_v19  ;;  %v2942_v15 = vpop.eup %2094  ;;  %2098 = vpow2.f32 %v1634_v20  ;;  %v1377_v18 = vsel %vm778_vm7, %v2940_v42, 0.0  ;;  %v1640_v40 = vmul.f32 1.442695, %v1627_v9 }
 0x67a   : > { %v1380_v31 = vsel %vm778_vm7, %v2942_v15, 0.0  ;;  %v2949_v47 = vpop.eup %2096  ;;  %2100 = vpow2.f32 %v1636_v51 }
 0x67b   : > { %v1386_v49 = vsel %vm778_vm7, %v2949_v47, 0.0  ;;  %2102 = vpow2.f32 %v1362_v2 }
 0x67c   : > { %v1417_v59 = vpop.permute.xlu2 %1416  ;;  %2104 = vpow2.f32 %v1356_v5 }
 0x67d   : > { %1441 = vmatpush.bf16.msra.mxu0 %v1417_v59  ;;  %2106 = vpow2.f32 %v1640_v40 }
 0x67e   : > { %v1618_v33 = vpop.xlane.xlu0 %1617 }
 0x67f   : > { %v2951_v34 = vpop.eup %2098  ;;  %v1628_v61 = vsub.f32 %v2864_v39, %v1618_v33 }
 0x680   : > { %1378 = vadd.xlane.f32.xlu1 %v1377_v18  ;;  %v1652_v30 = vsel %vm778_vm7, %v2951_v34, 0.0  ;;  %v2961_v45 = vpop.eup %2100 }
 0x681   : > { %1381 = vadd.xlane.f32.xlu0 %v1380_v31  ;;  %v1655_v22 = vsel %vm778_vm7, %v2961_v45, 0.0  ;;  %v2966_v53 = vpop.eup %2102  ;;  %v1642_v44 = vmul.f32 1.442695, %v1628_v61 }
 0x682   : > { %v2968_v52 = vpop.eup %2104  ;;  %v1383_v48 = vsel %vm778_vm7, %v2966_v53, 0.0 }
 0x683   : > { %v1374_v38 = vsel %vm778_vm7, %v2968_v52, 0.0  ;;  %v2975_v56 = vpop.eup %2106  ;;  %2108 = vpow2.f32 %v1642_v44 }
 0x684   : > { %v1695_v43 = vpop.permute.xlu2 %1694  ;;  %v1661_v35 = vsel %vm778_vm7, %v2975_v56, 0.0 }
 0x685   : > { %1719 = vmatpush.bf16.msra.mxu3 %v1695_v43  ;;  %v1351_v43 = vsub.f32 %v2797_v10, %v1343_v14 }
 0x688   : > { %1387 = vadd.xlane.f32.xlu1 %v1386_v49 }
 0x689   : > { %1653 = vadd.xlane.f32.xlu0 %v1652_v30  ;;  %v2980_v57 = vpop.eup %2108  ;;  %v1366_v30 = vmul.f32 1.442695, %v1351_v43 }
 0x68a   : > { %v1664_v21 = vsel %vm778_vm7, %v2980_v57, 0.0 }
 0x690   : > { %v1370_v28 = vpop.xlane.xlu1 %1369 }
 0x691   : > { %1656 = vadd.xlane.f32.xlu0 %v1655_v22 }
 0x698   : > { %v1373_v25 = vpop.xlane.xlu1 %1372 }
 0x699   : > { %1384 = vadd.xlane.f32.xlu0 %v1383_v48 }
 0x69b   : > { %1375 = vadd.xlane.f32.xlu2 %v1374_v38 }
 0x6a0   : > { %v1621_v23 = vpop.xlane.xlu1 %1620 }
 0x6a1   : > { %v1629_v37 = vsub.f32 %v2891_v32, %v1621_v23  ;;  %1662 = vadd.xlane.f32.xlu0 %v1661_v35 }
 0x6a3   : > { %v1644_v39 = vmul.f32 1.442695, %v1629_v37 }
 0x6a4   : > { %v1135_v29 = vpop.f32.mrf.mxu0 }
 0x6a5   : > { %2110 = vpow2.f32 %v1644_v39 }
 0x6a6   : > { %2112 = vrcp.f32 %v1373_v25 }
 0x6a9   : > { %1665 = vadd.xlane.f32.xlu0 %v1664_v21 }
 0x6ab   : > { %v2984_v19 = vpop.eup %2110 }
 0x6ac   : > { %v1137_v58 = vpop.f32.mrf.mxu0  ;;  %v1667_v20 = vsel %vm778_vm7, %v2984_v19, 0.0  ;;  %v2113_v46 = vpop.eup %2112 }
 0x6ad   : > { %v1151_v59 = vpack.c.bf16 %v1137_v58, %v1135_v29  ;;  %1668 = vadd.xlane.f32.xlu1 %v1667_v20  ;;  %v1401_v10 = vmul.f32 %v2113_v46, %v2882_v26 }
 0x6af   : > { %1920 = vmatmul.msk.bf16.gmra.mxu2 %vm716_vm6, %v1151_v59 }
 0x6b0   : > { %v1651_v27 = vpop.xlane.xlu1 %1650 }
 0x6b4   : > { %v1140_v32 = vpop.f32.mrf.mxu0 }
 0x6bc   : > { %v1142_v55 = vpop.f32.mrf.mxu0 }
 0x6bd   : > { %v1152_v18 = vpack.c.bf16 %v1142_v55, %v1140_v32  ;;  %v1612_v31 = vpop.xlane.xlu2 %1611 }
 0x6be   : > { %v1626_v51 = vsub.f32 %v2906_v63, %v1612_v31 }
 0x6bf   : > { %1921 = vmatmul.msk.bf16.gmra.mxu2 %vm716_vm6, %v1152_v18 }
 0x6c0   : > { %v1638_v49 = vmul.f32 1.442695, %v1626_v51 }
 0x6c2   : > { %2114 = vpow2.f32 %v1638_v49 }
 0x6c3   : > { %2116 = vrcp.f32 %v1370_v28 }
 0x6c4   : > { %2118 = vpow2.f32 %v1366_v30 }
 0x6c5   : > { %v1693_v41 = vpop.permute.xlu2 %1692  ;;  %2120 = vrcp.f32 %v1651_v27 }
 0x6c6   : > { %1720 = vmatpush.bf16.msra.mxu3 %v1693_v41 }
 0x6c8   : > { %v2992_v2 = vpop.eup %2114  ;;  %v1415_v5 = vpop.permute.xlu1 %1414 }
 0x6c9   : > { %1442 = vmatpush.bf16.msra.mxu0 %v1415_v5  ;;  %v1658_v63 = vsel %vm778_vm7, %v2992_v2, 0.0  ;;  %v2117_v9 = vpop.eup %2116 }
 0x6ca   : > { %1659 = vadd.xlane.f32.xlu2 %v1658_v63  ;;  %v1400_v14 = vmul.f32 %v2117_v9, %v2874_v11  ;;  %v2998_v40 = vpop.eup %2118  ;;  %v699_v63 = vld [vmem:[%s3091_s5 + $0xc] sm:$0xf] }
 0x6cb   : > { %v1389_v33 = vsel %vm778_vm7, %v2998_v40, 0.0  ;;  %v2121_v26 = vpop.eup %2120  ;;  %v1760_v9 = vsel %vm1166_vm8, %v699_v63, 0 }
 0x6cc   : > { %v1408_v28 = vpack.c.bf16 %v1401_v10, %v1400_v14  ;;  %v1679_v11 = vmul.f32 %v2121_v26, %v2901_v4 }
 0x6cd   : > { %v1413_v22 = vpop.permute.xlu2 %1412 }
 0x6ce   : > { %1443 = vmatpush.bf16.msra.mxu0 %v1413_v22 }
 0x6d1   : > { %1931 = vmatmul.msk.bf16.vlgmr.msra.gmra.mxu0 %vm778_vm7, %v1408_v28 }
 0x6d2   : > { %1390 = vadd.xlane.f32.xlu2 %v1389_v33  ;;  %1769 = vmatpush.bf16.msrb.mxu0 %v1760_v9 }
 0x6d5   : > { %v1691_v61 = vpop.permute.xlu2 %1690 }
 0x6d6   : > { %1721 = vmatpush.bf16.msra.mxu3 %v1691_v61 }
 0x6ec   : > { %v1648_v25 = vpop.xlane.xlu0 %1647 }
 0x6ed   : > { %2122 = vrcp.f32 %v1648_v25  ;;  %v1145_v48 = vpop.f32.mrf.mxu0 }
 0x6f3   : > { %v2123_v38 = vpop.eup %2122  ;;  %v1379_v20 = vpop.xlane.xlu1 %1378 }
 0x6f4   : > { %v1678_v44 = vmul.f32 %v2123_v38, %v2934_v17  ;;  %v1382_v23 = vpop.xlane.xlu0 %1381 }
 0x6f5   : > { %v1147_v35 = vpop.f32.mrf.mxu0 }
 0x6f6   : > { %v1686_v37 = vpack.c.bf16 %v1679_v11, %v1678_v44  ;;  %v1153_v39 = vpack.c.bf16 %v1147_v35, %v1145_v48 }
 0x6f8   : > { %1922 = vmatmul.msk.bf16.gmra.mxu2 %vm716_vm6, %v1153_v39  ;;  %1943 = vmatmul.msk.bf16.vlgmr.msra.gmra.mxu3 %vm778_vm7, %v1686_v37 }
 0x6fc   : > { %v1654_v29 = vpop.xlane.xlu0 %1653 }
 0x6fd   : > { %2124 = vrcp.f32 %v1654_v29 }
 0x703   : > { %v2125_v58 = vpop.eup %2124 }
 0x704   : > { %v1657_v21 = vpop.xlane.xlu0 %1656  ;;  %v1680_v32 = vmul.f32 %v2125_v58, %v2951_v34 }
 0x705   : > { %2126 = vrcp.f32 %v1657_v21 }
 0x706   : > { %2128 = vrcp.f32 %v1379_v20 }
 0x70b   : > { %v2127_v59 = vpop.eup %2126 }
 0x70c   : > { %v1681_v4 = vmul.f32 %v2127_v59, %v2961_v45  ;;  %v2129_v18 = vpop.eup %2128  ;;  %v1385_v27 = vpop.xlane.xlu0 %1384 }
 0x70d   : > { %v1403_v43 = vmul.f32 %v2129_v18, %v2940_v42 }
 0x70e   : > { %v1376_v17 = vpop.xlane.xlu2 %1375  ;;  %v1687_v55 = vpack.c.bf16 %v1681_v4, %v1680_v32 }
 0x70f   : > { %2130 = vrcp.f32 %v1376_v17 }
 0x710   : > { %1944 = vmatmul.msk.bf16.gmra.mxu3 %vm778_vm7, %v1687_v55  ;;  %2132 = vrcp.f32 %v1385_v27 }
 0x711   : > { %2134 = vrcp.f32 %v1382_v23 }
 0x714   : > { %v1663_v5 = vpop.xlane.xlu0 %1662 }
 0x715   : > { %v2131_v31 = vpop.eup %2130  ;;  %2136 = vrcp.f32 %v1663_v5 }
 0x716   : > { %v1402_v51 = vmul.f32 %v2131_v31, %v2968_v52  ;;  %v2133_v34 = vpop.eup %2132  ;;  %v698_v52 = vld [vmem:[%s3091_s5 + $0x8] sm:$0xf] }
 0x717   : > { %v2135_v45 = vpop.eup %2134  ;;  %v1405_v30 = vmul.f32 %v2133_v34, %v2966_v53  ;;  %v1482_v42 = vsel %vm1166_vm8, %v698_v52, 0  ;;  %v1388_v53 = vpop.xlane.xlu1 %1387 }
 0x718   : > { %v1409_v49 = vpack.c.bf16 %v1403_v43, %v1402_v51  ;;  %v1404_v41 = vmul.f32 %v2135_v45, %v2942_v15  ;;  %1491 = vmatpush.bf16.msrb.mxu2 %v1482_v42  ;;  %v1179_v51 = vpop.f32.mrf.mxu2 }
 0x71a   : > { %1932 = vmatmul.msk.bf16.gmra.mxu0 %vm778_vm7, %v1409_v49  ;;  %v1410_v46 = vpack.c.bf16 %v1405_v30, %v1404_v41 }
 0x71b   : > { %v2137_v10 = vpop.eup %2136 }
 0x71c   : > { %v1683_v33 = vmul.f32 %v2137_v10, %v2975_v56  ;;  %v1666_v48 = vpop.xlane.xlu0 %1665 }
 0x720   : > { %v1669_v61 = vpop.xlane.xlu1 %1668  ;;  %v1181_v43 = vpop.f32.mrf.mxu2 }
 0x72a   : > { %1933 = vmatmul.msk.bf16.gmra.mxu0 %vm778_vm7, %v1410_v46 }
 0x732   : > { %v1184_v27 = vpop.f32.mrf.mxu2 }
 0x73a   : > { %v1186_v45 = vpop.f32.mrf.mxu2 }
 0x73d   : > { %v1660_v15 = vpop.xlane.xlu2 %1659 }
 0x73e   : > { %2138 = vrcp.f32 %v1660_v15 }
 0x73f   : > { %2140 = vrcp.f32 %v1388_v53 }
 0x742   : > { %v1189_v42 = vpop.f32.mrf.mxu2 }
 0x744   : > { %v2139_v14 = vpop.eup %2138 }
 0x745   : > { %v1391_v22 = vpop.xlane.xlu2 %1390  ;;  %v1682_v28 = vmul.f32 %v2139_v14, %v2992_v2  ;;  %v2141_v26 = vpop.eup %2140 }
 0x746   : > { %2142 = vrcp.f32 %v1391_v22  ;;  %v1406_v11 = vmul.f32 %v2141_v26, %v2949_v47  ;;  %v1224_v22 = vadd.f32 %v2748_v3, %v1179_v51  ;;  %v1226_v3 = vadd.f32 %v2752_v36, %v1181_v43 }
 0x747   : > { %v1688_v25 = vpack.c.bf16 %v1683_v33, %v1682_v28  ;;  %2144 = vrcp.f32 %v1669_v61 }
 0x748   : > { %2146 = vrcp.f32 %v1666_v48  ;;  %v2148_v48 = vld [vmem:[%s2226_s29] sm:$0xff] }
 0x749   : > { %1945 = vmatmul.msk.bf16.gmra.mxu3 %vm778_vm7, %v1688_v25  ;;  %v1983_v25 = vld [vmem:[%s3092_s6] ss:$0 sm:$0xff] }
 0x74a   : > { %v1191_v63 = vpop.f32.mrf.mxu2 }
 0x74c   : > { %v2143_v38 = vpop.eup %2142 }
 0x74d   : > { %v1407_v44 = vmul.f32 %v2143_v38, %v2998_v40  ;;  %v2145_v37 = vpop.eup %2144 }
 0x74e   : > { %v1445_v23 = vpop.f32.mrf.mxu0  ;;  %v2147_v56 = vpop.eup %2146  ;;  %v1685_v2 = vmul.f32 %v2145_v37, %v2984_v19 }
 0x74f   : > { %v1411_v35 = vpack.c.bf16 %v1407_v44, %v1406_v11  ;;  %v1684_v39 = vmul.f32 %v2147_v56, %v2980_v57 }
 0x751   : > { %1934 = vmatmul.msk.bf16.gmra.mxu0 %vm778_vm7, %v1411_v35  ;;  %v1689_v58 = vpack.c.bf16 %v1685_v2, %v1684_v39  ;;  %v1229_v2 = vadd.f32 %v2758_v50, %v1184_v27 }
 0x756   : > { %v1447_v29 = vpop.f32.mrf.mxu0 }
 0x757   : > { %v1465_v21 = vpack.c.bf16 %v1447_v29, %v1445_v23 }
 0x759   : > { %1935 = vmatmul.msk.bf16.vlgmr.msrb.gmra.mxu2 %vm716_vm6, %v1465_v21  ;;  %1946 = vmatmul.msk.bf16.gmra.mxu3 %vm778_vm7, %v1689_v58 }
 0x77b   : > { %v1723_v47 = vpop.f32.mrf.mxu3  ;;  %v1194_v53 = vpop.f32.mrf.mxu2 }
 0x783   : > { %v1725_v20 = vpop.f32.mrf.mxu3  ;;  %v1196_v10 = vpop.f32.mrf.mxu2 }
 0x784   : > { %v1743_v40 = vpack.c.bf16 %v1725_v20, %v1723_v47  ;;  %v1231_v47 = vadd.f32 %v2766_v54, %v1186_v45 }
 0x786   : > { %1947 = vmatmul.msk.bf16.vlgmr.msrb.gmra.mxu0 %vm716_vm6, %v1743_v40 }
 0x793   : > { %v1728_v59 = vpop.f32.mrf.mxu3 }
 0x797   : > { %v1450_v32 = vpop.f32.mrf.mxu0 }
 0x79b   : > { %v1730_v4 = vpop.f32.mrf.mxu3 }
 0x79c   : > { %v1744_v17 = vpack.c.bf16 %v1730_v4, %v1728_v59 }
 0x79e   : > { %1948 = vmatmul.msk.bf16.gmra.mxu0 %vm716_vm6, %v1744_v17 }
 0x79f   : > { %v1452_v19 = vpop.f32.mrf.mxu0 }
 0x7a0   : > { %v1466_v57 = vpack.c.bf16 %v1452_v19, %v1450_v32  ;;  %v1234_v19 = vadd.f32 %v2776_v60, %v1189_v42  ;;  %v1239_v60 = vadd.f32 %v2791_v16, %v1194_v53 }
 0x7a2   : > { %1936 = vmatmul.msk.bf16.gmra.mxu2 %vm716_vm6, %v1466_v57 }
 0x7a7   : > { %v1455_v55 = vpop.f32.mrf.mxu0 }
 0x7af   : > { %v1457_v18 = vpop.f32.mrf.mxu0 }
 0x7b0   : > { %v1467_v31 = vpack.c.bf16 %v1457_v18, %v1455_v55 }
 0x7b2   : > { %1937 = vmatmul.msk.bf16.gmra.mxu2 %vm716_vm6, %v1467_v31  ;;  %v1236_v31 = vadd.f32 %v2784_v62, %v1191_v63 }
 0x7cc   : > { %v1733_v49 = vpop.f32.mrf.mxu3 }
 0x7ce   : > { %v1460_v34 = vpop.f32.mrf.mxu0 }
 0x7d4   : > { %v1735_v30 = vpop.f32.mrf.mxu3 }
 0x7d5   : > { %v1745_v41 = vpack.c.bf16 %v1735_v30, %v1733_v49 }
 0x7d6   : > { %v1462_v46 = vpop.f32.mrf.mxu0 }
 0x7d7   : > { %v1468_v52 = vpack.c.bf16 %v1462_v46, %v1460_v34  ;;  %1949 = vmatmul.msk.bf16.gmra.mxu0 %vm716_vm6, %v1745_v41 }
 0x7d9   : > { %1938 = vmatmul.msk.bf16.gmra.mxu2 %vm716_vm6, %v1468_v52  ;;  %v1241_v52 = vadd.f32 %v2799_v24, %v1196_v10 }
 0x7dc   : > { %v1738_v5 = vpop.f32.mrf.mxu3  ;;  %v1493_v14 = vpop.f32.mrf.mxu2 }
 0x7dd   : > { %v1513_v28 = vadd.f32 %v1493_v14, %v1224_v22 }
 0x7e4   : > { %v1740_v9 = vpop.f32.mrf.mxu3  ;;  %v1495_v38 = vpop.f32.mrf.mxu2 }
 0x7e5   : > { %v1746_v15 = vpack.c.bf16 %v1740_v9, %v1738_v5  ;;  %v1514_v44 = vadd.f32 %v1495_v38, %v1226_v3 }
 0x7e7   : > { %1950 = vmatmul.msk.bf16.gmra.mxu0 %vm716_vm6, %v1746_v15 }
 0x803   : > { %v1771_v33 = vpop.f32.mrf.mxu0 }
 0x804   : > { %v1791_v61 = vadd.f32 %v1771_v33, %v1513_v28 }
 0x806   : > { %v1799_v26 = vadd.f32 %v2148_v48, %v1791_v61 }
 0x808   : > { %v1811_v11 = vadd.f32 %v1983_v25, %v1799_v26 }
 0x80a   : > { %1819 = vst.msk [vmem:[%s3051_s21] sm:$0xff] %vm290_vm0, %v1811_v11 }
 0x80b   : > { %v1773_v23 = vpop.f32.mrf.mxu0 }
 0x80c   : > { %v1792_v35 = vadd.f32 %v1773_v23, %v1514_v44 }
 0x80e   : > { %v1800_v37 = vadd.f32 %v1792_v35, %v2247_v8 }
 0x810   : > { %v1812_v56 = vadd.f32 %v1983_v25, %v1800_v37 }
 0x812   : > { %1820 = vst.msk [vmem:[%s3051_s21 + $0x8] sm:$0xff] %vm290_vm0, %v1812_v56 }
 0x81b   : > { %v1776_v39 = vpop.f32.mrf.mxu0 }
 0x823   : > { %v1778_v8 = vpop.f32.mrf.mxu0 }
 0x825   : > { %v1498_v29 = vpop.f32.mrf.mxu2 }
 0x826   : > { %v1515_v21 = vadd.f32 %v1498_v29, %v1229_v2 }
 0x828   : > { %v1793_v58 = vadd.f32 %v1776_v39, %v1515_v21 }
 0x82a   : > { %v1801_v36 = vadd.f32 %v1793_v58, %v2256_v12 }
 0x82c   : > { %v1813_v20 = vadd.f32 %v1983_v25, %v1801_v36 }
 0x82d   : > { %v1500_v40 = vpop.f32.mrf.mxu2 }
 0x82e   : > { %1821 = vst.msk [vmem:[%s3051_s21 + $0x10] sm:$0xff] %vm290_vm0, %v1813_v20  ;;  %v1516_v59 = vadd.f32 %v1500_v40, %v1231_v47 }
 0x830   : > { %v1794_v32 = vadd.f32 %v1778_v8, %v1516_v59 }
 0x832   : > { %v1802_v4 = vadd.f32 %v1794_v32, %v2259_v13 }
 0x834   : > { %v1814_v17 = vadd.f32 %v1983_v25, %v1802_v4 }
 0x835   : > { %v1503_v50 = vpop.f32.mrf.mxu2 }
 0x836   : > { %1822 = vst.msk [vmem:[%s3051_s21 + $0x18] sm:$0xff] %vm290_vm0, %v1814_v17  ;;  %v1517_v57 = vadd.f32 %v1503_v50, %v1234_v19 }
 0x83d   : > { %v1505_v55 = vpop.f32.mrf.mxu2 }
 0x83e   : > { %v1518_v43 = vadd.f32 %v1505_v55, %v1236_v31 }
 0x854   : > { %v1781_v12 = vpop.f32.mrf.mxu0 }
 0x855   : > { %v1795_v54 = vadd.f32 %v1781_v12, %v1517_v57 }
 0x857   : > { %v1803_v18 = vadd.f32 %v1795_v54, %v2232_v1 }
 0x859   : > { %v1815_v51 = vadd.f32 %v1983_v25, %v1803_v18 }
 0x85b   : > { %1823 = vst.msk [vmem:[%s3051_s21 + $0x20] sm:$0xff] %vm290_vm0, %v1815_v51 }
 0x85c   : > { %v1783_v13 = vpop.f32.mrf.mxu0  ;;  %v1508_v49 = vpop.f32.mrf.mxu2 }
 0x85d   : > { %v1796_v27 = vadd.f32 %v1783_v13, %v1518_v43  ;;  %v1519_v30 = vadd.f32 %v1508_v49, %v1239_v60 }
 0x85f   : > { %v1804_v34 = vadd.f32 %v1796_v27, %v2244_v7 }
 0x861   : > { %v1816_v45 = vadd.f32 %v1983_v25, %v1804_v34 }
 0x863   : > { %1824 = vst.msk [vmem:[%s3051_s21 + $0x28] sm:$0xff] %vm290_vm0, %v1816_v45 }
 0x864   : > { %v1786_v1 = vpop.f32.mrf.mxu0  ;;  %v1510_v46 = vpop.f32.mrf.mxu2 }
 0x865   : > { %v1797_v41 = vadd.f32 %v1786_v1, %v1519_v30  ;;  %v1520_v5 = vadd.f32 %v1510_v46, %v1241_v52 }
 0x867   : > { %v1805_v62 = vadd.f32 %v1797_v41, %v2229_v0 }
 0x869   : > { %v1817_v42 = vadd.f32 %v1983_v25, %v1805_v62 }
 0x86b   : > { %1825 = vst.msk [vmem:[%s3051_s21 + $0x30] sm:$0xff] %vm290_vm0, %v1817_v42 }
 0x86c   : > { %v1788_v63 = vpop.f32.mrf.mxu0 }
 0x86d   : > { %v1798_v7 = vadd.f32 %v1788_v63, %v1520_v5 }
 0x86f   : > { %v1806_v16 = vadd.f32 %v1798_v7, %v2241_v6 }
 0x871   : > { %v1818_v9 = vadd.f32 %v1983_v25, %v1806_v16 }
 0x873   : > { %1826 = vst.msk [vmem:[%s3051_s21 + $0x38] sm:$0xff] %vm290_vm0, %v1818_v9 }
 0x874 PF: > { %s17_s24 = sadd.s32 1, %s2155_s24  }
 0x875   : > { %p14_p4 = scmp.ge.s32.totalorder %s17_s24, 6  }
 0x877   :  { %16 = sbr.rel (!%p14_p4) target bundleno = 1 (0x1), region = 78 }

// kernel: decoder_block_forward.4
= control target key start
LH: loop header
LB: loop body
LE: loop exit
PB: predicated region body
PF: predicated region fallthrough
CT: control target
= control target key end

     0   :  { %s2423_s13 = smov 0   ;;  %s3396_s0 = inlined_call_operand.vmem [shape: f32[4,64,32], index: 0, kind: input, shape index: {}, may-alias: {0,10}]   ;;  %s3397_s1 = inlined_call_operand.vmem [shape: f32[4,64,32], index: 1, kind: input, shape index: {}]   ;;  %s3398_s2 = inlined_call_operand.vmem [shape: f32[1,32], index: 2, kind: input, shape index: {}]   ;;  %s3399_s3 = inlined_call_operand.vmem [shape: f32[1,32], index: 3, kind: input, shape index: {}]   ;;  %s3400_s4 = inlined_call_operand.vmem [shape: bf16[32,32], index: 4, kind: input, shape index: {}]   ;;  %s3401_s5 = inlined_call_operand.vmem [shape: f32[1,32], index: 5, kind: input, shape index: {}]   ;;  %s3402_s6 = inlined_call_operand.vmem [shape: bf16[32,64], index: 6, kind: input, shape index: {}]   ;;  %s3403_s7 = inlined_call_operand.vmem [shape: f32[1,64], index: 7, kind: input, shape index: {}]   ;;  %s3404_s8 = inlined_call_operand.vmem [shape: bf16[32,32], index: 8, kind: input, shape index: {}]   ;;  %s3405_s9 = inlined_call_operand.vmem [shape: f32[1,32], index: 9, kind: input, shape index: {}]   ;;  %s3406_s10 = inlined_call_operand.vmem [shape: f32[4,64,32], index: 10, kind: output, shape index: {}, may-alias: {0,10}]  }
   0x1 LB: > { %s2068_s14 = sadd.s32 4294967295, %s2357_s13   ;;  %p2072_p0 = scmp.ge.s32.totalorder %s2357_s13, 1  ;;  %s2357_s13 = sphi %s2423_s13, %s20_s13  }
   0x2   : > { %p322_p1 = scmp.lt.s32.totalorder %s2357_s13, 5 }
   0x4   : > { %p323_p2 = pnand %p2072_p0, %p322_p1 }
   0x5   : > { %p365_p3 = scmp.lt.s32.totalorder (!%p323_p2), %s2068_s14, 3  ;;  %s2361_s19 = smov (!%p323_p2), 96  }
   0x6   : > { %326 = sbr.rel (%p323_p2) target bundleno = 1954 (0x7a2), region = 60  ;;  %s2362_s22 = smov (!%p323_p2), 120  }
   0x7   : > { %s2363_s23 = smov (!%p323_p2), 104   ;;  %s2364_s24 = smov (!%p323_p2), 112  }
   0x8   : > { %s2365_s27 = smov (!%p323_p2), 88   ;;  %s2366_s28 = smov (!%p323_p2), 80  }
   0x9   : > { %s2367_s29 = smov (!%p323_p2), 72  }
   0xb   : > { %s3424_s14 = smov (!%p365_p3, %s2068_s14), 3  ;;  %vm403_vm0 = vcmask 261120   ;;  %v2359_v16 = vmov 32.0   ;;  %v2159_v27 = vld [vmem:[%s3402_s6 + $0x8] sm:$0xff]  ;;  %v2158_v29 = vld [vmem:[%s3402_s6] sm:$0xff] }
   0xc   : > { %s2431_s15 = sshll.u32 %s3424_s14, 6  ;;  %2186 = vrcp.f32 %v2359_v16  ;;  %2162 = vmatpush.bf16.msra.mxu2 %v2159_v27  ;;  %847 = vmatpush.bf16.msra.mxu1 %v2159_v27 }
   0xd   : > { %s2437_s18 = scalar_lea.vmem %s3396_s0, %s2431_s15  ;;  %s2480_s21 = scalar_lea.vmem %s3397_s1, %s2431_s15 }
   0xe   : > { %v2440_v0 = vld [vmem:[%s2437_s18 + $0x20] sm:$0xff]  ;;  %v2443_v1 = vld [vmem:[%s2437_s18 + $0x10] sm:$0xff]  ;;  %v2452_v6 = vld [vmem:[%s2437_s18 + $0x28] sm:$0xff] }
   0xf   : > { %v381_v2 = vld [vmem:[%s2437_s18] sm:$0xff]  ;;  %v416_v3 = vsel %vm403_vm0, %v2440_v0, 0.0  ;;  %v410_v4 = vsel %vm403_vm0, %v2443_v1, 0.0  ;;  %v2455_v7 = vld [vmem:[%s2437_s18 + $0x18] sm:$0xff]  ;;  %v2458_v8 = vld [vmem:[%s2437_s18 + $0x8] sm:$0xff]  ;;  %v419_v9 = vsel %vm403_vm0, %v2452_v6, 0.0 }
  0x10   : > { %v404_v5 = vsel %vm403_vm0, %v381_v2, 0.0  ;;  %417 = vadd.xlane.f32.xlu2 %v416_v3  ;;  %411 = vadd.xlane.f32.xlu1 %v410_v4  ;;  %v413_v10 = vsel %vm403_vm0, %v2455_v7, 0.0  ;;  %v407_v11 = vsel %vm403_vm0, %v2458_v8, 0.0  ;;  %v2467_v12 = vld [vmem:[%s2437_s18 + $0x38] sm:$0xff]  ;;  %v2470_v13 = vld [vmem:[%s2437_s18 + $0x30] sm:$0xff]  ;;  %v393_v30 = vld [vmem:[%s2480_s21 + $0x20] sm:$0xff] }
  0x11   : > { %405 = vadd.xlane.f32.xlu0 %v404_v5  ;;  %v425_v14 = vsel %vm403_vm0, %v2467_v12, 0.0  ;;  %v422_v15 = vsel %vm403_vm0, %v2470_v13, 0.0  ;;  %v394_v32 = vld [vmem:[%s2480_s21 + $0x28] sm:$0xff]  ;;  %v389_v33 = vld [vmem:[%s2480_s21] sm:$0xff]  ;;  %2163 = vmatpush.bf16.msra.mxu2 %v2158_v29  ;;  %v396_v3 = vld [vmem:[%s2480_s21 + $0x38] sm:$0xff] }
  0x12   : > { %v2187_v17 = vpop.eup %2186  ;;  %v390_v34 = vld [vmem:[%s2480_s21 + $0x8] sm:$0xff]  ;;  %v399_v38 = vpack.c.bf16 %v394_v32, %v393_v30  ;;  %848 = vmatpush.bf16.msra.mxu1 %v2158_v29 }
  0x13   : > { %v429_v18 = vmul.f32 32.0, %v2187_v17  ;;  %vm433_vm1 = vweird.f32 %v2187_v17  ;;  %v397_v39 = vpack.c.bf16 %v390_v34, %v389_v33 }
  0x14   : > { %2101 = vmatmul.msk.bf16.vlgmr.msra.gmra.mxu2 %vm403_vm0, %v399_v38 }
  0x15   : > { %v430_v19 = vsub.f32 1.0, %v429_v18  ;;  %2099 = vmatmul.msk.bf16.vlgmr.msra.gmra.mxu1 %vm403_vm0, %v397_v39  ;;  %v391_v18 = vld [vmem:[%s2480_s21 + $0x10] sm:$0xff] }
  0x17   : > { %v431_v20 = vmul.f32 %v2187_v17, %v430_v19  ;;  %v392_v19 = vld [vmem:[%s2480_s21 + $0x18] sm:$0xff] }
  0x18   : > { %420 = vadd.xlane.f32.xlu2 %v419_v9  ;;  %414 = vadd.xlane.f32.xlu1 %v413_v10 }
  0x19   : > { %408 = vadd.xlane.f32.xlu0 %v407_v11  ;;  %v432_v21 = vadd.f32 %v2187_v17, %v431_v20  ;;  %v398_v20 = vpack.c.bf16 %v392_v19, %v391_v18 }
  0x1b   : > { %v434_v22 = vsel %vm433_vm1, %v2187_v17, %v432_v21  ;;  %v2360_v17 = vmov 31.0  }
  0x1c   : > { %2188 = vrcp.f32 %v2360_v17 }
  0x20   : > { %426 = vadd.xlane.f32.xlu1 %v425_v14 }
  0x21   : > { %423 = vadd.xlane.f32.xlu0 %v422_v15 }
  0x22   : > { %v2189_v21 = vpop.eup %2188 }
  0x23   : > { %vm488_vm2 = vweird.f32 %v2189_v21 }
  0x25   : > { %2100 = vmatmul.msk.bf16.gmra.mxu1 %vm403_vm0, %v398_v20 }
  0x83   : > { %v418_v23 = vpop.xlane.xlu2 %417  ;;  %v412_v24 = vpop.xlane.xlu1 %411 }
  0x84   : > { %v437_v25 = vmul.f32 %v434_v22, %v412_v24  ;;  %v406_v26 = vpop.xlane.xlu0 %405  ;;  %v439_v47 = vmul.f32 %v434_v22, %v418_v23 }
  0x85   : > { %v435_v28 = vmul.f32 %v434_v22, %v406_v26 }
  0x86   : > { %v2490_v31 = vsub.f32 %v2443_v1, %v437_v25  ;;  %v2519_v54 = vsub.f32 %v2440_v0, %v439_v47 }
  0x87   : > { %v2495_v35 = vsub.f32 %v381_v2, %v435_v28  ;;  %v395_v2 = vld [vmem:[%s2480_s21 + $0x30] sm:$0xff] }
  0x88   : > { %v453_v36 = vmul.f32 %v2490_v31, %v2490_v31  ;;  %v455_v63 = vmul.f32 %v2519_v54, %v2519_v54  ;;  %v400_v11 = vpack.c.bf16 %v396_v3, %v395_v2 }
  0x89   : > { %v451_v37 = vmul.f32 %v2495_v35, %v2495_v35 }
  0x8a   : > { %v465_v40 = vsel %vm403_vm0, %v453_v36, 0.0  ;;  %v471_v9 = vsel %vm403_vm0, %v455_v63, 0.0  ;;  %2102 = vmatmul.msk.bf16.gmra.mxu2 %vm403_vm0, %v400_v11 }
  0x8b   : > { %v421_v41 = vpop.xlane.xlu2 %420  ;;  %466 = vadd.xlane.f32.xlu1 %v465_v40  ;;  %v415_v42 = vpop.xlane.xlu1 %414  ;;  %v459_v43 = vsel %vm403_vm0, %v451_v37, 0.0 }
  0x8c   : > { %v440_v44 = vmul.f32 %v434_v22, %v421_v41  ;;  %v438_v45 = vmul.f32 %v434_v22, %v415_v42  ;;  %460 = vadd.xlane.f32.xlu2 %v459_v43  ;;  %v409_v46 = vpop.xlane.xlu0 %408 }
  0x8d   : > { %v436_v48 = vmul.f32 %v434_v22, %v409_v46 }
  0x8e   : > { %v2506_v49 = vsub.f32 %v2452_v6, %v440_v44  ;;  %v2509_v50 = vsub.f32 %v2455_v7, %v438_v45  ;;  %v2574_v45 = vld [vmem:[%s3398_s2] ss:$0 sm:$0xff] }
  0x8f   : > { %v2512_v51 = vsub.f32 %v2458_v8, %v436_v48  ;;  %v2157_v48 = vld [vmem:[%s3400_s4 + $0x8] sm:$0xff] }
  0x90   : > { %v456_v52 = vmul.f32 %v2506_v49, %v2506_v49  ;;  %v454_v53 = vmul.f32 %v2509_v50, %v2509_v50  ;;  %786 = vmatpush.bf16.msra.mxu0 %v2157_v48  ;;  %2160 = vmatpush.bf16.msra.mxu3 %v2157_v48 }
  0x91   : > { %v452_v55 = vmul.f32 %v2512_v51, %v2512_v51 }
  0x92   : > { %v474_v56 = vsel %vm403_vm0, %v456_v52, 0.0  ;;  %v468_v57 = vsel %vm403_vm0, %v454_v53, 0.0 }
  0x93   : > { %475 = vadd.xlane.f32.xlu1 %v474_v56  ;;  %v462_v58 = vsel %vm403_vm0, %v452_v55, 0.0  ;;  %v427_v59 = vpop.xlane.xlu1 %426 }
  0x94   : > { %469 = vadd.xlane.f32.xlu2 %v468_v57  ;;  %463 = vadd.xlane.f32.xlu0 %v462_v58  ;;  %v424_v60 = vpop.xlane.xlu0 %423  ;;  %v442_v62 = vmul.f32 %v434_v22, %v427_v59  ;;  %v2156_v57 = vld [vmem:[%s3400_s4] sm:$0xff]  ;;  %v2584_v59 = vmul.f32 %v2574_v45, %v2495_v35 }
  0x95   : > { %v441_v61 = vmul.f32 %v434_v22, %v424_v60  ;;  %v484_v22 = vmul.f32 31.0, %v2189_v21  ;;  %787 = vmatpush.bf16.msra.mxu0 %v2156_v57  ;;  %2161 = vmatpush.bf16.msra.mxu3 %v2156_v57 }
  0x96   : > { %v2534_v5 = vsub.f32 %v2467_v12, %v442_v62 }
  0x97   : > { %v2531_v4 = vsub.f32 %v2470_v13, %v441_v61  ;;  %v485_v23 = vsub.f32 1.0, %v484_v22 }
  0x98   : > { %v458_v15 = vmul.f32 %v2534_v5, %v2534_v5 }
  0x99   : > { %v457_v10 = vmul.f32 %v2531_v4, %v2531_v4  ;;  %v486_v24 = vmul.f32 %v2189_v21, %v485_v23 }
  0x9a   : > { %v480_v16 = vsel %vm403_vm0, %v458_v15, 0.0 }
  0x9b   : > { %v477_v14 = vsel %vm403_vm0, %v457_v10, 0.0  ;;  %v487_v25 = vadd.f32 %v2189_v21, %v486_v24  ;;  %v2596_v10 = vmul.f32 %v2574_v45, %v2506_v49 }
  0x9c   : > { %472 = vadd.xlane.f32.xlu0 %v471_v9  ;;  %478 = vadd.xlane.f32.xlu2 %v477_v14  ;;  %v2602_v14 = vmul.f32 %v2574_v45, %v2512_v51 }
  0x9d   : > { %v2547_v26 = vsel %vm488_vm2, %v2189_v21, %v487_v25 }
  0xa4   : > { %481 = vadd.xlane.f32.xlu0 %v480_v16 }
  0xfe   : > { %v467_v27 = vpop.xlane.xlu1 %466 }
  0xff   : > { %v2550_v28 = vmul.f32 %v2547_v26, %v467_v27  ;;  %v461_v29 = vpop.xlane.xlu2 %460 }
 0x100   : > { %v2553_v30 = vmul.f32 %v2547_v26, %v461_v29 }
 0x101   : > { %2190 = vrsqrt.f32 %v2550_v28  ;;  %vm540_vm4 = vcmp.eq.f32.partialorder %v2550_v28, inf  ;;  %vm542_vm6 = vcmp.eq.f32.partialorder %v2550_v28, 0.0  ;;  %v543_v23 = vand.u32 2147483648, %v2550_v28 }
 0x102   : > { %2192 = vrsqrt.f32 %v2553_v30  ;;  %vm516_vm3 = vcmp.eq.f32.partialorder %v2553_v30, inf  ;;  %v519_v17 = vand.u32 2147483648, %v2553_v30  ;;  %vm518_vm5 = vcmp.eq.f32.partialorder %v2553_v30, 0.0 }
 0x106   : > { %v476_v32 = vpop.xlane.xlu1 %475 }
 0x107   : > { %v2191_v33 = vpop.eup %2190  ;;  %v2558_v34 = vmul.f32 %v2547_v26, %v476_v32  ;;  %v470_v36 = vpop.xlane.xlu2 %469 }
 0x108   : > { %v464_v37 = vpop.xlane.xlu0 %463  ;;  %v2193_v38 = vpop.eup %2192  ;;  %v534_v39 = vmul.f32 %v2191_v33, %v2550_v28  ;;  %v2562_v40 = vmul.f32 %v2547_v26, %v470_v36 }
 0x109   : > { %v2565_v41 = vmul.f32 %v2547_v26, %v464_v37  ;;  %v510_v42 = vmul.f32 %v2193_v38, %v2553_v30  ;;  %2194 = vrsqrt.f32 %v2558_v34  ;;  %vm576_vm7 = vcmp.eq.f32.partialorder %v2558_v34, inf }
 0x10a   : > { %v535_v43 = vmul.f32 %v2191_v33, %v534_v39  ;;  %2196 = vrsqrt.f32 %v2562_v40  ;;  %vm578_vm8 = vcmp.eq.f32.partialorder %v2558_v34, 0.0  ;;  %vm552_vm9 = vcmp.eq.f32.partialorder %v2562_v40, inf }
 0x10b   : > { %v511_v44 = vmul.f32 %v2193_v38, %v510_v42  ;;  %2198 = vrsqrt.f32 %v2565_v41  ;;  %v579_v42 = vand.u32 2147483648, %v2558_v34  ;;  %vm554_vm10 = vcmp.eq.f32.partialorder %v2562_v40, 0.0 }
 0x10c   : > { %v536_v46 = vmul.f32 0.5, %v535_v43  ;;  %vm528_vm11 = vcmp.eq.f32.partialorder %v2565_v41, inf  ;;  %vm530_vm12 = vcmp.eq.f32.partialorder %v2565_v41, 0.0 }
 0x10d   : > { %v512_v47 = vmul.f32 0.5, %v511_v44 }
 0x10e   : > { %v537_v63 = vsub.f32 1.5, %v536_v46 }
 0x10f   : > { %v2195_v52 = vpop.eup %2194  ;;  %v513_v53 = vsub.f32 1.5, %v512_v47  ;;  %v479_v55 = vpop.xlane.xlu2 %478 }
 0x110   : > { %v473_v56 = vpop.xlane.xlu0 %472  ;;  %v2197_v58 = vpop.eup %2196  ;;  %v570_v60 = vmul.f32 %v2195_v52, %v2558_v34  ;;  %v2588_v61 = vmul.f32 %v2547_v26, %v479_v55  ;;  %v538_v19 = vmul.f32 %v2191_v33, %v537_v63  ;;  %v531_v55 = vand.u32 2147483648, %v2565_v41 }
 0x111   : > { %v2199_v62 = vpop.eup %2198  ;;  %v514_v2 = vmul.f32 %v2193_v38, %v513_v53  ;;  %v546_v3 = vmul.f32 %v2197_v58, %v2562_v40  ;;  %v2592_v9 = vmul.f32 %v2547_v26, %v473_v56  ;;  %v555_v63 = vand.u32 2147483648, %v2562_v40 }
 0x112   : > { %v571_v11 = vmul.f32 %v2195_v52, %v570_v60  ;;  %v522_v35 = vmul.f32 %v2199_v62, %v2565_v41  ;;  %2200 = vrsqrt.f32 %v2588_v61  ;;  %v539_v38 = vmul.f32 %v538_v19, %v2550_v28 }
 0x113   : > { %v515_v15 = vmul.f32 %v514_v2, %v2553_v30  ;;  %v547_v16 = vmul.f32 %v2197_v58, %v546_v3  ;;  %2202 = vrsqrt.f32 %v2592_v9  ;;  %vm564_vm13 = vcmp.eq.f32.partialorder %v2592_v9, inf }
 0x114   : > { %v572_v49 = vmul.f32 0.5, %v571_v11  ;;  %v523_v18 = vmul.f32 %v2199_v62, %v522_v35  ;;  %v541_v53 = vsel %vm540_vm4, %v2550_v28, %v539_v38  ;;  %v591_v35 = vand.u32 2147483648, %v2588_v61 }
 0x115   : > { %v517_v20 = vsel %vm516_vm3, %v2553_v30, %v515_v15  ;;  %v548_v21 = vmul.f32 0.5, %v547_v16  ;;  %vm588_vm14 = vcmp.eq.f32.partialorder %v2588_v61, inf  ;;  %vm566_vm15 = vcmp.eq.f32.partialorder %v2592_v9, 0.0 }
 0x116   : > { %v573_v51 = vsub.f32 1.5, %v572_v49  ;;  %v524_v22 = vmul.f32 0.5, %v523_v18  ;;  %v520_v27 = vsel %vm518_vm5, %v519_v17, %v517_v20  ;;  %vm590_vm5 = vcmp.eq.f32.partialorder %v2588_v61, 0.0 }
 0x117   : > { %v549_v24 = vsub.f32 1.5, %v548_v21  ;;  %v2616_v37 = vadd.f32 1e-06, %v520_v27 }
 0x118   : > { %v482_v25 = vpop.xlane.xlu0 %481  ;;  %v2201_v29 = vpop.eup %2200  ;;  %v574_v32 = vmul.f32 %v2195_v52, %v573_v51  ;;  %v525_v33 = vsub.f32 1.5, %v524_v22 }
 0x119   : > { %v2614_v36 = vmul.f32 %v2547_v26, %v482_v25  ;;  %v582_v30 = vmul.f32 %v2201_v29, %v2588_v61  ;;  %v2203_v44 = vpop.eup %2202  ;;  %v550_v26 = vmul.f32 %v2197_v58, %v549_v24  ;;  %v622_v17 = vand.u32 2147483647, %v2616_v37 }
 0x11a   : > { %v575_v39 = vmul.f32 %v574_v32, %v2558_v34  ;;  %v526_v43 = vmul.f32 %v2199_v62, %v525_v33  ;;  %v558_v52 = vmul.f32 %v2203_v44, %v2592_v9  ;;  %v624_v20 = vand.u32 2147483648, %v2616_v37 }
 0x11b   : > { %2204 = vrsqrt.f32 %v2614_v36  ;;  %v583_v46 = vmul.f32 %v2201_v29, %v582_v30  ;;  %v551_v62 = vmul.f32 %v550_v26, %v2562_v40  ;;  %v567_v24 = vand.u32 2147483648, %v2592_v9 }
 0x11c   : > { %v577_v47 = vsel %vm576_vm7, %v2558_v34, %v575_v39  ;;  %v527_v48 = vmul.f32 %v526_v43, %v2565_v41  ;;  %2206 = vrcp.f32 %v2616_v37  ;;  %v559_v58 = vmul.f32 %v2203_v44, %v558_v52 }
 0x11d   : > { %v584_v57 = vmul.f32 0.5, %v583_v46  ;;  %v580_v60 = vsel %vm578_vm8, %v579_v42, %v577_v47  ;;  %v553_v28 = vsel %vm552_vm9, %v2562_v40, %v551_v62  ;;  %v603_v25 = vand.u32 2147483648, %v2614_v36 }
 0x11e   : > { %v529_v56 = vsel %vm528_vm11, %v2565_v41, %v527_v48  ;;  %v2642_v3 = vadd.f32 1e-06, %v580_v60  ;;  %v560_v15 = vmul.f32 0.5, %v559_v58  ;;  %v544_v41 = vsel %vm542_vm6, %v543_v23, %v541_v53 }
 0x11f   : > { %v532_v2 = vsel %vm530_vm12, %v531_v55, %v529_v56  ;;  %v585_v18 = vsub.f32 1.5, %v584_v57  ;;  %v2660_v22 = vadd.f32 1e-06, %v544_v41  ;;  %vm600_vm1 = vcmp.eq.f32.partialorder %v2614_v36, inf }
 0x120   : > { %v2645_v16 = vadd.f32 1e-06, %v532_v2  ;;  %2208 = vrcp.f32 %v2642_v3  ;;  %v561_v19 = vsub.f32 1.5, %v560_v15  ;;  %vm618_vm2 = vweird.f32 %v2616_v37 }
 0x121   : > { %v2205_v11 = vpop.eup %2204  ;;  %vm2667_vm3 = vcmp.eq.f32.partialorder %v622_v17, 8.507059e+37  ;;  %v586_v38 = vmul.f32 %v2201_v29, %v585_v18  ;;  %v625_v39 = vor.u32 1.1754944e-38, %v624_v20  ;;  %v556_v42 = vsel %vm554_vm10, %v555_v63, %v553_v28 }
 0x122   : > { %v594_v34 = vmul.f32 %v2205_v11, %v2614_v36  ;;  %v2207_v49 = vpop.eup %2206  ;;  %2210 = vrcp.f32 %v2645_v16  ;;  %v562_v23 = vmul.f32 %v2203_v44, %v561_v19  ;;  %vm602_vm6 = vcmp.eq.f32.partialorder %v2614_v36, 0.0 }
 0x123   : > { %v614_v51 = vmul.f32 %v2207_v49, %v2616_v37  ;;  %vm619_vm4 = vweird.f32 %v2207_v49  ;;  %2212 = vrcp.f32 %v2660_v22  ;;  %v637_v47 = vand.u32 2147483647, %v2645_v16 }
 0x124   : > { %v595_v21 = vmul.f32 %v2205_v11, %v594_v34  ;;  %v563_v30 = vmul.f32 %v562_v23, %v2592_v9  ;;  %vm693_vm7 = vweird.f32 %v2642_v3  ;;  %vm633_vm8 = vweird.f32 %v2645_v16  ;;  %vm2691_vm9 = vmor %vm618_vm2, %vm619_vm4 }
 0x125   : > { %v615_v32 = vsub.f32 1.0, %v614_v51  ;;  %v587_v55 = vmul.f32 %v586_v38, %v2588_v61  ;;  %v639_v57 = vand.u32 2147483648, %v2645_v16  ;;  %vm2704_vm10 = vcmp.eq.f32.partialorder %v637_v47, 8.507059e+37 }
 0x126   : > { %v596_v27 = vmul.f32 0.5, %v595_v21  ;;  %v2674_v43 = vpop.eup %2208  ;;  %v565_v29 = vsel %vm564_vm13, %v2592_v9, %v563_v30  ;;  %v2709_v34 = vadd.f32 1e-06, %v556_v42  ;;  %v652_v20 = vand.u32 2147483647, %v2660_v22 }
 0x127   : > { %v616_v26 = vmul.f32 %v2207_v49, %v615_v32  ;;  %v689_v40 = vmul.f32 %v2674_v43, %v2642_v3  ;;  %v568_v58 = vsel %vm566_vm15, %v567_v24, %v565_v29  ;;  %v589_v18 = vsel %vm588_vm14, %v2588_v61, %v587_v55  ;;  %v2740_v30 = vld [vmem:[%s3399_s3] ss:$0 sm:$0xff] }
 0x128   : > { %v597_v44 = vsub.f32 1.5, %v596_v27  ;;  %v2211_v46 = vpop.eup %2210  ;;  %v2700_v2 = vadd.f32 1e-06, %v568_v58  ;;  %vm694_vm12 = vweird.f32 %v2674_v43  ;;  %v640_v21 = vor.u32 1.1754944e-38, %v639_v57 }
 0x129   : > { %v617_v52 = vadd.f32 %v2207_v49, %v616_v26  ;;  %v629_v53 = vmul.f32 %v2211_v46, %v2645_v16  ;;  %v690_v60 = vsub.f32 1.0, %v689_v40  ;;  %v2711_v9 = vpop.eup %2212  ;;  %vm634_vm11 = vweird.f32 %v2211_v46  ;;  %vm2744_vm15 = vmor %vm693_vm7, %vm694_vm12 }
 0x12a   : > { %v598_v48 = vmul.f32 %v2205_v11, %v597_v44  ;;  %v697_v11 = vand.u32 2147483647, %v2642_v3  ;;  %2214 = vrcp.f32 %v2700_v2  ;;  %v644_v23 = vmul.f32 %v2711_v9, %v2660_v22  ;;  %vm635_vm14 = vmor %vm633_vm8, %vm634_vm11 }
 0x12b   : > { %v621_v62 = vsel %vm2691_vm9, %v2207_v49, %v617_v52  ;;  %v630_v63 = vsub.f32 1.0, %v629_v53  ;;  %v691_v41 = vmul.f32 %v2674_v43, %v690_v60  ;;  %v699_v49 = vand.u32 2147483648, %v2642_v3  ;;  %v2771_v52 = vpop.f32.mrf.mxu2 }
 0x12c   : > { %v599_v37 = vmul.f32 %v598_v48, %v2614_v36  ;;  %v626_v19 = vsel %vm2667_vm3, %v625_v39, %v621_v62  ;;  %vm2722_vm13 = vcmp.eq.f32.partialorder %v697_v11, 8.507059e+37  ;;  %v654_v32 = vand.u32 2147483648, %v2660_v22 }
 0x12d   : > { %v631_v17 = vmul.f32 %v2211_v46, %v630_v63  ;;  %v692_v27 = vadd.f32 %v2674_v43, %v691_v41  ;;  %2216 = vrcp.f32 %v2709_v34  ;;  %v627_v33 = vmul.f32 %v626_v19, %v2584_v59 }
 0x12e   : > { %v601_v24 = vsel %vm600_vm1, %v2614_v36, %v599_v37  ;;  %v700_v16 = vor.u32 1.1754944e-38, %v699_v49  ;;  %v645_v42 = vsub.f32 1.0, %v644_v23  ;;  %vm648_vm1 = vweird.f32 %v2660_v22 }
 0x12f   : > { %v632_v28 = vadd.f32 %v2211_v46, %v631_v17  ;;  %vm649_vm2 = vweird.f32 %v2711_v9  ;;  %vm2752_vm3 = vcmp.eq.f32.partialorder %v652_v20, 8.507059e+37  ;;  %v592_v29 = vsel %vm590_vm5, %v591_v35, %v589_v18 }
 0x130   : > { %v2215_v26 = vpop.eup %2214  ;;  %v604_v47 = vsel %vm602_vm6, %v603_v25, %v601_v24  ;;  %vm678_vm4 = vweird.f32 %v2700_v2  ;;  %v655_v48 = vor.u32 1.1754944e-38, %v654_v32  ;;  %v736_v53 = vadd.f32 %v2740_v30, %v627_v33  ;;  %vm2780_vm5 = vmor %vm648_vm1, %vm649_vm2 }
 0x131   : > { %v636_v38 = vsel %vm635_vm14, %v2211_v46, %v632_v28  ;;  %v646_v46 = vmul.f32 %v2711_v9, %v645_v42  ;;  %v674_v40 = vmul.f32 %v2215_v26, %v2700_v2  ;;  %v2784_v25 = vadd.f32 1e-06, %v592_v29 }
 0x132   : > { %v641_v44 = vsel %vm2704_vm10, %v640_v21, %v636_v38  ;;  %v682_v56 = vand.u32 2147483647, %v2700_v2  ;;  %v684_v57 = vand.u32 2147483648, %v2700_v2  ;;  %v2788_v58 = vadd.f32 1e-06, %v604_v47 }
 0x133   : > { %v642_v3 = vmul.f32 %v641_v44, %v2602_v14  ;;  %v696_v14 = vsel %vm2744_vm15, %v2674_v43, %v692_v27  ;;  %v647_v35 = vadd.f32 %v2711_v9, %v646_v46  ;;  %v2217_v43 = vpop.eup %2216  ;;  %v675_v55 = vsub.f32 1.0, %v674_v40  ;;  %v862_v51 = vpop.f32.mrf.mxu2 }
 0x134   : > { %v701_v62 = vsel %vm2722_vm13, %v700_v16, %v696_v14  ;;  %v659_v22 = vmul.f32 %v2217_v43, %v2709_v34  ;;  %v669_v63 = vand.u32 2147483648, %v2709_v34  ;;  %vm679_vm6 = vweird.f32 %v2215_v26 }
 0x135   : > { %v737_v61 = vadd.f32 %v2740_v30, %v642_v3  ;;  %v676_v11 = vmul.f32 %v2215_v26, %v675_v55  ;;  %v651_v37 = vsel %vm2780_vm5, %v2711_v9, %v647_v35  ;;  %2218 = vrcp.f32 %v2784_v25  ;;  %vm680_vm9 = vmor %vm678_vm4, %vm679_vm6 }
 0x136   : > { %v660_v15 = vsub.f32 1.0, %v659_v22  ;;  %vm663_vm7 = vweird.f32 %v2709_v34  ;;  %vm664_vm8 = vweird.f32 %v2217_v43  ;;  %v667_v41 = vand.u32 2147483647, %v2709_v34 }
 0x137   : > { %v744_v60 = vpack.c.bf16 %v737_v61, %v736_v53  ;;  %v677_v17 = vadd.f32 %v2215_v26, %v676_v11  ;;  %v702_v49 = vmul.f32 %v701_v62, %v2596_v10  ;;  %2220 = vrcp.f32 %v2788_v58  ;;  %vm2811_vm11 = vmor %vm663_vm7, %vm664_vm8 }
 0x138   : > { %v505_v18 = vmul.f32 %v2574_v45, %v2519_v54  ;;  %v685_v9 = vor.u32 1.1754944e-38, %v684_v57  ;;  %v656_v19 = vsel %vm2752_vm3, %v655_v48, %v651_v37  ;;  %v661_v20 = vmul.f32 %v2217_v43, %v660_v15 }
 0x139   : > { %2087 = vmatmul.msk.bf16.vlgmr.msra.gmra.mxu0 %vm403_vm0, %v744_v60  ;;  %v503_v28 = vmul.f32 %v2574_v45, %v2490_v31  ;;  %v681_v34 = vsel %vm680_vm9, %v2215_v26, %v677_v17  ;;  %vm683_vm10 = vcmp.eq.f32.partialorder %v682_v56, 8.507059e+37  ;;  %v670_v21 = vor.u32 1.1754944e-38, %v669_v63 }
 0x13a   : > { %v686_v54 = vsel %vm683_vm10, %v685_v9, %v681_v34  ;;  %v662_v23 = vadd.f32 %v2217_v43, %v661_v20  ;;  %vm668_vm12 = vcmp.eq.f32.partialorder %v667_v41, 8.507059e+37  ;;  %v504_v24 = vmul.f32 %v2574_v45, %v2509_v50  ;;  %v850_v34 = vpop.f32.mrf.mxu1 }
 0x13b   : > { %v2219_v2 = vpop.eup %2218  ;;  %v687_v27 = vmul.f32 %v686_v54, %v505_v18  ;;  %v741_v32 = vadd.f32 %v2740_v30, %v702_v49  ;;  %v657_v33 = vmul.f32 %v656_v19, %v503_v28  ;;  %vm708_vm13 = vweird.f32 %v2784_v25  ;;  %v865_v35 = vpop.f32.mrf.mxu2 }
 0x13c   : > { %v666_v31 = vsel %vm2811_vm11, %v2217_v43, %v662_v23  ;;  %v704_v38 = vmul.f32 %v2219_v2, %v2784_v25  ;;  %v712_v39 = vand.u32 2147483647, %v2784_v25  ;;  %v714_v59 = vand.u32 2147483648, %v2784_v25  ;;  %v2183_v25 = vld [vmem:[%s3403_s7] ss:$0 sm:$0xff] }
 0x13d   : > { %v2221_v16 = vpop.eup %2220  ;;  %v740_v42 = vadd.f32 %v2740_v30, %v687_v27  ;;  %v671_v44 = vsel %vm668_vm12, %v670_v21, %v666_v31  ;;  %vm723_vm14 = vweird.f32 %v2788_v58  ;;  %vm709_vm15 = vweird.f32 %v2219_v2 }
 0x13e   : > { %v672_v50 = vmul.f32 %v671_v44, %v504_v24  ;;  %v705_v26 = vsub.f32 1.0, %v704_v38  ;;  %v719_v3 = vmul.f32 %v2221_v16, %v2788_v58  ;;  %v738_v29 = vadd.f32 %v2740_v30, %v657_v33  ;;  %vm710_vm2 = vmor %vm708_vm13, %vm709_vm15  ;;  %v2184_v38 = vld [vmem:[%s3401_s5] ss:$0 sm:$0xff] }
 0x13f   : > { %v746_v46 = vpack.c.bf16 %v741_v32, %v740_v42  ;;  %v727_v47 = vand.u32 2147483647, %v2788_v58  ;;  %v729_v40 = vand.u32 2147483648, %v2788_v58  ;;  %vm724_vm1 = vweird.f32 %v2221_v16 }
 0x140   : > { %v739_v14 = vadd.f32 %v2740_v30, %v672_v50  ;;  %v706_v48 = vmul.f32 %v2219_v2, %v705_v26  ;;  %v720_v53 = vsub.f32 1.0, %v719_v3  ;;  %v715_v61 = vor.u32 1.1754944e-38, %v714_v59  ;;  %vm725_vm4 = vmor %vm723_vm14, %vm724_vm1 }
 0x141   : > { %2089 = vmatmul.msk.bf16.vlgmr.msra.gmra.mxu3 %vm403_vm0, %v746_v46  ;;  %vm713_vm3 = vcmp.eq.f32.partialorder %v712_v39, 8.507059e+37  ;;  %v730_v56 = vor.u32 1.1754944e-38, %v729_v40  ;;  %v507_v57 = vmul.f32 %v2574_v45, %v2531_v4  ;;  %vm728_vm5 = vcmp.eq.f32.partialorder %v727_v47, 8.507059e+37 }
 0x142   : > { %v745_v36 = vpack.c.bf16 %v739_v14, %v738_v29  ;;  %v707_v43 = vadd.f32 %v2219_v2, %v706_v48  ;;  %v721_v55 = vmul.f32 %v2221_v16, %v720_v53  ;;  %v508_v63 = vmul.f32 %v2574_v45, %v2534_v5 }
 0x143   : > { %v866_v41 = vadd.f32 %v2183_v25, %v865_v35  ;;  %v867_v17 = vpop.f32.mrf.mxu2  ;;  %vm882_vm6 = vcmask 64512   ;;  %v861_v19 = vadd.f32 %v2183_v25, %v2771_v52  ;;  %v863_v20 = vadd.f32 %v2183_v25, %v862_v51  ;;  %v852_v52 = vpop.f32.mrf.mxu1 }
 0x144   : > { %v711_v60 = vsel %vm710_vm2, %v2219_v2, %v707_v43  ;;  %v722_v62 = vadd.f32 %v2221_v16, %v721_v55  ;;  %v868_v18 = vadd.f32 %v2183_v25, %v867_v17  ;;  %v851_v23 = vadd.f32 %v2183_v25, %v850_v34 }
 0x145   : > { %v716_v22 = vsel %vm713_vm3, %v715_v61, %v711_v60  ;;  %v2853_v45 = vpack.c.bf16 %v863_v20, %v861_v19  ;;  %v853_v2 = vadd.f32 %v2183_v25, %v852_v52  ;;  %vm944_vm7 = vcmask 523264  }
 0x146   : > { %v717_v11 = vmul.f32 %v716_v22, %v507_v57  ;;  %v726_v58 = vsel %vm725_vm4, %v2221_v16, %v722_v62  ;;  %v2847_v28 = vpack.c.bf16 %v868_v18, %v866_v41  ;;  %vm1340_vm8 = vcmask 1043456  }
 0x147   : > { %v731_v37 = vsel %vm728_vm5, %v730_v56, %v726_v58  ;;  %v2862_v32 = vpack.c.bf16 %v853_v2, %v851_v23 }
 0x148   : > { %v732_v15 = vmul.f32 %v731_v37, %v508_v63  ;;  %v742_v4 = vadd.f32 %v2740_v30, %v717_v11  ;;  %v905_v5 = vsel %vm882_vm6, %v2847_v28, 0  ;;  %1047 = vrot.lane.b32.xlu0 %v2847_v28, %s2361_s19 }
 0x149   : > { %2088 = vmatmul.msk.bf16.gmra.mxu0 %vm403_vm0, %v745_v36  ;;  %911 = vmatpush.bf16.xpose.msrb.mxu2 %v905_v5  ;;  %v896_v33 = vsel %vm882_vm6, %v2862_v32, 0 }
 0x14a   : > { %v743_v49 = vadd.f32 %v2740_v30, %v732_v15  ;;  %v902_v30 = vsel %vm882_vm6, %v2853_v45, 0 }
 0x14b   : > { %v855_v10 = vpop.f32.mrf.mxu1 }
 0x14c   : > { %v747_v9 = vpack.c.bf16 %v743_v49, %v742_v4  ;;  %v856_v21 = vadd.f32 %v2183_v25, %v855_v10 }
 0x151   : > { %2090 = vmatmul.msk.bf16.gmra.mxu3 %vm403_vm0, %v747_v9  ;;  %912 = vmatpush.bf16.xpose.msrb.mxu2 %v902_v30 }
 0x153   : > { %v857_v51 = vpop.f32.mrf.mxu1 }
 0x154   : > { %v858_v54 = vadd.f32 %v2183_v25, %v857_v51 }
 0x156   : > { %v2858_v24 = vpack.c.bf16 %v858_v54, %v856_v21 }
 0x158   : > { %v899_v27 = vsel %vm882_vm6, %v2858_v24, 0 }
 0x159   : > { %913 = vmatpush.bf16.xpose.msrb.mxu2 %v899_v27 }
 0x161   : > { %914 = vmatpush.bf16.xpose.msrb.mxu2 %v896_v33 }
 0x1b6   : > { %v789_v31 = vpop.f32.mrf.mxu0 }
 0x1b7   : > { %v790_v16 = vadd.f32 %v2184_v38, %v789_v31 }
 0x1ba   : > { %v1048_v47 = vpop.permute.xlu0 %1047 }
 0x1bb   : > { %1069 = vmatpush.bf16.msrb.mxu3 %v1048_v47 }
 0x1be   : > { %v791_v39 = vpop.f32.mrf.mxu0 }
 0x1bf   : > { %v792_v42 = vadd.f32 %v2184_v38, %v791_v39 }
 0x1c1   : > { %v2869_v44 = vpack.c.bf16 %v792_v42, %v790_v16 }
 0x1c3   : > { %2103 = vmatmul.msk.bf16.vlgmr.msrb.gmra.mxu2 %vm882_vm6, %v2869_v44 }
 0x1c4   : > { %v799_v50 = vpop.f32.mrf.mxu3 }
 0x1c5   : > { %v800_v48 = vadd.f32 %v2184_v38, %v799_v50 }
 0x1c6   : > { %v794_v59 = vpop.f32.mrf.mxu0 }
 0x1c7   : > { %v795_v3 = vadd.f32 %v2184_v38, %v794_v59 }
 0x1cc   : > { %v801_v40 = vpop.f32.mrf.mxu3 }
 0x1cd   : > { %v802_v14 = vadd.f32 %v2184_v38, %v801_v40 }
 0x1ce   : > { %v796_v26 = vpop.f32.mrf.mxu0 }
 0x1cf   : > { %v797_v46 = vadd.f32 %v2184_v38, %v796_v26  ;;  %v2877_v61 = vpack.c.bf16 %v802_v14, %v800_v48 }
 0x1d1   : > { %v2873_v29 = vpack.c.bf16 %v797_v46, %v795_v3 }
 0x1d3   : > { %2104 = vmatmul.msk.bf16.gmra.mxu2 %vm882_vm6, %v2873_v29 }
 0x1d4   : > { %v804_v53 = vpop.f32.mrf.mxu3 }
 0x1d5   : > { %v805_v43 = vadd.f32 %v2184_v38, %v804_v53 }
 0x1dc   : > { %v806_v35 = vpop.f32.mrf.mxu3 }
 0x1dd   : > { %v807_v36 = vadd.f32 %v2184_v38, %v806_v35 }
 0x1df   : > { %v2881_v55 = vpack.c.bf16 %v807_v36, %v805_v43 }
 0x1e3   : > { %2105 = vmatmul.msk.bf16.gmra.mxu2 %vm882_vm6, %v2877_v61 }
 0x1f3   : > { %2106 = vmatmul.msk.bf16.gmra.mxu2 %vm882_vm6, %v2881_v55 }
 0x246   : > { %v916_v56 = vpop.f32.mrf.mxu2 }
 0x247   : > { %v936_v57 = vmul.f32 0.35355338, %v916_v56 }
 0x249   : > { %v945_v60 = vsel %vm944_vm7, %v936_v57, -inf }
 0x24a   : > { %946 = vmax.xlane.f32.xlu1 %v945_v60 }
 0x24e   : > { %v918_v62 = vpop.f32.mrf.mxu2 }
 0x24f   : > { %v937_v25 = vmul.f32 0.35355338, %v918_v62 }
 0x251   : > { %v948_v22 = vsel %vm944_vm7, %v937_v25, -inf }
 0x252   : > { %949 = vmax.xlane.f32.xlu2 %v948_v22 }
 0x256   : > { %v921_v63 = vpop.f32.mrf.mxu2 }
 0x257   : > { %v938_v11 = vmul.f32 0.35355338, %v921_v63 }
 0x259   : > { %v951_v58 = vsel %vm944_vm7, %v938_v11, -inf }
 0x25a   : > { %952 = vmax.xlane.f32.xlu0 %v951_v58 }
 0x25e   : > { %v923_v37 = vpop.f32.mrf.mxu2 }
 0x25f   : > { %v939_v15 = vmul.f32 0.35355338, %v923_v37 }
 0x261   : > { %v954_v41 = vsel %vm944_vm7, %v939_v15, -inf }
 0x262   : > { %955 = vmax.xlane.f32.xlu1 %v954_v41 }
 0x266   : > { %v926_v17 = vpop.f32.mrf.mxu2 }
 0x267   : > { %v940_v4 = vmul.f32 0.35355338, %v926_v17 }
 0x269   : > { %v957_v49 = vsel %vm944_vm7, %v940_v4, -inf }
 0x26a   : > { %958 = vmax.xlane.f32.xlu2 %v957_v49 }
 0x26e   : > { %v928_v18 = vpop.f32.mrf.mxu2 }
 0x26f   : > { %v941_v9 = vmul.f32 0.35355338, %v928_v18 }
 0x271   : > { %v960_v19 = vsel %vm944_vm7, %v941_v9, -inf }
 0x272   : > { %961 = vmax.xlane.f32.xlu0 %v960_v19 }
 0x276   : > { %v931_v20 = vpop.f32.mrf.mxu2 }
 0x277   : > { %v942_v5 = vmul.f32 0.35355338, %v931_v20 }
 0x279   : > { %v963_v34 = vsel %vm944_vm7, %v942_v5, -inf }
 0x27a   : > { %964 = vmax.xlane.f32.xlu1 %v963_v34 }
 0x27e   : > { %v933_v30 = vpop.f32.mrf.mxu2 }
 0x27f   : > { %v943_v52 = vmul.f32 0.35355338, %v933_v30 }
 0x281   : > { %v966_v10 = vsel %vm944_vm7, %v943_v52, -inf }
 0x282   : > { %967 = vmax.xlane.f32.xlu2 %v966_v10 }
 0x286   : > { %1041 = vrot.lane.b32.xlu0 %v2862_v32, %s2361_s19 }
 0x2bd   : > { %v947_v21 = vpop.xlane.xlu1 %946 }
 0x2be   : > { %v969_v51 = vsub.f32 %v936_v57, %v947_v21 }
 0x2c0   : > { %v977_v54 = vmul.f32 1.442695, %v969_v51 }
 0x2c2   : > { %2222 = vpow2.f32 %v977_v54 }
 0x2c5   : > { %v950_v23 = vpop.xlane.xlu2 %949 }
 0x2c6   : > { %v970_v2 = vsub.f32 %v937_v25, %v950_v23 }
 0x2c8   : > { %v2895_v27 = vpop.eup %2222  ;;  %v979_v33 = vmul.f32 1.442695, %v970_v2 }
 0x2c9   : > { %v993_v31 = vsel %vm944_vm7, %v2895_v27, 0.0 }
 0x2ca   : > { %2224 = vpow2.f32 %v979_v33  ;;  %994 = vadd.xlane.f32.xlu1 %v993_v31 }
 0x2cd   : > { %v953_v38 = vpop.xlane.xlu0 %952 }
 0x2ce   : > { %v971_v39 = vsub.f32 %v938_v11, %v953_v38 }
 0x2d0   : > { %v2899_v16 = vpop.eup %2224  ;;  %v981_v42 = vmul.f32 1.442695, %v971_v39 }
 0x2d1   : > { %v996_v59 = vsel %vm944_vm7, %v2899_v16, 0.0 }
 0x2d2   : > { %2226 = vpow2.f32 %v981_v42  ;;  %997 = vadd.xlane.f32.xlu2 %v996_v59 }
 0x2d5   : > { %v956_v35 = vpop.xlane.xlu1 %955 }
 0x2d6   : > { %v972_v56 = vsub.f32 %v939_v15, %v956_v35 }
 0x2d8   : > { %v2903_v50 = vpop.eup %2226  ;;  %v983_v60 = vmul.f32 1.442695, %v972_v56 }
 0x2d9   : > { %v999_v26 = vsel %vm944_vm7, %v2903_v50, 0.0 }
 0x2da   : > { %1000 = vadd.xlane.f32.xlu0 %v999_v26 }
 0x2dd   : > { %v959_v48 = vpop.xlane.xlu2 %958 }
 0x2de   : > { %v973_v53 = vsub.f32 %v940_v4, %v959_v48 }
 0x2e0   : > { %v985_v36 = vmul.f32 1.442695, %v973_v53 }
 0x2e3   : > { %1045 = vrot.lane.b32.xlu1 %v2853_v45, %s2361_s19 }
 0x2e5   : > { %v962_v3 = vpop.xlane.xlu0 %961 }
 0x2e6   : > { %v974_v46 = vsub.f32 %v941_v9, %v962_v3 }
 0x2e8   : > { %v987_v47 = vmul.f32 1.442695, %v974_v46 }
 0x2ea   : > { %2228 = vpow2.f32 %v987_v47  ;;  %1043 = vrot.lane.b32.xlu2 %v2858_v24, %s2361_s19 }
 0x2eb   : > { %2230 = vpow2.f32 %v985_v36 }
 0x2ec   : > { %2232 = vpow2.f32 %v983_v60 }
 0x2ed   : > { %v965_v62 = vpop.xlane.xlu1 %964 }
 0x2ee   : > { %v975_v63 = vsub.f32 %v942_v5, %v965_v62 }
 0x2f0   : > { %v2911_v40 = vpop.eup %2228  ;;  %v989_v58 = vmul.f32 1.442695, %v975_v63 }
 0x2f1   : > { %v1008_v14 = vsel %vm944_vm7, %v2911_v40, 0.0  ;;  %v2917_v22 = vpop.eup %2230 }
 0x2f2   : > { %1009 = vadd.xlane.f32.xlu0 %v1008_v14  ;;  %v1005_v11 = vsel %vm944_vm7, %v2917_v22, 0.0  ;;  %v2923_v37 = vpop.eup %2232 }
 0x2f3   : > { %v1002_v41 = vsel %vm944_vm7, %v2923_v37, 0.0 }
 0x2f5   : > { %v968_v43 = vpop.xlane.xlu2 %967 }
 0x2f6   : > { %v976_v57 = vsub.f32 %v943_v52, %v968_v43 }
 0x2f8   : > { %v991_v25 = vmul.f32 1.442695, %v976_v57  ;;  %v1042_v52 = vpop.permute.xlu0 %1041 }
 0x2fa   : > { %2234 = vpow2.f32 %v991_v25 }
 0x2fb   : > { %2236 = vpow2.f32 %v989_v58 }
 0x300   : > { %v2925_v15 = vpop.eup %2234 }
 0x301   : > { %v1014_v17 = vsel %vm944_vm7, %v2925_v15, 0.0  ;;  %v2933_v4 = vpop.eup %2236 }
 0x302   : > { %v1011_v49 = vsel %vm944_vm7, %v2933_v4, 0.0 }
 0x306   : > { %1116 = vrot.lane.b32.xlu0 %v2847_v28, %s2362_s22 }
 0x30d   : > { %1006 = vadd.xlane.f32.xlu1 %v1005_v11 }
 0x30e   : > { %1110 = vrot.lane.b32.xlu0 %v2862_v32, %s2362_s22 }
 0x313   : > { %1003 = vadd.xlane.f32.xlu2 %v1002_v41 }
 0x315   : > { %1015 = vadd.xlane.f32.xlu1 %v1014_v17 }
 0x316   : > { %1104 = vrot.lane.b32.xlu0 %v2873_v29, %s2362_s22 }
 0x31b   : > { %1012 = vadd.xlane.f32.xlu2 %v1011_v49 }
 0x31e   : > { %1709 = vrot.lane.b32.xlu0 %v2847_v28, %s2363_s23 }
 0x326   : > { %1108 = vrot.lane.b32.xlu0 %v2881_v55, %s2362_s22 }
 0x32e   : > { %1112 = vrot.lane.b32.xlu1 %v2858_v24, %s2362_s22  ;;  %1425 = vrot.lane.b32.xlu0 %v2862_v32, %s2364_s24 }
 0x333   : > { %1114 = vrot.lane.b32.xlu2 %v2853_v45, %s2362_s22 }
 0x336   : > { %1106 = vrot.lane.b32.xlu1 %v2877_v61, %s2362_s22  ;;  %1695 = vrot.lane.b32.xlu0 %v2869_v44, %s2363_s23 }
 0x33b   : > { %1102 = vrot.lane.b32.xlu2 %v2869_v44, %s2362_s22 }
 0x33d   : > { %v995_v18 = vpop.xlane.xlu1 %994 }
 0x33e   : > { %1429 = vrot.lane.b32.xlu1 %v2853_v45, %s2364_s24  ;;  %1421 = vrot.lane.b32.xlu0 %v2877_v61, %s2364_s24 }
 0x343   : > { %1431 = vrot.lane.b32.xlu2 %v2847_v28, %s2364_s24 }
 0x345   : > { %v998_v9 = vpop.xlane.xlu2 %997 }
 0x346   : > { %1427 = vrot.lane.b32.xlu1 %v2858_v24, %s2364_s24  ;;  %1701 = vrot.lane.b32.xlu0 %v2881_v55, %s2363_s23  ;;  %2238 = vrcp.f32 %v998_v9 }
 0x347   : > { %2240 = vrcp.f32 %v995_v18 }
 0x34b   : > { %1707 = vrot.lane.b32.xlu2 %v2853_v45, %s2363_s23 }
 0x34c   : > { %v2239_v20 = vpop.eup %2238 }
 0x34d   : > { %v1044_v5 = vpop.permute.xlu2 %1043  ;;  %v2241_v34 = vpop.eup %2240  ;;  %v1026_v30 = vmul.f32 %v2239_v20, %v2899_v16 }
 0x34e   : > { %1703 = vrot.lane.b32.xlu1 %v2862_v32, %s2363_s23  ;;  %v1025_v10 = vmul.f32 %v2241_v34, %v2895_v27  ;;  %v1001_v51 = vpop.xlane.xlu0 %1000 }
 0x34f   : > { %2242 = vrcp.f32 %v1001_v51 }
 0x350   : > { %v1033_v21 = vpack.c.bf16 %v1026_v30, %v1025_v10 }
 0x353   : > { %1705 = vrot.lane.b32.xlu2 %v2858_v24, %s2363_s23 }
 0x355   : > { %v1046_v19 = vpop.permute.xlu1 %1045  ;;  %v2243_v31 = vpop.eup %2242 }
 0x356   : > { %1419 = vrot.lane.b32.xlu1 %v2873_v29, %s2364_s24  ;;  %1070 = vmatpush.bf16.msrb.mxu3 %v1046_v19  ;;  %v1027_v16 = vmul.f32 %v2243_v31, %v2903_v50 }
 0x35a   : > { %1071 = vmatpush.bf16.msrb.mxu3 %v1044_v5 }
 0x35b   : > { %1417 = vrot.lane.b32.xlu2 %v2869_v44, %s2364_s24  ;;  %v870_v44 = vld [vmem:[%s3404_s8] sm:$0xf] }
 0x35c   : > { %v1386_v23 = vsel %vm1340_vm8, %v870_v44, 0 }
 0x35d   : > { %1395 = vmatpush.bf16.msra.mxu2 %v1386_v23 }
 0x35e   : > { %1699 = vrot.lane.b32.xlu1 %v2877_v61, %s2363_s23  ;;  %1072 = vmatpush.bf16.msrb.mxu3 %v1042_v52 }
 0x361   : > { %2107 = vmatmul.msk.bf16.vlgmr.msrb.gmra.mxu3 %vm944_vm7, %v1033_v21 }
 0x363   : > { %1697 = vrot.lane.b32.xlu2 %v2873_v29, %s2363_s23  ;;  %s3361_s23 = scalar_lea.vmem %s3406_s10, %s2431_s15 }
 0x365   : > { %v1010_v54 = vpop.xlane.xlu0 %1009 }
 0x36b   : > { %1423 = vrot.lane.b32.xlu2 %v2881_v55, %s2364_s24 }
 0x378   : > { %v1117_v61 = vpop.permute.xlu0 %1116 }
 0x379   : > { %v1140_v2 = vsel %vm882_vm6, %v1117_v61, 0 }
 0x37a   : > { %1146 = vmatpush.bf16.xpose.msrb.mxu0 %v1140_v2 }
 0x380   : > { %v1111_v27 = vpop.permute.xlu0 %1110  ;;  %v1007_v38 = vpop.xlane.xlu1 %1006 }
 0x381   : > { %v1131_v63 = vsel %vm882_vm6, %v1111_v27, 0 }
 0x386   : > { %v1004_v29 = vpop.xlane.xlu2 %1003 }
 0x387   : > { %2244 = vrcp.f32 %v1004_v29 }
 0x388   : > { %v1105_v33 = vpop.permute.xlu0 %1104  ;;  %2246 = vrcp.f32 %v1007_v38  ;;  %v1016_v14 = vpop.xlane.xlu1 %1015 }
 0x389   : > { %2248 = vrcp.f32 %v1010_v54 }
 0x38d   : > { %v2245_v55 = vpop.eup %2244 }
 0x38e   : > { %v1013_v39 = vpop.xlane.xlu2 %1012  ;;  %v1028_v42 = vmul.f32 %v2245_v55, %v2923_v37  ;;  %v2247_v48 = vpop.eup %2246 }
 0x38f   : > { %v2249_v53 = vpop.eup %2248  ;;  %v1029_v50 = vmul.f32 %v2247_v48, %v2917_v22  ;;  %2250 = vrcp.f32 %v1013_v39 }
 0x390   : > { %v1710_v59 = vpop.permute.xlu0 %1709  ;;  %v1034_v26 = vpack.c.bf16 %v1028_v42, %v1027_v16  ;;  %v1030_v36 = vmul.f32 %v2249_v53, %v2911_v40  ;;  %2252 = vrcp.f32 %v1016_v14 }
 0x391   : > { %v1733_v3 = vsel %vm882_vm6, %v1710_v59, 0 }
 0x392   : > { %2108 = vmatmul.msk.bf16.gmra.mxu3 %vm944_vm7, %v1034_v26  ;;  %1739 = vmatpush.bf16.xpose.msrb.mxu2 %v1733_v3  ;;  %v1035_v56 = vpack.c.bf16 %v1030_v36, %v1029_v50 }
 0x395   : > { %v2251_v25 = vpop.eup %2250 }
 0x396   : > { %v1115_v46 = vpop.permute.xlu2 %1114  ;;  %v2253_v22 = vpop.eup %2252  ;;  %v1031_v40 = vmul.f32 %v2251_v25, %v2933_v4 }
 0x397   : > { %v1137_v47 = vsel %vm882_vm6, %v1115_v46, 0  ;;  %v1032_v37 = vmul.f32 %v2253_v22, %v2925_v15 }
 0x398   : > { %1147 = vmatpush.bf16.xpose.msrb.mxu0 %v1137_v47  ;;  %v1109_v9 = vpop.permute.xlu0 %1108 }
 0x399   : > { %v1036_v49 = vpack.c.bf16 %v1032_v37, %v1031_v40 }
 0x39e   : > { %v1103_v35 = vpop.permute.xlu2 %1102 }
 0x3a0   : > { %v1113_v43 = vpop.permute.xlu1 %1112  ;;  %v1426_v5 = vpop.permute.xlu0 %1425 }
 0x3a1   : > { %v1134_v57 = vsel %vm882_vm6, %v1113_v43, 0  ;;  %v1446_v52 = vsel %vm882_vm6, %v1426_v5, 0 }
 0x3a2   : > { %2109 = vmatmul.msk.bf16.gmra.mxu3 %vm944_vm7, %v1035_v56  ;;  %1148 = vmatpush.bf16.xpose.msrb.mxu0 %v1134_v57 }
 0x3a6   : > { %v1432_v60 = vpop.permute.xlu2 %1431 }
 0x3a7   : > { %v1455_v11 = vsel %vm882_vm6, %v1432_v60, 0 }
 0x3a8   : > { %v1107_v62 = vpop.permute.xlu1 %1106  ;;  %v1696_v23 = vpop.permute.xlu0 %1695 }
 0x3aa   : > { %1149 = vmatpush.bf16.xpose.msrb.mxu0 %v1131_v63 }
 0x3ae   : > { %v1708_v58 = vpop.permute.xlu2 %1707 }
 0x3af   : > { %v1730_v41 = vsel %vm882_vm6, %v1708_v58, 0 }
 0x3b0   : > { %v1430_v17 = vpop.permute.xlu1 %1429  ;;  %1740 = vmatpush.bf16.xpose.msrb.mxu2 %v1730_v41  ;;  %v1422_v61 = vpop.permute.xlu0 %1421 }
 0x3b1   : > { %v1452_v18 = vsel %vm882_vm6, %v1430_v17, 0  ;;  %2111 = vmatmul.msk.bf16.vlgmr.msrb.gmra.mxu0 %vm882_vm6, %v1103_v35 }
 0x3b2   : > { %1461 = vmatpush.bf16.xpose.msra.mxu0 %v1455_v11  ;;  %2110 = vmatmul.msk.bf16.gmra.mxu3 %vm944_vm7, %v1036_v49 }
 0x3b6   : > { %v1706_v19 = vpop.permute.xlu2 %1705 }
 0x3b7   : > { %v1727_v20 = vsel %vm882_vm6, %v1706_v19, 0 }
 0x3b8   : > { %v1428_v4 = vpop.permute.xlu1 %1427  ;;  %1741 = vmatpush.bf16.xpose.msrb.mxu2 %v1727_v20 }
 0x3b9   : > { %v1449_v15 = vsel %vm882_vm6, %v1428_v4, 0 }
 0x3ba   : > { %1462 = vmatpush.bf16.xpose.msra.mxu0 %v1452_v18  ;;  %v1702_v18 = vpop.permute.xlu0 %1701 }
 0x3be   : > { %v1418_v54 = vpop.permute.xlu2 %1417 }
 0x3c0   : > { %v1704_v34 = vpop.permute.xlu1 %1703 }
 0x3c1   : > { %v1724_v30 = vsel %vm882_vm6, %v1704_v34, 0  ;;  %2112 = vmatmul.msk.bf16.gmra.mxu0 %vm882_vm6, %v1105_v33 }
 0x3c2   : > { %1463 = vmatpush.bf16.xpose.msra.mxu0 %v1449_v15  ;;  %1742 = vmatpush.bf16.xpose.msrb.mxu2 %v1724_v30 }
 0x3c6   : > { %v1698_v27 = vpop.permute.xlu2 %1697 }
 0x3c8   : > { %v1420_v44 = vpop.permute.xlu1 %1419 }
 0x3ca   : > { %1464 = vmatpush.bf16.xpose.msra.mxu0 %v1446_v52 }
 0x3ce   : > { %v1424_v31 = vpop.permute.xlu2 %1423 }
 0x3d0   : > { %v1700_v49 = vpop.permute.xlu1 %1699 }
 0x3d1   : > { %2113 = vmatmul.msk.bf16.gmra.mxu0 %vm882_vm6, %v1107_v62 }
 0x3e1   : > { %2114 = vmatmul.msk.bf16.gmra.mxu0 %vm882_vm6, %v1109_v9 }
 0x3e4   : > { %v1074_v10 = vpop.f32.mrf.mxu3 }
 0x3ec   : > { %v1076_v21 = vpop.f32.mrf.mxu3 }
 0x3ed   : > { %v1094_v51 = vpack.c.bf16 %v1076_v21, %v1074_v10 }
 0x3ef   : > { %2123 = vmatmul.msk.bf16.vlgmr.msra.gmra.mxu2 %vm882_vm6, %v1094_v51 }
 0x3f1   : > { %2127 = vmatmul.msk.bf16.vlgmr.msra.gmra.mxu0 %vm882_vm6, %v1418_v54 }
 0x401   : > { %2128 = vmatmul.msk.bf16.gmra.mxu0 %vm882_vm6, %v1420_v44 }
 0x411   : > { %2129 = vmatmul.msk.bf16.gmra.mxu0 %vm882_vm6, %v1422_v61 }
 0x415   : > { %v1079_v2 = vpop.f32.mrf.mxu3 }
 0x41d   : > { %v1081_v29 = vpop.f32.mrf.mxu3 }
 0x41e   : > { %v1095_v33 = vpack.c.bf16 %v1081_v29, %v1079_v2 }
 0x420   : > { %2124 = vmatmul.msk.bf16.gmra.mxu2 %vm882_vm6, %v1095_v33 }
 0x421   : > { %2130 = vmatmul.msk.bf16.gmra.mxu0 %vm882_vm6, %v1424_v31 }
 0x425   : > { %v1084_v55 = vpop.f32.mrf.mxu3 }
 0x42d   : > { %v1086_v38 = vpop.f32.mrf.mxu3 }
 0x42e   : > { %v1096_v39 = vpack.c.bf16 %v1086_v38, %v1084_v55  ;;  %v1151_v16 = vpop.f32.mrf.mxu0 }
 0x42f   : > { %v3017_v42 = vmul.f32 0.35355338, %v1151_v16 }
 0x430   : > { %2125 = vmatmul.msk.bf16.gmra.mxu2 %vm882_vm6, %v1096_v39 }
 0x431   : > { %v1179_v59 = vsel %vm944_vm7, %v3017_v42, -inf }
 0x432   : > { %1180 = vmax.xlane.f32.xlu1 %v1179_v59 }
 0x435   : > { %v1089_v26 = vpop.f32.mrf.mxu3 }
 0x436   : > { %v1153_v3 = vpop.f32.mrf.mxu0 }
 0x437   : > { %v3022_v46 = vmul.f32 0.35355338, %v1153_v3 }
 0x439   : > { %v1182_v47 = vsel %vm944_vm7, %v3022_v46, -inf }
 0x43a   : > { %1183 = vmax.xlane.f32.xlu2 %v1182_v47 }
 0x43d   : > { %v1091_v14 = vpop.f32.mrf.mxu3 }
 0x43e   : > { %v1097_v48 = vpack.c.bf16 %v1091_v14, %v1089_v26  ;;  %v1156_v53 = vpop.f32.mrf.mxu0 }
 0x43f   : > { %v3026_v50 = vmul.f32 0.35355338, %v1156_v53 }
 0x440   : > { %2126 = vmatmul.msk.bf16.gmra.mxu2 %vm882_vm6, %v1097_v48 }
 0x441   : > { %v1185_v35 = vsel %vm944_vm7, %v3026_v50, -inf }
 0x442   : > { %1186 = vmax.xlane.f32.xlu0 %v1185_v35 }
 0x446   : > { %v1158_v36 = vpop.f32.mrf.mxu0 }
 0x447   : > { %v3031_v43 = vmul.f32 0.35355338, %v1158_v36 }
 0x449   : > { %v1188_v56 = vsel %vm944_vm7, %v3031_v43, -inf }
 0x44a   : > { %1189 = vmax.xlane.f32.xlu1 %v1188_v56 }
 0x44e   : > { %v1161_v57 = vpop.f32.mrf.mxu0 }
 0x44f   : > { %v3035_v60 = vmul.f32 0.35355338, %v1161_v57 }
 0x450   : > { %2139 = vmatmul.msk.bf16.vlgmr.msrb.gmra.mxu2 %vm882_vm6, %v1696_v23 }
 0x451   : > { %v1191_v62 = vsel %vm944_vm7, %v3035_v60, -inf }
 0x452   : > { %1192 = vmax.xlane.f32.xlu2 %v1191_v62 }
 0x456   : > { %v1163_v25 = vpop.f32.mrf.mxu0 }
 0x457   : > { %v3040_v63 = vmul.f32 0.35355338, %v1163_v25 }
 0x459   : > { %v1194_v11 = vsel %vm944_vm7, %v3040_v63, -inf }
 0x45a   : > { %1195 = vmax.xlane.f32.xlu0 %v1194_v11 }
 0x45e   : > { %v1166_v22 = vpop.f32.mrf.mxu0 }
 0x45f   : > { %v3044_v40 = vmul.f32 0.35355338, %v1166_v22 }
 0x460   : > { %2140 = vmatmul.msk.bf16.gmra.mxu2 %vm882_vm6, %v1698_v27 }
 0x461   : > { %v1197_v58 = vsel %vm944_vm7, %v3044_v40, -inf }
 0x462   : > { %1198 = vmax.xlane.f32.xlu1 %v1197_v58 }
 0x466   : > { %v1168_v37 = vpop.f32.mrf.mxu0 }
 0x467   : > { %v3049_v41 = vmul.f32 0.35355338, %v1168_v37 }
 0x469   : > { %v1200_v17 = vsel %vm944_vm7, %v3049_v41, -inf }
 0x46a   : > { %1201 = vmax.xlane.f32.xlu2 %v1200_v17 }
 0x46e   : > { %1277 = vrot.lane.b32.xlu0 %v2847_v28, %s2365_s27  ;;  %v1466_v9 = vpop.f32.mrf.mxu0 }
 0x46f   : > { %v3064_v4 = vmul.f32 0.35355338, %v1466_v9 }
 0x470   : > { %2141 = vmatmul.msk.bf16.gmra.mxu2 %vm882_vm6, %v1700_v49 }
 0x471   : > { %v1494_v34 = vsel %vm944_vm7, %v3064_v4, -inf }
 0x472   : > { %v3060_v19 = vpop.f32.mrf.mxu2 }
 0x476   : > { %1271 = vrot.lane.b32.xlu0 %v2862_v32, %s2365_s27  ;;  %v1468_v20 = vpop.f32.mrf.mxu0 }
 0x477   : > { %v3070_v30 = vmul.f32 0.35355338, %v1468_v20 }
 0x479   : > { %v1497_v10 = vsel %vm944_vm7, %v3070_v30, -inf }
 0x47a   : > { %v3066_v15 = vpop.f32.mrf.mxu2 }
 0x47b   : > { %1275 = vrot.lane.b32.xlu1 %v2853_v45, %s2365_s27 }
 0x47e   : > { %v1471_v5 = vpop.f32.mrf.mxu0 }
 0x47f   : > { %v3081_v23 = vmul.f32 0.35355338, %v1471_v5 }
 0x480   : > { %2142 = vmatmul.msk.bf16.gmra.mxu2 %vm882_vm6, %v1702_v18 }
 0x481   : > { %v1500_v2 = vsel %vm944_vm7, %v3081_v23, -inf }
 0x482   : > { %1273 = vrot.lane.b32.xlu2 %v2858_v24, %s2365_s27 }
 0x486   : > { %v1473_v21 = vpop.f32.mrf.mxu0 }
 0x48a   : > { %1590 = vrot.lane.b32.xlu2 %v2853_v45, %s2366_s28 }
 0x48e   : > { %v1476_v54 = vpop.f32.mrf.mxu0 }
 0x48f   : > { %v3090_v29 = vmul.f32 0.35355338, %v1476_v54  ;;  %v3127_v54 = vmul.f32 0.35355338, %v1473_v21 }
 0x492   : > { %1870 = vrot.lane.b32.xlu2 %v2847_v28, %s2367_s29 }
 0x496   : > { %v3083_v61 = vpop.f32.mrf.mxu0 }
 0x49e   : > { %v1481_v55 = vpop.f32.mrf.mxu0 }
 0x49f   : > { %v3098_v16 = vmul.f32 0.35355338, %v1481_v55 }
 0x4a0   : > { %1495 = vmax.xlane.f32.xlu0 %v1494_v34 }
 0x4a1   : > { %v1512_v47 = vsel %vm944_vm7, %v3098_v16, -inf }
 0x4a3   : > { %v3072_v52 = vpop.f32.mrf.mxu2 }
 0x4a5   : > { %1498 = vmax.xlane.f32.xlu1 %v1497_v10  ;;  %v3100_v26 = vpop.xlane.xlu1 %1180 }
 0x4ab   : > { %v3076_v51 = vpop.f32.mrf.mxu2 }
 0x4ad   : > { %v1184_v33 = vpop.xlane.xlu2 %1183 }
 0x4ae   : > { %v1204_v31 = vsub.f32 %v3022_v46, %v1184_v33 }
 0x4b0   : > { %v1213_v39 = vmul.f32 1.442695, %v1204_v31  ;;  %v1503_v31 = vsel %vm944_vm7, %v3127_v54, -inf }
 0x4b2   : > { %2254 = vpow2.f32 %v1213_v39 }
 0x4b3   : > { %v3078_v44 = vpop.f32.mrf.mxu2 }
 0x4b4   : > { %1592 = vrot.lane.b32.xlu0 %v2847_v28, %s2366_s28  ;;  %v1506_v28 = vsel %vm944_vm7, %v3090_v29, -inf }
 0x4b5   : > { %v1187_v59 = vpop.xlane.xlu0 %1186 }
 0x4b6   : > { %v1205_v3 = vsub.f32 %v3026_v50, %v1187_v59  ;;  %v3143_v59 = vmul.f32 0.35355338, %v3083_v61 }
 0x4b8   : > { %v1215_v14 = vmul.f32 1.442695, %v1205_v3  ;;  %v3107_v53 = vpop.eup %2254 }
 0x4b9   : > { %v1230_v56 = vsel %vm944_vm7, %v3107_v53, 0.0 }
 0x4ba   : > { %2256 = vpow2.f32 %v1215_v14 }
 0x4bb   : > { %v3087_v27 = vpop.f32.mrf.mxu2  ;;  %1501 = vmax.xlane.f32.xlu2 %v1500_v2 }
 0x4bc   : > { %1586 = vrot.lane.b32.xlu0 %v2862_v32, %s2366_s28 }
 0x4bd   : > { %v1190_v35 = vpop.xlane.xlu1 %1189 }
 0x4be   : > { %1588 = vrot.lane.b32.xlu1 %v2858_v24, %s2366_s28  ;;  %v1206_v50 = vsub.f32 %v3031_v43, %v1190_v35  ;;  %v1509_v35 = vsel %vm944_vm7, %v3143_v59, -inf }
 0x4c0   : > { %v3115_v11 = vpop.eup %2256  ;;  %v1217_v22 = vmul.f32 1.442695, %v1206_v50 }
 0x4c1   : > { %v1233_v58 = vsel %vm944_vm7, %v3115_v11, 0.0 }
 0x4c3   : > { %v3096_v38 = vpop.f32.mrf.mxu2  ;;  %1507 = vmax.xlane.f32.xlu2 %v1506_v28 }
 0x4c5   : > { %v1193_v62 = vpop.xlane.xlu2 %1192 }
 0x4cb   : > { %v3105_v46 = vpop.f32.mrf.mxu2  ;;  %1513 = vmax.xlane.f32.xlu2 %v1512_v47 }
 0x4cd   : > { %v1196_v48 = vpop.xlane.xlu0 %1195 }
 0x4ce   : > { %v1208_v36 = vsub.f32 %v3040_v63, %v1196_v48  ;;  %v1207_v63 = vsub.f32 %v3035_v60, %v1193_v62  ;;  %v1203_v48 = vsub.f32 %v3017_v42, %v3100_v26 }
 0x4d0   : > { %v1221_v25 = vmul.f32 1.442695, %v1208_v36  ;;  %v1219_v43 = vmul.f32 1.442695, %v1207_v63  ;;  %v1483_v36 = vpop.f32.mrf.mxu0 }
 0x4d1   : > { %v3153_v50 = vmul.f32 0.35355338, %v1483_v36 }
 0x4d2   : > { %2258 = vpow2.f32 %v1221_v25 }
 0x4d3   : > { %v3112_v57 = vpop.f32.mrf.mxu2  ;;  %1231 = vadd.xlane.f32.xlu2 %v1230_v56  ;;  %2260 = vpow2.f32 %v1217_v22  ;;  %v1211_v56 = vmul.f32 1.442695, %v1203_v48  ;;  %v1515_v26 = vsel %vm944_vm7, %v3153_v50, -inf }
 0x4d5   : > { %v1199_v5 = vpop.xlane.xlu1 %1198 }
 0x4d6   : > { %v1209_v60 = vsub.f32 %v3044_v40, %v1199_v5 }
 0x4d8   : > { %v3121_v18 = vpop.eup %2258  ;;  %v1223_v55 = vmul.f32 1.442695, %v1209_v60 }
 0x4d9   : > { %v3123_v34 = vpop.eup %2260  ;;  %v1242_v10 = vsel %vm944_vm7, %v3121_v18, 0.0 }
 0x4da   : > { %v1236_v33 = vsel %vm944_vm7, %v3123_v34, 0.0 }
 0x4db   : > { %v1746_v37 = vpop.f32.mrf.mxu2  ;;  %1234 = vadd.xlane.f32.xlu2 %v1233_v58 }
 0x4dc   : > { %v3159_v58 = vmul.f32 0.35355338, %v1746_v37 }
 0x4dd   : > { %v1202_v17 = vpop.xlane.xlu2 %1201 }
 0x4de   : > { %v1210_v49 = vsub.f32 %v3049_v41, %v1202_v17 }
 0x4e0   : > { %v1225_v9 = vmul.f32 1.442695, %v1210_v49  ;;  %v1278_v20 = vpop.permute.xlu0 %1277  ;;  %v1775_v49 = vsel %vm944_vm7, %v3159_v58, -inf }
 0x4e1   : > { %1299 = vmatpush.bf16.msrb.mxu1 %v1278_v20 }
 0x4e2   : > { %2262 = vpow2.f32 %v1225_v9 }
 0x4e3   : > { %v3129_v2 = vpop.f32.mrf.mxu2  ;;  %1243 = vadd.xlane.f32.xlu2 %v1242_v10  ;;  %2264 = vpow2.f32 %v1219_v43 }
 0x4e4   : > { %2266 = vpow2.f32 %v1223_v55 }
 0x4e5   : > { %v1274_v41 = vpop.permute.xlu2 %1273  ;;  %2268 = vpow2.f32 %v1211_v56 }
 0x4e6   : > { %1237 = vadd.xlane.f32.xlu0 %v1236_v33 }
 0x4e8   : > { %v3136_v28 = vpop.eup %2262  ;;  %1504 = vmax.xlane.f32.xlu1 %v1503_v31  ;;  %v1272_v42 = vpop.permute.xlu0 %1271 }
 0x4e9   : > { %v1248_v21 = vsel %vm944_vm7, %v3136_v28, 0.0  ;;  %v3140_v39 = vpop.eup %2264 }
 0x4ea   : > { %v1239_v14 = vsel %vm944_vm7, %v3140_v39, 0.0  ;;  %v3151_v61 = vpop.eup %2266 }
 0x4eb   : > { %v1751_v40 = vpop.f32.mrf.mxu2  ;;  %1249 = vadd.xlane.f32.xlu2 %v1248_v21  ;;  %v1245_v22 = vsel %vm944_vm7, %v3151_v61, 0.0  ;;  %v3161_v17 = vpop.eup %2268 }
 0x4ec   : > { %v1227_v43 = vsel %vm944_vm7, %v3161_v17, 0.0  ;;  %v3167_v9 = vmul.f32 0.35355338, %v1751_v40 }
 0x4ed   : > { %v1276_v3 = vpop.permute.xlu1 %1275  ;;  %v1591_v47 = vpop.permute.xlu2 %1590 }
 0x4ee   : > { %1240 = vadd.xlane.f32.xlu0 %v1239_v14  ;;  %1300 = vmatpush.bf16.msrb.mxu1 %v1276_v3  ;;  %v1781_v5 = vsel %vm944_vm7, %v3167_v9, -inf }
 0x4f0   : > { %1510 = vmax.xlane.f32.xlu1 %v1509_v35 }
 0x4f2   : > { %1301 = vmatpush.bf16.msrb.mxu1 %v1274_v41 }
 0x4f3   : > { %v1754_v62 = vpop.f32.mrf.mxu2 }
 0x4f5   : > { %v1871_v25 = vpop.permute.xlu2 %1870 }
 0x4f6   : > { %1892 = vmatpush.bf16.msrb.mxu0 %v1871_v25  ;;  %1246 = vadd.xlane.f32.xlu0 %v1245_v22  ;;  %v3190_v25 = vmul.f32 0.35355338, %v3112_v57  ;;  %v3197_v22 = vmul.f32 0.35355338, %v3129_v2  ;;  %v3201_v57 = vmul.f32 0.35355338, %v1754_v62 }
 0x4f7   : > { %1302 = vmatpush.bf16.msrb.mxu1 %v1272_v42 }
 0x4f8   : > { %1516 = vmax.xlane.f32.xlu1 %v1515_v26 }
 0x4fb   : > { %v1756_v63 = vpop.f32.mrf.mxu2 }
 0x4fc   : > { %v3171_v37 = vmul.f32 0.35355338, %v1756_v63  ;;  %v1778_v63 = vsel %vm944_vm7, %v3197_v22, -inf }
 0x4fe   : > { %1776 = vmax.xlane.f32.xlu0 %v1775_v49  ;;  %v1787_v10 = vsel %vm944_vm7, %v3171_v37, -inf }
 0x500   : > { %1228 = vadd.xlane.f32.xlu1 %v1227_v43 }
 0x503   : > { %v1759_v20 = vpop.f32.mrf.mxu2 }
 0x504   : > { %v3205_v49 = vmul.f32 0.35355338, %v1759_v20 }
 0x506   : > { %1782 = vmax.xlane.f32.xlu0 %v1781_v5  ;;  %v1790_v43 = vsel %vm944_vm7, %v3205_v49, -inf }
 0x50b   : > { %v1761_v60 = vpop.f32.mrf.mxu2 }
 0x50c   : > { %v3175_v41 = vmul.f32 0.35355338, %v1761_v60 }
 0x50e   : > { %1788 = vmax.xlane.f32.xlu0 %v1787_v10  ;;  %v1793_v55 = vsel %vm944_vm7, %v3175_v41, -inf }
 0x513   : > { %v1496_v33 = vpop.xlane.xlu0 %1495 }
 0x514   : > { %v1518_v31 = vsub.f32 %v3064_v4, %v1496_v33 }
 0x516   : > { %v1526_v21 = vmul.f32 1.442695, %v1518_v31  ;;  %1794 = vmax.xlane.f32.xlu0 %v1793_v55 }
 0x518   : > { %2270 = vpow2.f32 %v1526_v21  ;;  %v1499_v40 = vpop.xlane.xlu1 %1498 }
 0x519   : > { %v1519_v3 = vsub.f32 %v3070_v30, %v1499_v40  ;;  %v1772_v30 = vsel %vm944_vm7, %v3190_v25, -inf }
 0x51b   : > { %v1528_v14 = vmul.f32 1.442695, %v1519_v3 }
 0x51d   : > { %2272 = vpow2.f32 %v1528_v14 }
 0x51e   : > { %v3181_v48 = vpop.eup %2270 }
 0x51f   : > { %v1542_v35 = vsel %vm944_vm7, %v3181_v48, 0.0 }
 0x520   : > { %1543 = vadd.xlane.f32.xlu2 %v1542_v35 }
 0x523   : > { %v3185_v36 = vpop.eup %2272 }
 0x524   : > { %v1545_v4 = vsel %vm944_vm7, %v3185_v36, 0.0 }
 0x525   : > { %1546 = vadd.xlane.f32.xlu1 %v1545_v4 }
 0x526   : > { %v1593_v56 = vpop.permute.xlu0 %1592 }
 0x527   : > { %1614 = vmatpush.bf16.msra.mxu1 %v1593_v56 }
 0x52a   : > { %1868 = vrot.lane.b32.xlu0 %v2853_v45, %s2367_s29  ;;  %v1784_v45 = vsel %vm944_vm7, %v3201_v57, -inf }
 0x52b   : > { %1615 = vmatpush.bf16.msra.mxu1 %v1591_v47 }
 0x52d   : > { %1773 = vmax.xlane.f32.xlu1 %v1772_v30 }
 0x52e   : > { %v1587_v26 = vpop.permute.xlu0 %1586  ;;  %v1502_v47 = vpop.xlane.xlu2 %1501 }
 0x52f   : > { %v1520_v2 = vsub.f32 %v3081_v23, %v1502_v47 }
 0x530   : > { %v1589_v42 = vpop.permute.xlu1 %1588 }
 0x531   : > { %1616 = vmatpush.bf16.msra.mxu1 %v1589_v42  ;;  %v1530_v5 = vmul.f32 1.442695, %v1520_v2 }
 0x533   : > { %2274 = vpow2.f32 %v1530_v5 }
 0x535   : > { %1779 = vmax.xlane.f32.xlu1 %v1778_v63  ;;  %1617 = vmatpush.bf16.msra.mxu1 %v1587_v26 }
 0x536   : > { %v1508_v10 = vpop.xlane.xlu2 %1507 }
 0x537   : > { %v1522_v60 = vsub.f32 %v3090_v29, %v1508_v10 }
 0x539   : > { %v1534_v62 = vmul.f32 1.442695, %v1522_v60  ;;  %v3211_v33 = vpop.eup %2274 }
 0x53a   : > { %v1548_v31 = vsel %vm944_vm7, %v3211_v33, 0.0 }
 0x53b   : > { %2276 = vpow2.f32 %v1534_v62 }
 0x53d   : > { %1785 = vmax.xlane.f32.xlu1 %v1784_v45 }
 0x53e   : > { %v3221_v4 = vpop.xlane.xlu2 %1513 }
 0x541   : > { %v3215_v20 = vpop.eup %2276 }
 0x542   : > { %v1554_v21 = vsel %vm944_vm7, %v3215_v20, 0.0 }
 0x545   : > { %1791 = vmax.xlane.f32.xlu1 %v1790_v43 }
 0x546   : > { %v1232_v45 = vpop.xlane.xlu2 %1231 }
 0x554   : > { %1549 = vadd.xlane.f32.xlu0 %v1548_v31 }
 0x559   : > { %v1238_v23 = vpop.xlane.xlu0 %1237 }
 0x55b   : > { %v1505_v55 = vpop.xlane.xlu1 %1504 }
 0x55c   : > { %v1521_v40 = vsub.f32 %v3127_v54, %v1505_v55  ;;  %1555 = vadd.xlane.f32.xlu0 %v1554_v21 }
 0x55e   : > { %v1532_v3 = vmul.f32 1.442695, %v1521_v40 }
 0x560   : > { %2278 = vpow2.f32 %v1532_v3 }
 0x561   : > { %v1241_v29 = vpop.xlane.xlu0 %1240 }
 0x563   : > { %v1511_v14 = vpop.xlane.xlu1 %1510 }
 0x564   : > { %v1523_v35 = vsub.f32 %v3143_v59, %v1511_v14 }
 0x566   : > { %v3223_v56 = vpop.eup %2278  ;;  %v1536_v30 = vmul.f32 1.442695, %v1523_v35 }
 0x567   : > { %v1551_v42 = vsel %vm944_vm7, %v3223_v56, 0.0 }
 0x568   : > { %2280 = vpow2.f32 %v1536_v30  ;;  %1552 = vadd.xlane.f32.xlu1 %v1551_v42 }
 0x569   : > { %v3227_v26 = vpop.xlane.xlu0 %1246  ;;  %2282 = vrcp.f32 %v1232_v45 }
 0x56b   : > { %v1517_v54 = vpop.xlane.xlu1 %1516 }
 0x56c   : > { %v1525_v30 = vsub.f32 %v3153_v50, %v1517_v54 }
 0x56e   : > { %v3229_v63 = vpop.eup %2280  ;;  %v1540_v45 = vmul.f32 1.442695, %v1525_v30 }
 0x56f   : > { %v1557_v47 = vsel %vm944_vm7, %v3229_v63, 0.0  ;;  %v2283_v10 = vpop.eup %2282 }
 0x570   : > { %1558 = vadd.xlane.f32.xlu0 %v1557_v47  ;;  %v1260_v31 = vmul.f32 %v2283_v10, %v3107_v53 }
 0x571   : > { %v1777_v59 = vpop.xlane.xlu0 %1776 }
 0x572   : > { %v1797_v2 = vsub.f32 %v3159_v58, %v1777_v59  ;;  %v1235_v58 = vpop.xlane.xlu2 %1234 }
 0x573   : > { %v1229_v43 = vpop.xlane.xlu1 %1228 }
 0x574   : > { %v1806_v5 = vmul.f32 1.442695, %v1797_v2  ;;  %2284 = vrcp.f32 %v1229_v43 }
 0x576   : > { %2286 = vpow2.f32 %v1806_v5 }
 0x577   : > { %2288 = vrcp.f32 %v1238_v23 }
 0x578   : > { %2290 = vrcp.f32 %v1235_v58 }
 0x579   : > { %v3234_v60 = vpop.xlane.xlu0 %1782 }
 0x57a   : > { %v2285_v62 = vpop.eup %2284  ;;  %v1244_v50 = vpop.xlane.xlu2 %1243 }
 0x57b   : > { %v1259_v55 = vmul.f32 %v2285_v62, %v3161_v17 }
 0x57c   : > { %v3238_v21 = vpop.eup %2286 }
 0x57d   : > { %v1823_v40 = vsel %vm944_vm7, %v3238_v21, 0.0  ;;  %v1267_v3 = vpack.c.bf16 %v1260_v31, %v1259_v55  ;;  %v2289_v42 = vpop.eup %2288 }
 0x57e   : > { %1824 = vadd.xlane.f32.xlu1 %v1823_v40  ;;  %v2291_v17 = vpop.eup %2290  ;;  %v1262_v59 = vmul.f32 %v2289_v42, %v3123_v34 }
 0x57f   : > { %2115 = vmatmul.msk.bf16.vlgmr.msrb.gmra.mxu1 %vm944_vm7, %v1267_v3  ;;  %v1261_v2 = vmul.f32 %v2291_v17, %v3115_v11 }
 0x581   : > { %v1789_v14 = vpop.xlane.xlu0 %1788  ;;  %v1268_v5 = vpack.c.bf16 %v1262_v59, %v1261_v2 }
 0x582   : > { %v1801_v35 = vsub.f32 %v3171_v37, %v1789_v14  ;;  %v1250_v14 = vpop.xlane.xlu2 %1249 }
 0x584   : > { %v1814_v53 = vmul.f32 1.442695, %v1801_v35 }
 0x586   : > { %2292 = vpow2.f32 %v1814_v53 }
 0x587   : > { %2294 = vpow2.f32 %v1540_v45 }
 0x588   : > { %2296 = vrcp.f32 %v1241_v29 }
 0x589   : > { %v1795_v47 = vpop.xlane.xlu0 %1794  ;;  %2298 = vrcp.f32 %v1244_v50 }
 0x58a   : > { %v1803_v23 = vsub.f32 %v3175_v41, %v1795_v47 }
 0x58c   : > { %v3247_v43 = vpop.eup %2292  ;;  %v1818_v54 = vmul.f32 1.442695, %v1803_v23 }
 0x58d   : > { %v1835_v37 = vsel %vm944_vm7, %v3247_v43, 0.0  ;;  %v3253_v10 = vpop.eup %2294 }
 0x58e   : > { %1836 = vadd.xlane.f32.xlu0 %v1835_v37  ;;  %2300 = vpow2.f32 %v1818_v54  ;;  %v1563_v11 = vsel %vm944_vm7, %v3253_v10, 0.0  ;;  %v2297_v34 = vpop.eup %2296 }
 0x58f   : > { %2116 = vmatmul.msk.bf16.gmra.mxu1 %vm944_vm7, %v1268_v5  ;;  %v2299_v41 = vpop.eup %2298  ;;  %v1263_v31 = vmul.f32 %v2297_v34, %v3140_v39  ;;  %2302 = vrcp.f32 %v3227_v26  ;;  %v1799_v26 = vsub.f32 %v3167_v9, %v3234_v60 }
 0x590   : > { %v1264_v29 = vmul.f32 %v2299_v41, %v3121_v18  ;;  %2304 = vrcp.f32 %v1250_v14 }
 0x591   : > { %v1810_v59 = vmul.f32 1.442695, %v1799_v26 }
 0x592   : > { %v1269_v58 = vpack.c.bf16 %v1264_v29, %v1263_v31 }
 0x594   : > { %v3260_v55 = vpop.eup %2300 }
 0x595   : > { %v1841_v3 = vsel %vm944_vm7, %v3260_v55, 0.0  ;;  %v2303_v30 = vpop.eup %2302 }
 0x596   : > { %1564 = vadd.xlane.f32.xlu0 %v1563_v11  ;;  %v2305_v18 = vpop.eup %2304  ;;  %v1265_v53 = vmul.f32 %v2303_v30, %v3151_v61 }
 0x597   : > { %1864 = vrot.lane.b32.xlu1 %v2862_v32, %s2367_s29  ;;  %v1266_v17 = vmul.f32 %v2305_v18, %v3136_v28 }
 0x598   : > { %v1547_v62 = vpop.xlane.xlu1 %1546 }
 0x599   : > { %v1270_v47 = vpack.c.bf16 %v1266_v17, %v1265_v53 }
 0x59c   : > { %v1869_v40 = vpop.permute.xlu0 %1868 }
 0x59d   : > { %1893 = vmatpush.bf16.msrb.mxu0 %v1869_v40 }
 0x59e   : > { %1842 = vadd.xlane.f32.xlu0 %v1841_v3 }
 0x59f   : > { %2117 = vmatmul.msk.bf16.gmra.mxu1 %vm944_vm7, %v1269_v58 }
 0x5a0   : > { %v1774_v32 = vpop.xlane.xlu1 %1773 }
 0x5a1   : > { %v1796_v35 = vsub.f32 %v3190_v25, %v1774_v32  ;;  %v1544_v25 = vpop.xlane.xlu2 %1543 }
 0x5a3   : > { %v1804_v39 = vmul.f32 1.442695, %v1796_v35 }
 0x5a5   : > { %2306 = vpow2.f32 %v1804_v39 }
 0x5a6   : > { %2308 = vrcp.f32 %v1547_v62 }
 0x5a7   : > { %2310 = vrcp.f32 %v1544_v25 }
 0x5a8   : > { %2312 = vpow2.f32 %v1810_v59  ;;  %v1780_v50 = vpop.xlane.xlu1 %1779 }
 0x5ab   : > { %v3269_v42 = vpop.eup %2306 }
 0x5ac   : > { %v1820_v45 = vsel %vm944_vm7, %v3269_v42, 0.0  ;;  %v2309_v2 = vpop.eup %2308 }
 0x5ad   : > { %1821 = vadd.xlane.f32.xlu2 %v1820_v45  ;;  %v2311_v61 = vpop.eup %2310  ;;  %v1575_v23 = vmul.f32 %v2309_v2, %v3185_v36 }
 0x5ae   : > { %v1574_v28 = vmul.f32 %v2311_v61, %v3181_v48  ;;  %v3279_v37 = vpop.eup %2312  ;;  %v1798_v48 = vsub.f32 %v3197_v22, %v1780_v50  ;;  %v871_v22 = vld [vmem:[%s3404_s8 + $0x4] sm:$0xf] }
 0x5af   : > { %2118 = vmatmul.msk.bf16.gmra.mxu1 %vm944_vm7, %v1270_v47  ;;  %v1829_v9 = vsel %vm944_vm7, %v3279_v37, 0.0 }
 0x5b0   : > { %v1582_v5 = vpack.c.bf16 %v1575_v23, %v1574_v28  ;;  %v1786_v60 = vpop.xlane.xlu1 %1785  ;;  %v1808_v62 = vmul.f32 1.442695, %v1798_v48 }
 0x5b1   : > { %v1800_v3 = vsub.f32 %v3201_v57, %v1786_v60 }
 0x5b3   : > { %v1812_v14 = vmul.f32 1.442695, %v1800_v3 }
 0x5b8   : > { %v1792_v54 = vpop.xlane.xlu1 %1791 }
 0x5b9   : > { %v1802_v45 = vsub.f32 %v3205_v49, %v1792_v54 }
 0x5bb   : > { %v1816_v47 = vmul.f32 1.442695, %v1802_v45 }
 0x5bf   : > { %2131 = vmatmul.msk.bf16.vlgmr.msra.gmra.mxu1 %vm944_vm7, %v1582_v5 }
 0x5c1   : > { %1830 = vadd.xlane.f32.xlu1 %v1829_v9 }
 0x5c5   : > { %1866 = vrot.lane.b32.xlu2 %v2858_v24, %s2367_s29 }
 0x5c7   : > { %v1550_v11 = vpop.xlane.xlu0 %1549 }
 0x5c8   : > { %2314 = vrcp.f32 %v1550_v11  ;;  %v872_v11 = vld [vmem:[%s3404_s8 + $0x8] sm:$0xf] }
 0x5ce   : > { %v2315_v41 = vpop.eup %2314 }
 0x5cf   : > { %v1556_v34 = vpop.xlane.xlu0 %1555  ;;  %v1576_v29 = vmul.f32 %v2315_v41, %v3211_v33  ;;  %v1342_v33 = vsel %vm1340_vm8, %v871_v22, 0 }
 0x5d0   : > { %1351 = vmatpush.bf16.msra.mxu3 %v1342_v33 }
 0x5db   : > { %v1553_v36 = vpop.xlane.xlu1 %1552 }
 0x5dc   : > { %2316 = vrcp.f32 %v1553_v36  ;;  %v1656_v36 = vsel %vm1340_vm8, %v872_v11, 0 }
 0x5dd   : > { %2318 = vpow2.f32 %v1808_v62  ;;  %1665 = vmatpush.bf16.msrb.mxu3 %v1656_v36 }
 0x5e2   : > { %v2317_v31 = vpop.eup %2316 }
 0x5e3   : > { %v1577_v40 = vmul.f32 %v2317_v31, %v3223_v56  ;;  %v1559_v24 = vpop.xlane.xlu0 %1558  ;;  %v3294_v32 = vpop.eup %2318  ;;  %v1524_v56 = vsub.f32 %v3098_v16, %v3221_v4 }
 0x5e4   : > { %2320 = vrcp.f32 %v1559_v24  ;;  %v1826_v57 = vsel %vm944_vm7, %v3294_v32, 0.0 }
 0x5e5   : > { %v1583_v58 = vpack.c.bf16 %v1577_v40, %v1576_v29  ;;  %2322 = vrcp.f32 %v1556_v34  ;;  %v1538_v30 = vmul.f32 1.442695, %v1524_v56 }
 0x5e6   : > { %2324 = vpow2.f32 %v1812_v14 }
 0x5e7   : > { %2132 = vmatmul.msk.bf16.gmra.mxu1 %vm944_vm7, %v1583_v58  ;;  %2326 = vpow2.f32 %v1538_v30 }
 0x5e8   : > { %2328 = vpow2.f32 %v1816_v47 }
 0x5ea   : > { %v2321_v35 = vpop.eup %2320 }
 0x5eb   : > { %v2323_v39 = vpop.eup %2322  ;;  %v1579_v18 = vmul.f32 %v2321_v35, %v3229_v63 }
 0x5ec   : > { %v3302_v53 = vpop.eup %2324  ;;  %v1578_v17 = vmul.f32 %v2323_v39, %v3215_v20 }
 0x5ed   : > { %v1832_v16 = vsel %vm944_vm7, %v3302_v53, 0.0  ;;  %v3309_v26 = vpop.eup %2326 }
 0x5ee   : > { %1827 = vadd.xlane.f32.xlu2 %v1826_v57  ;;  %v1584_v4 = vpack.c.bf16 %v1579_v18, %v1578_v17  ;;  %v1560_v63 = vsel %vm944_vm7, %v3309_v26, 0.0  ;;  %v3313_v20 = vpop.eup %2328 }
 0x5ef   : > { %v1838_v2 = vsel %vm944_vm7, %v3313_v20, 0.0 }
 0x5f1   : > { %v1825_v50 = vpop.xlane.xlu1 %1824 }
 0x5f6   : > { %1833 = vadd.xlane.f32.xlu2 %v1832_v16 }
 0x5f7   : > { %2133 = vmatmul.msk.bf16.gmra.mxu1 %vm944_vm7, %v1584_v4 }
 0x5fc   : > { %v1304_v25 = vpop.f32.mrf.mxu1 }
 0x5fe   : > { %1561 = vadd.xlane.f32.xlu2 %v1560_v63 }
 0x604   : > { %v1306_v59 = vpop.f32.mrf.mxu1 }
 0x605   : > { %v1324_v49 = vpack.c.bf16 %v1306_v59, %v1304_v25 }
 0x606   : > { %1839 = vadd.xlane.f32.xlu2 %v1838_v2 }
 0x607   : > { %2119 = vmatmul.msk.bf16.vlgmr.msra.gmra.mxu3 %vm882_vm6, %v1324_v49 }
 0x609   : > { %v1865_v29 = vpop.permute.xlu1 %1864 }
 0x60c   : > { %v1309_v61 = vpop.f32.mrf.mxu1 }
 0x614   : > { %v1311_v23 = vpop.f32.mrf.mxu1 }
 0x615   : > { %v1325_v28 = vpack.c.bf16 %v1311_v23, %v1309_v61 }
 0x617   : > { %2120 = vmatmul.msk.bf16.gmra.mxu3 %vm882_vm6, %v1325_v28 }
 0x61c   : > { %v1314_v5 = vpop.f32.mrf.mxu1 }
 0x620   : > { %v1822_v9 = vpop.xlane.xlu2 %1821 }
 0x621   : > { %2330 = vrcp.f32 %v1822_v9 }
 0x622   : > { %2332 = vrcp.f32 %v1825_v50 }
 0x624   : > { %v1316_v60 = vpop.f32.mrf.mxu1 }
 0x625   : > { %v1326_v54 = vpack.c.bf16 %v1316_v60, %v1314_v5 }
 0x627   : > { %v2331_v48 = vpop.eup %2330  ;;  %2121 = vmatmul.msk.bf16.gmra.mxu3 %vm882_vm6, %v1326_v54 }
 0x628   : > { %v1867_v34 = vpop.permute.xlu2 %1866  ;;  %v2333_v41 = vpop.eup %2332  ;;  %v1852_v62 = vmul.f32 %v2331_v48, %v3269_v42 }
 0x629   : > { %1894 = vmatpush.bf16.msrb.mxu0 %v1867_v34  ;;  %v1853_v31 = vmul.f32 %v2333_v41, %v3238_v21  ;;  %v1837_v21 = vpop.xlane.xlu0 %1836 }
 0x62b   : > { %v1860_v3 = vpack.c.bf16 %v1853_v31, %v1852_v62 }
 0x62c   : > { %v1319_v40 = vpop.f32.mrf.mxu1 }
 0x62d   : > { %1895 = vmatpush.bf16.msrb.mxu0 %v1865_v29 }
 0x630   : > { %2143 = vmatmul.msk.bf16.vlgmr.msrb.gmra.mxu0 %vm944_vm7, %v1860_v3 }
 0x631   : > { %v1565_v4 = vpop.xlane.xlu0 %1564 }
 0x634   : > { %v1321_v24 = vpop.f32.mrf.mxu1  ;;  %v1831_v56 = vpop.xlane.xlu1 %1830 }
 0x635   : > { %v1327_v58 = vpack.c.bf16 %v1321_v24, %v1319_v40  ;;  %2334 = vrcp.f32 %v1831_v56 }
 0x637   : > { %2122 = vmatmul.msk.bf16.gmra.mxu3 %vm882_vm6, %v1327_v58 }
 0x639   : > { %v1843_v54 = vpop.xlane.xlu0 %1842 }
 0x63b   : > { %v2335_v35 = vpop.eup %2334 }
 0x63c   : > { %v1619_v14 = vpop.f32.mrf.mxu1  ;;  %v1855_v17 = vmul.f32 %v2335_v35, %v3279_v37 }
 0x644   : > { %v1621_v22 = vpop.f32.mrf.mxu1 }
 0x645   : > { %v1639_v33 = vpack.c.bf16 %v1621_v22, %v1619_v14 }
 0x647   : > { %2135 = vmatmul.msk.bf16.vlgmr.msrb.gmra.mxu3 %vm882_vm6, %v1639_v33 }
 0x661   : > { %v1828_v42 = vpop.xlane.xlu2 %1827 }
 0x662   : > { %2336 = vrcp.f32 %v1828_v42 }
 0x664   : > { %v1624_v57 = vpop.f32.mrf.mxu1 }
 0x668   : > { %v2337_v39 = vpop.eup %2336 }
 0x669   : > { %v1834_v30 = vpop.xlane.xlu2 %1833  ;;  %v1854_v18 = vmul.f32 %v2337_v39, %v3294_v32 }
 0x66a   : > { %2338 = vrcp.f32 %v1834_v30 }
 0x66b   : > { %v1861_v45 = vpack.c.bf16 %v1855_v17, %v1854_v18  ;;  %2340 = vrcp.f32 %v1837_v21 }
 0x66c   : > { %v1626_v16 = vpop.f32.mrf.mxu1  ;;  %2342 = vrcp.f32 %v1565_v4 }
 0x66d   : > { %v1640_v47 = vpack.c.bf16 %v1626_v16, %v1624_v57  ;;  %2144 = vmatmul.msk.bf16.gmra.mxu0 %vm944_vm7, %v1861_v45 }
 0x66f   : > { %2136 = vmatmul.msk.bf16.gmra.mxu3 %vm882_vm6, %v1640_v47 }
 0x670   : > { %v2339_v63 = vpop.eup %2338 }
 0x671   : > { %v1562_v25 = vpop.xlane.xlu2 %1561  ;;  %v2341_v49 = vpop.eup %2340  ;;  %v1856_v32 = vmul.f32 %v2339_v63, %v3302_v53 }
 0x672   : > { %2344 = vrcp.f32 %v1562_v25  ;;  %v2343_v2 = vpop.eup %2342  ;;  %v1857_v61 = vmul.f32 %v2341_v49, %v3247_v43  ;;  %v873_v43 = vld [vmem:[%s3404_s8 + $0xc] sm:$0xf]  ;;  %v2350_v49 = vld [vmem:[%s2437_s18] sm:$0xff] }
 0x673   : > { %v1581_v28 = vmul.f32 %v2343_v2, %v3253_v10  ;;  %v1934_v10 = vsel %vm1340_vm8, %v873_v43, 0 }
 0x674   : > { %v1629_v59 = vpop.f32.mrf.mxu1  ;;  %v1862_v9 = vpack.c.bf16 %v1857_v61, %v1856_v32  ;;  %1943 = vmatpush.bf16.msrb.mxu1 %v1934_v10 }
 0x678   : > { %v2345_v37 = vpop.eup %2344 }
 0x679   : > { %v1580_v23 = vmul.f32 %v2345_v37, %v3309_v26  ;;  %v1840_v5 = vpop.xlane.xlu2 %1839 }
 0x67a   : > { %2346 = vrcp.f32 %v1840_v5 }
 0x67b   : > { %v1585_v50 = vpack.c.bf16 %v1581_v28, %v1580_v23  ;;  %2348 = vrcp.f32 %v1843_v54 }
 0x67c   : > { %v1631_v60 = vpop.f32.mrf.mxu1 }
 0x67d   : > { %v1641_v11 = vpack.c.bf16 %v1631_v60, %v1629_v59  ;;  %2134 = vmatmul.msk.bf16.gmra.mxu1 %vm944_vm7, %v1585_v50  ;;  %2145 = vmatmul.msk.bf16.gmra.mxu0 %vm944_vm7, %v1862_v9  ;;  %v2185_v59 = vld [vmem:[%s3405_s9] ss:$0 sm:$0xff] }
 0x67f   : > { %2137 = vmatmul.msk.bf16.gmra.mxu3 %vm882_vm6, %v1641_v11 }
 0x680   : > { %v2347_v53 = vpop.eup %2346 }
 0x681   : > { %v2349_v26 = vpop.eup %2348  ;;  %v1858_v36 = vmul.f32 %v2347_v53, %v3313_v20 }
 0x682   : > { %v1859_v48 = vmul.f32 %v2349_v26, %v3260_v55 }
 0x684   : > { %v1863_v34 = vpack.c.bf16 %v1859_v48, %v1858_v36 }
 0x68a   : > { %v1353_v29 = vpop.f32.mrf.mxu3 }
 0x68b   : > { %v1398_v4 = vadd.f32 %v3060_v19, %v1353_v29 }
 0x68d   : > { %2146 = vmatmul.msk.bf16.gmra.mxu0 %vm944_vm7, %v1863_v34 }
 0x692   : > { %v1355_v40 = vpop.f32.mrf.mxu3 }
 0x693   : > { %v1400_v37 = vadd.f32 %v3066_v15, %v1355_v40 }
 0x69a   : > { %v1358_v58 = vpop.f32.mrf.mxu3 }
 0x69b   : > { %v1403_v60 = vadd.f32 %v3072_v52, %v1358_v58 }
 0x6a2   : > { %v1360_v33 = vpop.f32.mrf.mxu3 }
 0x6a3   : > { %v1405_v10 = vadd.f32 %v3076_v51, %v1360_v33 }
 0x6aa   : > { %v1363_v57 = vpop.f32.mrf.mxu3 }
 0x6ad   : > { %v1897_v41 = vpop.f32.mrf.mxu0 }
 0x6b2   : > { %v1365_v39 = vpop.f32.mrf.mxu3 }
 0x6b5   : > { %v1899_v62 = vpop.f32.mrf.mxu0 }
 0x6b6   : > { %v1917_v31 = vpack.c.bf16 %v1899_v62, %v1897_v41  ;;  %v1408_v62 = vadd.f32 %v3078_v44, %v1363_v57 }
 0x6b8   : > { %2147 = vmatmul.msk.bf16.vlgmr.msrb.gmra.mxu1 %vm882_vm6, %v1917_v31 }
 0x6ba   : > { %v1368_v17 = vpop.f32.mrf.mxu3 }
 0x6c2   : > { %v1370_v45 = vpop.f32.mrf.mxu3 }
 0x6ca   : > { %v1667_v16 = vpop.f32.mrf.mxu3 }
 0x6cb   : > { %v1687_v47 = vadd.f32 %v1667_v16, %v1398_v4 }
 0x6d2   : > { %v1669_v32 = vpop.f32.mrf.mxu3 }
 0x6d3   : > { %v1688_v61 = vadd.f32 %v1669_v32, %v1400_v37 }
 0x6ea   : > { %v1902_v3 = vpop.f32.mrf.mxu0 }
 0x6f2   : > { %v1904_v24 = vpop.f32.mrf.mxu0  ;;  %v1672_v9 = vpop.f32.mrf.mxu3 }
 0x6f3   : > { %v1918_v14 = vpack.c.bf16 %v1904_v24, %v1902_v3  ;;  %v1689_v54 = vadd.f32 %v1672_v9, %v1403_v60  ;;  %v1410_v3 = vadd.f32 %v3087_v27, %v1365_v39 }
 0x6f5   : > { %2148 = vmatmul.msk.bf16.gmra.mxu1 %vm882_vm6, %v1918_v14 }
 0x6fa   : > { %v1634_v22 = vpop.f32.mrf.mxu1  ;;  %v1907_v20 = vpop.f32.mrf.mxu0 }
 0x6fb   : > { %v1674_v11 = vpop.f32.mrf.mxu3 }
 0x6fc   : > { %v1690_v36 = vadd.f32 %v1674_v11, %v1405_v10 }
 0x702   : > { %v1636_v55 = vpop.f32.mrf.mxu1  ;;  %v1909_v42 = vpop.f32.mrf.mxu0 }
 0x703   : > { %v1642_v56 = vpack.c.bf16 %v1636_v55, %v1634_v22  ;;  %v1919_v21 = vpack.c.bf16 %v1909_v42, %v1907_v20  ;;  %v1677_v48 = vpop.f32.mrf.mxu3  ;;  %v1413_v20 = vadd.f32 %v3096_v38, %v1368_v17 }
 0x704   : > { %v1691_v31 = vadd.f32 %v1677_v48, %v1408_v62 }
 0x705   : > { %2138 = vmatmul.msk.bf16.gmra.mxu3 %vm882_vm6, %v1642_v56  ;;  %2149 = vmatmul.msk.bf16.gmra.mxu1 %vm882_vm6, %v1919_v21  ;;  %v1415_v21 = vadd.f32 %v3105_v46, %v1370_v45 }
 0x70a   : > { %v1912_v35 = vpop.f32.mrf.mxu0 }
 0x70b   : > { %v1679_v51 = vpop.f32.mrf.mxu3 }
 0x70c   : > { %v1692_v58 = vadd.f32 %v1679_v51, %v1410_v3 }
 0x712   : > { %v1914_v30 = vpop.f32.mrf.mxu0 }
 0x713   : > { %v1920_v18 = vpack.c.bf16 %v1914_v30, %v1912_v35 }
 0x715   : > { %2150 = vmatmul.msk.bf16.gmra.mxu1 %vm882_vm6, %v1920_v18 }
 0x735   : > { %v1945_v25 = vpop.f32.mrf.mxu1 }
 0x736   : > { %v1965_v63 = vadd.f32 %v1945_v25, %v1687_v47 }
 0x738   : > { %v1973_v2 = vadd.f32 %v2350_v49, %v1965_v63 }
 0x73a   : > { %v1985_v19 = vadd.f32 %v2185_v59, %v1973_v2 }
 0x73c   : > { %1993 = vst.msk [vmem:[%s3361_s23] sm:$0xff] %vm403_vm0, %v1985_v19 }
 0x73d   : > { %v1947_v23 = vpop.f32.mrf.mxu1 }
 0x73e   : > { %v1966_v28 = vadd.f32 %v1947_v23, %v1688_v61 }
 0x740   : > { %v1974_v5 = vadd.f32 %v1966_v28, %v2458_v8 }
 0x742   : > { %v1986_v50 = vadd.f32 %v2185_v59, %v1974_v5 }
 0x744   : > { %1994 = vst.msk [vmem:[%s3361_s23 + $0x8] sm:$0xff] %vm403_vm0, %v1986_v50 }
 0x772   : > { %v1950_v43 = vpop.f32.mrf.mxu1 }
 0x773   : > { %v1967_v15 = vadd.f32 %v1950_v43, %v1689_v54 }
 0x775   : > { %v1975_v53 = vadd.f32 %v1967_v15, %v2443_v1 }
 0x777   : > { %v1987_v26 = vadd.f32 %v2185_v59, %v1975_v53 }
 0x779   : > { %1995 = vst.msk [vmem:[%s3361_s23 + $0x10] sm:$0xff] %vm403_vm0, %v1987_v26 }
 0x77a   : > { %v1952_v8 = vpop.f32.mrf.mxu1 }
 0x77b   : > { %v1968_v34 = vadd.f32 %v1952_v8, %v1690_v36 }
 0x77d   : > { %v1976_v41 = vadd.f32 %v1968_v34, %v2455_v7 }
 0x77f   : > { %v1988_v52 = vadd.f32 %v2185_v59, %v1976_v41 }
 0x781   : > { %1996 = vst.msk [vmem:[%s3361_s23 + $0x18] sm:$0xff] %vm403_vm0, %v1988_v52 }
 0x782   : > { %v1955_v1 = vpop.f32.mrf.mxu1 }
 0x783   : > { %v1969_v29 = vadd.f32 %v1955_v1, %v1691_v31 }
 0x785   : > { %v1977_v40 = vadd.f32 %v1969_v29, %v2440_v0 }
 0x787   : > { %v1989_v24 = vadd.f32 %v2185_v59, %v1977_v40 }
 0x788   : > { %v1682_v22 = vpop.f32.mrf.mxu3 }
 0x789   : > { %1997 = vst.msk [vmem:[%s3361_s23 + $0x20] sm:$0xff] %vm403_vm0, %v1989_v24  ;;  %v1693_v55 = vadd.f32 %v1682_v22, %v1413_v20 }
 0x78a   : > { %v1957_v7 = vpop.f32.mrf.mxu1 }
 0x78b   : > { %v1970_v14 = vadd.f32 %v1957_v7, %v1692_v58 }
 0x78d   : > { %v1978_v44 = vadd.f32 %v1970_v14, %v2452_v6 }
 0x78f   : > { %v1990_v33 = vadd.f32 %v2185_v59, %v1978_v44 }
 0x790   : > { %v1684_v42 = vpop.f32.mrf.mxu3 }
 0x791   : > { %1998 = vst.msk [vmem:[%s3361_s23 + $0x28] sm:$0xff] %vm403_vm0, %v1990_v33  ;;  %v1694_v35 = vadd.f32 %v1684_v42, %v1415_v21 }
 0x792   : > { %v1960_v0 = vpop.f32.mrf.mxu1 }
 0x793   : > { %v1971_v56 = vadd.f32 %v1960_v0, %v1693_v55 }
 0x795   : > { %v1979_v27 = vadd.f32 %v1971_v56, %v2470_v13 }
 0x797   : > { %v1991_v57 = vadd.f32 %v2185_v59, %v1979_v27 }
 0x799   : > { %1999 = vst.msk [vmem:[%s3361_s23 + $0x30] sm:$0xff] %vm403_vm0, %v1991_v57 }
 0x79a   : > { %v1962_v39 = vpop.f32.mrf.mxu1 }
 0x79b   : > { %v1972_v6 = vadd.f32 %v1962_v39, %v1694_v35 }
 0x79d   : > { %v1980_v38 = vadd.f32 %v1972_v6, %v2467_v12 }
 0x79f   : > { %v1992_v30 = vadd.f32 %v2185_v59, %v1980_v38 }
 0x7a1   : > { %2000 = vst.msk [vmem:[%s3361_s23 + $0x38] sm:$0xff] %vm403_vm0, %v1992_v30 }
 0x7a2 PF: > { %s20_s13 = sadd.s32 1, %s2357_s13  }
 0x7a3   : > { %p17_p4 = scmp.ge.s32.totalorder %s20_s13, 6  }
 0x7a5   :  { %19 = sbr.rel (!%p17_p4) target bundleno = 1 (0x1), region = 93 }

</bundles_post_ra>
